<compile_context>
chip_gen: v6e
topology: v6e:2x2x1
jax: 0.10.0
libtpu: 0.0.40
codegen_flags: <defaults>
</compile_context>

<pallas_src>
import functools

import jax
import jax.numpy as jnp
from jax.experimental import pallas as pl
from jax.experimental.pallas import tpu as pltpu

# ----------------------------- tiny GPT-2 config ------------------------------
VOCAB = 128          # vocab_size
N_POS = 16           # n_positions
N_EMBD = 32          # n_embd
N_LAYER = 2          # n_layer
N_HEAD = 4           # n_head
HEAD_DIM = N_EMBD // N_HEAD
MLP_DIM = 4 * N_EMBD
LN_EPS = 1e-5
IGNORE_INDEX = -100


# ------------------------------- fused kernel ---------------------------------
def _gpt_kernel(ids_ref, mask_ref, labels_ref,
                wte_ref, wte_t_ref, wpe_ref,
                ln1_g_ref, ln1_b_ref, attn_w_ref, attn_b_ref,
                proj_w_ref, proj_b_ref, ln2_g_ref, ln2_b_ref,
                fc_w_ref, fc_b_ref, mproj_w_ref, mproj_b_ref,
                lnf_g_ref, lnf_b_ref,
                logits_ref, loss_ref, *, B, T):
    M = B * T
    E = N_EMBD
    H = N_HEAD
    Dh = HEAD_DIM
    HB = H * B
    scale = 1.0 / (Dh ** 0.5)

    def layer_norm(x, g, b):
        mu = jnp.mean(x, axis=-1, keepdims=True)
        var = jnp.mean(jnp.square(x - mu), axis=-1, keepdims=True)
        return (x - mu) * jax.lax.rsqrt(var + LN_EPS) * g + b

    # ---- token + position embeddings (gather == one-hot matmul on the MXU) ----
    ids = ids_ref[...]                                              # (M, 1) int32
    tok_onehot = (jax.lax.broadcasted_iota(jnp.int32, (M, VOCAB), 1) == ids
                  ).astype(jnp.bfloat16)                            # 0/1 exact in bf16
    h = jnp.dot(tok_onehot, wte_ref[...],
                preferred_element_type=jnp.float32)                 # (M, E) f32
    pos = wpe_ref[...][0:T, :]                                      # (T, E) f32
    h = (h.reshape(B, T, E) + pos[None, :, :]).reshape(M, E)        # broadcast add

    # ---- causal + padding additive bias, built once, shared by all layers ----
    qi = jax.lax.broadcasted_iota(jnp.int32, (T, T), 0)
    ki = jax.lax.broadcasted_iota(jnp.int32, (T, T), 1)
    causal = ki <= qi                                               # (T, T) bool
    mask = mask_ref[...] > 0.5                                      # (B, T) bool
    keep = jnp.logical_and(causal[None, :, :], mask[:, None, :])    # (B, T, T)
    bias = jnp.where(keep, 0.0, -1e9).astype(jnp.float32)

    # ---- transformer layers (all intermediates stay in VMEM / vregs) ----
    for l in range(N_LAYER):
        # ----- attention block -----
        x = layer_norm(h, ln1_g_ref[l], ln1_b_ref[l])
        qkv = jnp.dot(x.astype(jnp.bfloat16), attn_w_ref[l],
                      preferred_element_type=jnp.float32) + attn_b_ref[l]  # (M, 3E) f32

        # stack heads onto a leading batch axis -> batched einsums (no per-head matmuls)
        q_all = jnp.stack(
            [qkv[:, hh * Dh:(hh + 1) * Dh].reshape(B, T, Dh) for hh in range(H)],
            axis=0).reshape(HB, T, Dh).astype(jnp.bfloat16)
        k_all = jnp.stack(
            [qkv[:, E + hh * Dh:E + (hh + 1) * Dh].reshape(B, T, Dh) for hh in range(H)],
            axis=0).reshape(HB, T, Dh).astype(jnp.bfloat16)
        v_all = jnp.stack(
            [qkv[:, 2 * E + hh * Dh:2 * E + (hh + 1) * Dh].reshape(B, T, Dh)
             for hh in range(H)],
            axis=0).reshape(HB, T, Dh).astype(jnp.bfloat16)

        s = jnp.einsum("bqd,bkd->bqk", q_all, k_all,
                       preferred_element_type=jnp.float32) * scale       # (HB, T, T) f32
        s4 = s.reshape(H, B, T, T) + bias[None, :, :, :]                 # + causal/pad bias
        s4 = s4 - jnp.max(s4, axis=-1, keepdims=True)                    # stable softmax
        p4 = jnp.exp(s4)
        p4 = p4 * pl.reciprocal(jnp.sum(p4, axis=-1, keepdims=True), approx=True)
        p = p4.reshape(HB, T, T).astype(jnp.bfloat16)
        o = jnp.einsum("bqk,bkd->bqd", p, v_all,
                       preferred_element_type=jnp.float32)               # (HB, T, Dh) f32
        o4 = o.reshape(H, B, T, Dh)

        # output projection: concat(heads) @ Wp == sum_h o_h @ Wp[h]  (no lane concat)
        pw = proj_w_ref[l]                                               # (H, Dh, E) bf16
        attn_out = proj_b_ref[l]                                         # (1, E) f32
        for hh in range(H):
            attn_out = attn_out + jnp.dot(
                o4[hh].reshape(M, Dh).astype(jnp.bfloat16), pw[hh],
                preferred_element_type=jnp.float32)
        h = h + attn_out                                                 # fused residual

        # ----- MLP block -----
        x = layer_norm(h, ln2_g_ref[l], ln2_b_ref[l])
        m = jnp.dot(x.astype(jnp.bfloat16), fc_w_ref[l],
                    preferred_element_type=jnp.float32) + fc_b_ref[l]
        # HF GPT-2 "gelu_new" (tanh approximation), kept in f32
        m = 0.5 * m * (1.0 + jnp.tanh(0.7978845608028654 * (m + 0.044715 * m * m * m)))
        m = jnp.dot(m.astype(jnp.bfloat16), mproj_w_ref[l],
                    preferred_element_type=jnp.float32) + mproj_b_ref[l]
        h = h + m                                                        # fused residual

    # ---- final LN + weight-tied LM head (lane-dense (M, 128) output) ----
    h = layer_norm(h, lnf_g_ref[...], lnf_b_ref[...])
    logits = jnp.dot(h.astype(jnp.bfloat16), wte_t_ref[...],
                     preferred_element_type=jnp.float32)                 # (M, V) f32
    logits_ref[...] = logits

    # ---- shifted cross-entropy (labels pre-shifted in wrapper; -100 ignored) ----
    labels = labels_ref[...]                                             # (M, 1) int32
    valid = (labels != IGNORE_INDEX).astype(jnp.float32)                 # (M, 1)
    safe = jnp.where(labels == IGNORE_INDEX, 0, labels)
    mx = jnp.max(logits, axis=-1, keepdims=True)
    lse = jnp.log(jnp.sum(jnp.exp(logits - mx), axis=-1, keepdims=True)) + mx
    # vocab iota recomputed here (short live range); selection stays bool -> where
    vocab_iota = jax.lax.broadcasted_iota(jnp.int32, (M, VOCAB), 1)
    ll = jnp.sum(jnp.where(vocab_iota == safe, logits, 0.0), axis=-1, keepdims=True)
    nll = (lse - ll) * valid
    total = jnp.sum(nll, axis=0, keepdims=True)                          # (1, 1)
    count = jnp.sum(valid, axis=0, keepdims=True)                        # (1, 1)
    # exact divide kept for the single-scalar loss normalization (accuracy; negligible cost)
    loss_ref[...] = total / jnp.maximum(count, 1.0)


def _full(shape):
    zeros = (0,) * len(shape)
    return pl.BlockSpec(shape, lambda i, _z=zeros: _z)


def _forward_impl(params, input_ids, attention_mask, shift_labels):
    B, T = input_ids.shape
    M = B * T
    ids = input_ids.reshape(M, 1).astype(jnp.int32)
    labels = shift_labels.reshape(M, 1).astype(jnp.int32)
    mask = attention_mask.astype(jnp.float32)

    inputs = (ids, mask, labels,
              params["wte"], params["wte_t"], params["wpe"],
              params["ln1_g"], params["ln1_b"], params["attn_w"], params["attn_b"],
              params["proj_w"], params["proj_b"], params["ln2_g"], params["ln2_b"],
              params["fc_w"], params["fc_b"], params["mproj_w"], params["mproj_b"],
              params["lnf_g"], params["lnf_b"])

    logits, loss = pl.pallas_call(
        functools.partial(_gpt_kernel, B=B, T=T),
        out_shape=(jax.ShapeDtypeStruct((M, VOCAB), jnp.float32),
                   jax.ShapeDtypeStruct((1, 1), jnp.float32)),
        grid=(1,),
        in_specs=[_full(x.shape) for x in inputs],
        out_specs=(_full((M, VOCAB)), _full((1, 1))),
        compiler_params=pltpu.CompilerParams(dimension_semantics=("arbitrary",)),
    )(*inputs)
    return loss[0, 0], logits.reshape(B, T, VOCAB)


_forward_jit = jax.jit(_forward_impl)


# ----------------------------- parameters (synthetic) -------------------------
def init_params(key):
    """Synthetic GPT-2-shaped params.  MXU weights stored in bf16 (f32 accumulation
    happens in-kernel); LN params and biases kept f32.  wte^T precomputed once here."""
    std = 0.02
    L = N_LAYER
    ks = jax.random.split(key, 6)

    def rnd(k, shape):
        return jax.random.normal(k, shape, jnp.float32) * std

    wte = rnd(ks[0], (VOCAB, N_EMBD))
    return {
        "wte": wte.astype(jnp.bfloat16),                         # (V, E) embedding matmul rhs
        "wte_t": wte.T.astype(jnp.bfloat16),                     # (E, V) tied LM head, lane-dense
        "wpe": rnd(ks[1], (N_POS, N_EMBD)),                      # added in f32
        # per-layer params stacked on a leading layer axis (sliced statically in-kernel)
        "ln1_g": jnp.ones((L, 1, N_EMBD), jnp.float32),
        "ln1_b": jnp.zeros((L, 1, N_EMBD), jnp.float32),
        "attn_w": rnd(ks[2], (L, N_EMBD, 3 * N_EMBD)).astype(jnp.bfloat16),
        "attn_b": jnp.zeros((L, 1, 3 * N_EMBD), jnp.float32),
        # output projection pre-split per head: (L, H, Dh, E) so the kernel accumulates
        # o_h @ Wp_h instead of concatenating heads.
        "proj_w": rnd(ks[3], (L, N_EMBD, N_EMBD))
                  .reshape(L, N_HEAD, HEAD_DIM, N_EMBD).astype(jnp.bfloat16),
        "proj_b": jnp.zeros((L, 1, N_EMBD), jnp.float32),
        "ln2_g": jnp.ones((L, 1, N_EMBD), jnp.float32),
        "ln2_b": jnp.zeros((L, 1, N_EMBD), jnp.float32),
        "fc_w": rnd(ks[4], (L, N_EMBD, MLP_DIM)).astype(jnp.bfloat16),
        "fc_b": jnp.zeros((L, 1, MLP_DIM), jnp.float32),
        "mproj_w": rnd(ks[5], (L, MLP_DIM, N_EMBD)).astype(jnp.bfloat16),
        "mproj_b": jnp.zeros((L, 1, N_EMBD), jnp.float32),
        "lnf_g": jnp.ones((1, N_EMBD), jnp.float32),
        "lnf_b": jnp.zeros((1, N_EMBD), jnp.float32),
    }


# --------------------------------- forward ------------------------------------
def gpt_forward(params, input_ids, attention_mask=None, labels=None):
    """Mirrors GPT2LMHeadModel.forward: returns logits, or (loss, logits) if labels.

    Note: when no label is valid (all -100) the loss is 0.0 (HF would return NaN);
    padded positions should carry -100 labels if they are to be excluded from the loss.
    """
    B, T = input_ids.shape
    if attention_mask is None:
        attention_mask = jnp.ones((B, T), jnp.float32)
    if labels is None:
        shift_labels = jnp.full((B, T), IGNORE_INDEX, jnp.int32)
    else:
        # HF shift: logits[:, :-1] predict labels[:, 1:]; last position ignored.
        shift_labels = jnp.concatenate(
            [labels[:, 1:].astype(jnp.int32),
             jnp.full((B, 1), IGNORE_INDEX, jnp.int32)], axis=1)

    loss, logits = _forward_jit(params, input_ids.astype(jnp.int32),
                                attention_mask, shift_labels)
    if labels is None:
        return logits
    return loss, logits


# ----------------------------------- main --------------------------------------
if __name__ == "__main__":
    key = jax.random.PRNGKey(0)
    pkey, dkey = jax.random.split(key)
    params = init_params(pkey)

    B, T = 2, 8
    input_ids = jax.random.randint(dkey, (B, T), 0, VOCAB, dtype=jnp.int32)
    attention_mask = jnp.ones((B, T), dtype=jnp.int32)

    loss, logits = gpt_forward(params, input_ids,
                               attention_mask=attention_mask, labels=input_ids)
    jax.block_until_ready(logits)
    jax.block_until_ready(loss)

    assert logits.shape == (B, T, VOCAB)
    assert logits.dtype == jnp.float32
    assert bool(jnp.isfinite(loss)) and bool(jnp.all(jnp.isfinite(logits)))

    # logits-only path (labels=None) also exercised once
    logits2 = gpt_forward(params, input_ids, attention_mask=attention_mask)
    jax.block_until_ready(logits2)
    assert bool(jnp.all(jnp.isfinite(logits2)))

    print("KERNEL_OK")
</pallas_src>

<mosaic_0001>
module attributes {stable_mosaic.version = 11 : i64} {
  func.func @_gpt_kernel(%arg0: i32, %arg1: memref<16x1xi32, #tpu.memory_space<vmem>>, %arg2: memref<2x8xf32, #tpu.memory_space<vmem>>, %arg3: memref<16x1xi32, #tpu.memory_space<vmem>>, %arg4: memref<128x32xbf16, #tpu.memory_space<vmem>>, %arg5: memref<32x128xbf16, #tpu.memory_space<vmem>>, %arg6: memref<16x32xf32, #tpu.memory_space<vmem>>, %arg7: memref<2x1x32xf32, #tpu.memory_space<vmem>>, %arg8: memref<2x1x32xf32, #tpu.memory_space<vmem>>, %arg9: memref<2x32x96xbf16, #tpu.memory_space<vmem>>, %arg10: memref<2x1x96xf32, #tpu.memory_space<vmem>>, %arg11: memref<2x4x8x32xbf16, #tpu.memory_space<vmem>>, %arg12: memref<2x1x32xf32, #tpu.memory_space<vmem>>, %arg13: memref<2x1x32xf32, #tpu.memory_space<vmem>>, %arg14: memref<2x1x32xf32, #tpu.memory_space<vmem>>, %arg15: memref<2x32x128xbf16, #tpu.memory_space<vmem>>, %arg16: memref<2x1x128xf32, #tpu.memory_space<vmem>>, %arg17: memref<2x128x32xbf16, #tpu.memory_space<vmem>>, %arg18: memref<2x1x32xf32, #tpu.memory_space<vmem>>, %arg19: memref<1x32xf32, #tpu.memory_space<vmem>>, %arg20: memref<1x32xf32, #tpu.memory_space<vmem>>, %arg21: memref<16x128xf32, #tpu.memory_space<vmem>>, %arg22: memref<1x1xf32, #tpu.memory_space<vmem>>) attributes {dimension_semantics = [#tpu.dimension_semantics<arbitrary>], iteration_bounds = array<i64: 1>, scalar_prefetch = 0 : i64, scratch_operands = 0 : i64, tpu.core_type = #tpu.core_type<tc>, window_params = [{pipeline_mode = #tpu.pipeline_mode<synchronous>, transform_indices = @transform_0, window_bounds = array<i64: 16, 1>}, {pipeline_mode = #tpu.pipeline_mode<synchronous>, transform_indices = @transform_1, window_bounds = array<i64: 2, 8>}, {pipeline_mode = #tpu.pipeline_mode<synchronous>, transform_indices = @transform_2, window_bounds = array<i64: 16, 1>}, {pipeline_mode = #tpu.pipeline_mode<synchronous>, transform_indices = @transform_3, window_bounds = array<i64: 128, 32>}, {pipeline_mode = #tpu.pipeline_mode<synchronous>, transform_indices = @transform_4, window_bounds = array<i64: 32, 128>}, {pipeline_mode = #tpu.pipeline_mode<synchronous>, transform_indices = @transform_5, window_bounds = array<i64: 16, 32>}, {pipeline_mode = #tpu.pipeline_mode<synchronous>, transform_indices = @transform_6, window_bounds = array<i64: 2, 1, 32>}, {pipeline_mode = #tpu.pipeline_mode<synchronous>, transform_indices = @transform_7, window_bounds = array<i64: 2, 1, 32>}, {pipeline_mode = #tpu.pipeline_mode<synchronous>, transform_indices = @transform_8, window_bounds = array<i64: 2, 32, 96>}, {pipeline_mode = #tpu.pipeline_mode<synchronous>, transform_indices = @transform_9, window_bounds = array<i64: 2, 1, 96>}, {pipeline_mode = #tpu.pipeline_mode<synchronous>, transform_indices = @transform_10, window_bounds = array<i64: 2, 4, 8, 32>}, {pipeline_mode = #tpu.pipeline_mode<synchronous>, transform_indices = @transform_11, window_bounds = array<i64: 2, 1, 32>}, {pipeline_mode = #tpu.pipeline_mode<synchronous>, transform_indices = @transform_12, window_bounds = array<i64: 2, 1, 32>}, {pipeline_mode = #tpu.pipeline_mode<synchronous>, transform_indices = @transform_13, window_bounds = array<i64: 2, 1, 32>}, {pipeline_mode = #tpu.pipeline_mode<synchronous>, transform_indices = @transform_14, window_bounds = array<i64: 2, 32, 128>}, {pipeline_mode = #tpu.pipeline_mode<synchronous>, transform_indices = @transform_15, window_bounds = array<i64: 2, 1, 128>}, {pipeline_mode = #tpu.pipeline_mode<synchronous>, transform_indices = @transform_16, window_bounds = array<i64: 2, 128, 32>}, {pipeline_mode = #tpu.pipeline_mode<synchronous>, transform_indices = @transform_17, window_bounds = array<i64: 2, 1, 32>}, {pipeline_mode = #tpu.pipeline_mode<synchronous>, transform_indices = @transform_18, window_bounds = array<i64: 1, 32>}, {pipeline_mode = #tpu.pipeline_mode<synchronous>, transform_indices = @transform_19, window_bounds = array<i64: 1, 32>}, {pipeline_mode = #tpu.pipeline_mode<synchronous>, transform_indices = @transform_20, window_bounds = array<i64: 16, 128>}, {pipeline_mode = #tpu.pipeline_mode<synchronous>, transform_indices = @transform_21, window_bounds = array<i64: 1, 1>}]} {
    %c0 = arith.constant 0 : index
    %c0_0 = arith.constant 0 : index
    %0 = vector.load %arg1[%c0, %c0_0] : memref<16x1xi32, #tpu.memory_space<vmem>>, vector<16x1xi32>
    %1 = tpu.iota {dimensions = array<i32: 1>} : vector<16x128xi32>
    %2 = vector.broadcast %0 : vector<16x1xi32> to vector<16x128xi32>
    %3 = arith.cmpi eq, %1, %2 : vector<16x128xi32>
    %4 = arith.extui %3 : vector<16x128xi1> to vector<16x128xi32>
    %5 = arith.sitofp %4 : vector<16x128xi32> to vector<16x128xf32>
    %6 = arith.truncf %5 : vector<16x128xf32> to vector<16x128xbf16>
    %c0_1 = arith.constant 0 : index
    %c0_2 = arith.constant 0 : index
    %7 = vector.load %arg4[%c0_1, %c0_2] : memref<128x32xbf16, #tpu.memory_space<vmem>>, vector<128x32xbf16>
    %cst = arith.constant dense<0.000000e+00> : vector<16x32xf32>
    %8 = tpu.matmul %6, %7, %cst {dimension_numbers = #tpu.dot_dimension_numbers<[1], [0], [0], [1], [0, 0, 1, 1], [], []>} : vector<16x128xbf16>, vector<128x32xbf16>, vector<16x32xf32> -> vector<16x32xf32>
    %c0_3 = arith.constant 0 : index
    %c0_4 = arith.constant 0 : index
    %9 = vector.load %arg6[%c0_3, %c0_4] : memref<16x32xf32, #tpu.memory_space<vmem>>, vector<16x32xf32>
    %10 = vector.extract_strided_slice %9 {offsets = [0, 0], sizes = [8, 32], strides = [1, 1]} : vector<16x32xf32> to vector<8x32xf32>
    %11 = vector.shape_cast %8 : vector<16x32xf32> to vector<2x8x32xf32>
    %12 = vector.shape_cast %10 : vector<8x32xf32> to vector<1x8x32xf32>
    %13 = vector.broadcast %12 : vector<1x8x32xf32> to vector<2x8x32xf32>
    %14 = arith.addf %11, %13 : vector<2x8x32xf32>
    %15 = vector.shape_cast %14 : vector<2x8x32xf32> to vector<16x32xf32>
    %16 = tpu.iota {dimensions = array<i32: 0>} : vector<8x8xi32>
    %17 = tpu.iota {dimensions = array<i32: 1>} : vector<8x8xi32>
    %18 = arith.cmpi sle, %17, %16 : vector<8x8xi32>
    %c0_5 = arith.constant 0 : index
    %c0_6 = arith.constant 0 : index
    %19 = vector.load %arg2[%c0_5, %c0_6] : memref<2x8xf32, #tpu.memory_space<vmem>>, vector<2x8xf32>
    %cst_7 = arith.constant 5.000000e-01 : f32
    %20 = vector.broadcast %cst_7 : f32 to vector<2x8xf32>
    %21 = arith.cmpf ogt, %19, %20 : vector<2x8xf32>
    %22 = vector.shape_cast %18 : vector<8x8xi1> to vector<1x8x8xi1>
    %23 = vector.shape_cast %21 : vector<2x8xi1> to vector<2x1x8xi1>
    %24 = vector.broadcast %22 : vector<1x8x8xi1> to vector<2x8x8xi1>
    %25 = vector.broadcast %23 : vector<2x1x8xi1> to vector<2x8x8xi1>
    %26 = arith.andi %24, %25 : vector<2x8x8xi1>
    %cst_8 = arith.constant 0.000000e+00 : f32
    %cst_9 = arith.constant -1.000000e+09 : f32
    %27 = vector.broadcast %cst_8 : f32 to vector<2x8x8xf32>
    %28 = vector.broadcast %cst_9 : f32 to vector<2x8x8xf32>
    %29 = arith.select %26, %27, %28 : vector<2x8x8xi1>, vector<2x8x8xf32>
    %c0_10 = arith.constant 0 : index
    %c0_11 = arith.constant 0 : index
    %c0_12 = arith.constant 0 : index
    %30 = vector.load %arg7[%c0_10, %c0_11, %c0_12] : memref<2x1x32xf32, #tpu.memory_space<vmem>>, vector<1x1x32xf32>
    %31 = vector.shape_cast %30 : vector<1x1x32xf32> to vector<1x32xf32>
    %c0_13 = arith.constant 0 : index
    %c0_14 = arith.constant 0 : index
    %c0_15 = arith.constant 0 : index
    %32 = vector.load %arg8[%c0_13, %c0_14, %c0_15] : memref<2x1x32xf32, #tpu.memory_space<vmem>>, vector<1x1x32xf32>
    %33 = vector.shape_cast %32 : vector<1x1x32xf32> to vector<1x32xf32>
    %cst_16 = arith.constant dense<0.000000e+00> : vector<16xf32>
    %34 = vector.multi_reduction <add>, %15, %cst_16 [1] : vector<16x32xf32> to vector<16xf32>
    %35 = vector.shape_cast %34 : vector<16xf32> to vector<16x1xf32>
    %cst_17 = arith.constant 3.200000e+01 : f32
    %36 = vector.broadcast %cst_17 : f32 to vector<16x1xf32>
    %37 = arith.divf %35, %36 : vector<16x1xf32>
    %38 = vector.broadcast %37 : vector<16x1xf32> to vector<16x32xf32>
    %39 = arith.subf %15, %38 : vector<16x32xf32>
    %40 = arith.mulf %39, %39 : vector<16x32xf32>
    %cst_18 = arith.constant dense<0.000000e+00> : vector<16xf32>
    %41 = vector.multi_reduction <add>, %40, %cst_18 [1] : vector<16x32xf32> to vector<16xf32>
    %42 = vector.shape_cast %41 : vector<16xf32> to vector<16x1xf32>
    %cst_19 = arith.constant 3.200000e+01 : f32
    %43 = vector.broadcast %cst_19 : f32 to vector<16x1xf32>
    %44 = arith.divf %42, %43 : vector<16x1xf32>
    %45 = vector.broadcast %37 : vector<16x1xf32> to vector<16x32xf32>
    %46 = arith.subf %15, %45 : vector<16x32xf32>
    %cst_20 = arith.constant 9.99999974E-6 : f32
    %47 = vector.broadcast %cst_20 : f32 to vector<16x1xf32>
    %48 = arith.addf %44, %47 : vector<16x1xf32>
    %49 = math.rsqrt %48 : vector<16x1xf32>
    %50 = vector.broadcast %49 : vector<16x1xf32> to vector<16x32xf32>
    %51 = arith.mulf %46, %50 : vector<16x32xf32>
    %52 = vector.broadcast %31 : vector<1x32xf32> to vector<16x32xf32>
    %53 = arith.mulf %51, %52 : vector<16x32xf32>
    %54 = vector.broadcast %33 : vector<1x32xf32> to vector<16x32xf32>
    %55 = arith.addf %53, %54 : vector<16x32xf32>
    %56 = arith.truncf %55 : vector<16x32xf32> to vector<16x32xbf16>
    %c0_21 = arith.constant 0 : index
    %c0_22 = arith.constant 0 : index
    %c0_23 = arith.constant 0 : index
    %57 = vector.load %arg9[%c0_21, %c0_22, %c0_23] : memref<2x32x96xbf16, #tpu.memory_space<vmem>>, vector<1x32x96xbf16>
    %58 = vector.shape_cast %57 : vector<1x32x96xbf16> to vector<32x96xbf16>
    %cst_24 = arith.constant dense<0.000000e+00> : vector<16x96xf32>
    %59 = tpu.matmul %56, %58, %cst_24 {dimension_numbers = #tpu.dot_dimension_numbers<[1], [0], [0], [1], [0, 0, 1, 1], [], []>} : vector<16x32xbf16>, vector<32x96xbf16>, vector<16x96xf32> -> vector<16x96xf32>
    %c0_25 = arith.constant 0 : index
    %c0_26 = arith.constant 0 : index
    %c0_27 = arith.constant 0 : index
    %60 = vector.load %arg10[%c0_25, %c0_26, %c0_27] : memref<2x1x96xf32, #tpu.memory_space<vmem>>, vector<1x1x96xf32>
    %61 = vector.shape_cast %60 : vector<1x1x96xf32> to vector<1x96xf32>
    %62 = vector.broadcast %61 : vector<1x96xf32> to vector<16x96xf32>
    %63 = arith.addf %59, %62 : vector<16x96xf32>
    %64 = vector.extract_strided_slice %63 {offsets = [0, 0], sizes = [16, 8], strides = [1, 1]} : vector<16x96xf32> to vector<16x8xf32>
    %65 = vector.shape_cast %64 : vector<16x8xf32> to vector<2x8x8xf32>
    %66 = vector.extract_strided_slice %63 {offsets = [0, 8], sizes = [16, 8], strides = [1, 1]} : vector<16x96xf32> to vector<16x8xf32>
    %67 = vector.shape_cast %66 : vector<16x8xf32> to vector<2x8x8xf32>
    %68 = vector.extract_strided_slice %63 {offsets = [0, 16], sizes = [16, 8], strides = [1, 1]} : vector<16x96xf32> to vector<16x8xf32>
    %69 = vector.shape_cast %68 : vector<16x8xf32> to vector<2x8x8xf32>
    %70 = vector.extract_strided_slice %63 {offsets = [0, 24], sizes = [16, 8], strides = [1, 1]} : vector<16x96xf32> to vector<16x8xf32>
    %71 = vector.shape_cast %70 : vector<16x8xf32> to vector<2x8x8xf32>
    %72 = vector.shape_cast %65 : vector<2x8x8xf32> to vector<1x2x8x8xf32>
    %73 = vector.shape_cast %67 : vector<2x8x8xf32> to vector<1x2x8x8xf32>
    %74 = vector.shape_cast %69 : vector<2x8x8xf32> to vector<1x2x8x8xf32>
    %75 = vector.shape_cast %71 : vector<2x8x8xf32> to vector<1x2x8x8xf32>
    %76 = tpu.concatenate %72, %73, %74, %75 in 0 : vector<1x2x8x8xf32>, vector<1x2x8x8xf32>, vector<1x2x8x8xf32>, vector<1x2x8x8xf32> -> vector<4x2x8x8xf32>
    %77 = vector.shape_cast %76 : vector<4x2x8x8xf32> to vector<8x8x8xf32>
    %78 = arith.truncf %77 : vector<8x8x8xf32> to vector<8x8x8xbf16>
    %79 = vector.extract_strided_slice %63 {offsets = [0, 32], sizes = [16, 8], strides = [1, 1]} : vector<16x96xf32> to vector<16x8xf32>
    %80 = vector.shape_cast %79 : vector<16x8xf32> to vector<2x8x8xf32>
    %81 = vector.extract_strided_slice %63 {offsets = [0, 40], sizes = [16, 8], strides = [1, 1]} : vector<16x96xf32> to vector<16x8xf32>
    %82 = vector.shape_cast %81 : vector<16x8xf32> to vector<2x8x8xf32>
    %83 = vector.extract_strided_slice %63 {offsets = [0, 48], sizes = [16, 8], strides = [1, 1]} : vector<16x96xf32> to vector<16x8xf32>
    %84 = vector.shape_cast %83 : vector<16x8xf32> to vector<2x8x8xf32>
    %85 = vector.extract_strided_slice %63 {offsets = [0, 56], sizes = [16, 8], strides = [1, 1]} : vector<16x96xf32> to vector<16x8xf32>
    %86 = vector.shape_cast %85 : vector<16x8xf32> to vector<2x8x8xf32>
    %87 = vector.shape_cast %80 : vector<2x8x8xf32> to vector<1x2x8x8xf32>
    %88 = vector.shape_cast %82 : vector<2x8x8xf32> to vector<1x2x8x8xf32>
    %89 = vector.shape_cast %84 : vector<2x8x8xf32> to vector<1x2x8x8xf32>
    %90 = vector.shape_cast %86 : vector<2x8x8xf32> to vector<1x2x8x8xf32>
    %91 = tpu.concatenate %87, %88, %89, %90 in 0 : vector<1x2x8x8xf32>, vector<1x2x8x8xf32>, vector<1x2x8x8xf32>, vector<1x2x8x8xf32> -> vector<4x2x8x8xf32>
    %92 = vector.shape_cast %91 : vector<4x2x8x8xf32> to vector<8x8x8xf32>
    %93 = arith.truncf %92 : vector<8x8x8xf32> to vector<8x8x8xbf16>
    %94 = vector.extract_strided_slice %63 {offsets = [0, 64], sizes = [16, 8], strides = [1, 1]} : vector<16x96xf32> to vector<16x8xf32>
    %95 = vector.shape_cast %94 : vector<16x8xf32> to vector<2x8x8xf32>
    %96 = vector.extract_strided_slice %63 {offsets = [0, 72], sizes = [16, 8], strides = [1, 1]} : vector<16x96xf32> to vector<16x8xf32>
    %97 = vector.shape_cast %96 : vector<16x8xf32> to vector<2x8x8xf32>
    %98 = vector.extract_strided_slice %63 {offsets = [0, 80], sizes = [16, 8], strides = [1, 1]} : vector<16x96xf32> to vector<16x8xf32>
    %99 = vector.shape_cast %98 : vector<16x8xf32> to vector<2x8x8xf32>
    %100 = vector.extract_strided_slice %63 {offsets = [0, 88], sizes = [16, 8], strides = [1, 1]} : vector<16x96xf32> to vector<16x8xf32>
    %101 = vector.shape_cast %100 : vector<16x8xf32> to vector<2x8x8xf32>
    %102 = vector.shape_cast %95 : vector<2x8x8xf32> to vector<1x2x8x8xf32>
    %103 = vector.shape_cast %97 : vector<2x8x8xf32> to vector<1x2x8x8xf32>
    %104 = vector.shape_cast %99 : vector<2x8x8xf32> to vector<1x2x8x8xf32>
    %105 = vector.shape_cast %101 : vector<2x8x8xf32> to vector<1x2x8x8xf32>
    %106 = tpu.concatenate %102, %103, %104, %105 in 0 : vector<1x2x8x8xf32>, vector<1x2x8x8xf32>, vector<1x2x8x8xf32>, vector<1x2x8x8xf32> -> vector<4x2x8x8xf32>
    %107 = vector.shape_cast %106 : vector<4x2x8x8xf32> to vector<8x8x8xf32>
    %108 = arith.truncf %107 : vector<8x8x8xf32> to vector<8x8x8xbf16>
    "tpu.trace_start"() <{level = 10 : i32, message = "bqd,bkd->bqk"}> : () -> ()
    %cst_28 = arith.constant dense<0.000000e+00> : vector<8x8x8xf32>
    %109 = tpu.matmul %78, %93, %cst_28 {dimension_numbers = #tpu.dot_dimension_numbers<[2], [2], [1], [1], [0, 0, 0, 1, 1, 1], [0], [0]>} : vector<8x8x8xbf16>, vector<8x8x8xbf16>, vector<8x8x8xf32> -> vector<8x8x8xf32>
    "tpu.trace_stop"() : () -> ()
    %cst_29 = arith.constant 0.353553385 : f32
    %110 = vector.broadcast %cst_29 : f32 to vector<8x8x8xf32>
    %111 = arith.mulf %109, %110 : vector<8x8x8xf32>
    %112 = vector.shape_cast %111 : vector<8x8x8xf32> to vector<4x2x8x8xf32>
    %113 = vector.shape_cast %29 : vector<2x8x8xf32> to vector<1x2x8x8xf32>
    %114 = vector.broadcast %113 : vector<1x2x8x8xf32> to vector<4x2x8x8xf32>
    %115 = arith.addf %112, %114 : vector<4x2x8x8xf32>
    %cst_30 = arith.constant dense<0xFF800000> : vector<4x2x8xf32>
    %116 = vector.multi_reduction <maximumf>, %115, %cst_30 [3] : vector<4x2x8x8xf32> to vector<4x2x8xf32>
    %117 = vector.shape_cast %116 : vector<4x2x8xf32> to vector<4x2x8x1xf32>
    %118 = vector.broadcast %117 : vector<4x2x8x1xf32> to vector<4x2x8x8xf32>
    %119 = arith.subf %115, %118 : vector<4x2x8x8xf32>
    %120 = math.exp %119 : vector<4x2x8x8xf32>
    %cst_31 = arith.constant dense<0.000000e+00> : vector<4x2x8xf32>
    %121 = vector.multi_reduction <add>, %120, %cst_31 [3] : vector<4x2x8x8xf32> to vector<4x2x8xf32>
    %122 = vector.shape_cast %121 : vector<4x2x8xf32> to vector<4x2x8x1xf32>
    %123 = tpu.reciprocal %122 {approx = true} : vector<4x2x8x1xf32> -> vector<4x2x8x1xf32>
    %124 = vector.broadcast %123 : vector<4x2x8x1xf32> to vector<4x2x8x8xf32>
    %125 = arith.mulf %120, %124 : vector<4x2x8x8xf32>
    %126 = vector.shape_cast %125 : vector<4x2x8x8xf32> to vector<8x8x8xf32>
    %127 = arith.truncf %126 : vector<8x8x8xf32> to vector<8x8x8xbf16>
    "tpu.trace_start"() <{level = 10 : i32, message = "bqk,bkd->bqd"}> : () -> ()
    %cst_32 = arith.constant dense<0.000000e+00> : vector<8x8x8xf32>
    %128 = tpu.matmul %127, %108, %cst_32 {dimension_numbers = #tpu.dot_dimension_numbers<[2], [1], [1], [2], [0, 0, 0, 1, 1, 2], [0], [0]>} : vector<8x8x8xbf16>, vector<8x8x8xbf16>, vector<8x8x8xf32> -> vector<8x8x8xf32>
    "tpu.trace_stop"() : () -> ()
    %129 = vector.shape_cast %128 : vector<8x8x8xf32> to vector<4x2x8x8xf32>
    %c0_33 = arith.constant 0 : index
    %c0_34 = arith.constant 0 : index
    %c0_35 = arith.constant 0 : index
    %c0_36 = arith.constant 0 : index
    %130 = vector.load %arg11[%c0_33, %c0_34, %c0_35, %c0_36] : memref<2x4x8x32xbf16, #tpu.memory_space<vmem>>, vector<1x4x8x32xbf16>
    %131 = vector.shape_cast %130 : vector<1x4x8x32xbf16> to vector<4x8x32xbf16>
    %c0_37 = arith.constant 0 : index
    %c0_38 = arith.constant 0 : index
    %c0_39 = arith.constant 0 : index
    %132 = vector.load %arg12[%c0_37, %c0_38, %c0_39] : memref<2x1x32xf32, #tpu.memory_space<vmem>>, vector<1x1x32xf32>
    %133 = vector.shape_cast %132 : vector<1x1x32xf32> to vector<1x32xf32>
    %134 = vector.extract_strided_slice %129 {offsets = [0, 0, 0, 0], sizes = [1, 2, 8, 8], strides = [1, 1, 1, 1]} : vector<4x2x8x8xf32> to vector<1x2x8x8xf32>
    %135 = vector.shape_cast %134 : vector<1x2x8x8xf32> to vector<2x8x8xf32>
    %136 = vector.shape_cast %135 : vector<2x8x8xf32> to vector<16x8xf32>
    %137 = arith.truncf %136 : vector<16x8xf32> to vector<16x8xbf16>
    %138 = vector.extract_strided_slice %131 {offsets = [0, 0, 0], sizes = [1, 8, 32], strides = [1, 1, 1]} : vector<4x8x32xbf16> to vector<1x8x32xbf16>
    %139 = vector.shape_cast %138 : vector<1x8x32xbf16> to vector<8x32xbf16>
    %cst_40 = arith.constant dense<0.000000e+00> : vector<16x32xf32>
    %140 = tpu.matmul %137, %139, %cst_40 {dimension_numbers = #tpu.dot_dimension_numbers<[1], [0], [0], [1], [0, 0, 1, 1], [], []>} : vector<16x8xbf16>, vector<8x32xbf16>, vector<16x32xf32> -> vector<16x32xf32>
    %141 = vector.broadcast %133 : vector<1x32xf32> to vector<16x32xf32>
    %142 = arith.addf %141, %140 : vector<16x32xf32>
    %143 = vector.extract_strided_slice %129 {offsets = [1, 0, 0, 0], sizes = [1, 2, 8, 8], strides = [1, 1, 1, 1]} : vector<4x2x8x8xf32> to vector<1x2x8x8xf32>
    %144 = vector.shape_cast %143 : vector<1x2x8x8xf32> to vector<2x8x8xf32>
    %145 = vector.shape_cast %144 : vector<2x8x8xf32> to vector<16x8xf32>
    %146 = arith.truncf %145 : vector<16x8xf32> to vector<16x8xbf16>
    %147 = vector.extract_strided_slice %131 {offsets = [1, 0, 0], sizes = [1, 8, 32], strides = [1, 1, 1]} : vector<4x8x32xbf16> to vector<1x8x32xbf16>
    %148 = vector.shape_cast %147 : vector<1x8x32xbf16> to vector<8x32xbf16>
    %cst_41 = arith.constant dense<0.000000e+00> : vector<16x32xf32>
    %149 = tpu.matmul %146, %148, %cst_41 {dimension_numbers = #tpu.dot_dimension_numbers<[1], [0], [0], [1], [0, 0, 1, 1], [], []>} : vector<16x8xbf16>, vector<8x32xbf16>, vector<16x32xf32> -> vector<16x32xf32>
    %150 = arith.addf %142, %149 : vector<16x32xf32>
    %151 = vector.extract_strided_slice %129 {offsets = [2, 0, 0, 0], sizes = [1, 2, 8, 8], strides = [1, 1, 1, 1]} : vector<4x2x8x8xf32> to vector<1x2x8x8xf32>
    %152 = vector.shape_cast %151 : vector<1x2x8x8xf32> to vector<2x8x8xf32>
    %153 = vector.shape_cast %152 : vector<2x8x8xf32> to vector<16x8xf32>
    %154 = arith.truncf %153 : vector<16x8xf32> to vector<16x8xbf16>
    %155 = vector.extract_strided_slice %131 {offsets = [2, 0, 0], sizes = [1, 8, 32], strides = [1, 1, 1]} : vector<4x8x32xbf16> to vector<1x8x32xbf16>
    %156 = vector.shape_cast %155 : vector<1x8x32xbf16> to vector<8x32xbf16>
    %cst_42 = arith.constant dense<0.000000e+00> : vector<16x32xf32>
    %157 = tpu.matmul %154, %156, %cst_42 {dimension_numbers = #tpu.dot_dimension_numbers<[1], [0], [0], [1], [0, 0, 1, 1], [], []>} : vector<16x8xbf16>, vector<8x32xbf16>, vector<16x32xf32> -> vector<16x32xf32>
    %158 = arith.addf %150, %157 : vector<16x32xf32>
    %159 = vector.extract_strided_slice %129 {offsets = [3, 0, 0, 0], sizes = [1, 2, 8, 8], strides = [1, 1, 1, 1]} : vector<4x2x8x8xf32> to vector<1x2x8x8xf32>
    %160 = vector.shape_cast %159 : vector<1x2x8x8xf32> to vector<2x8x8xf32>
    %161 = vector.shape_cast %160 : vector<2x8x8xf32> to vector<16x8xf32>
    %162 = arith.truncf %161 : vector<16x8xf32> to vector<16x8xbf16>
    %163 = vector.extract_strided_slice %131 {offsets = [3, 0, 0], sizes = [1, 8, 32], strides = [1, 1, 1]} : vector<4x8x32xbf16> to vector<1x8x32xbf16>
    %164 = vector.shape_cast %163 : vector<1x8x32xbf16> to vector<8x32xbf16>
    %cst_43 = arith.constant dense<0.000000e+00> : vector<16x32xf32>
    %165 = tpu.matmul %162, %164, %cst_43 {dimension_numbers = #tpu.dot_dimension_numbers<[1], [0], [0], [1], [0, 0, 1, 1], [], []>} : vector<16x8xbf16>, vector<8x32xbf16>, vector<16x32xf32> -> vector<16x32xf32>
    %166 = arith.addf %158, %165 : vector<16x32xf32>
    %167 = arith.addf %15, %166 : vector<16x32xf32>
    %c0_44 = arith.constant 0 : index
    %c0_45 = arith.constant 0 : index
    %c0_46 = arith.constant 0 : index
    %168 = vector.load %arg13[%c0_44, %c0_45, %c0_46] : memref<2x1x32xf32, #tpu.memory_space<vmem>>, vector<1x1x32xf32>
    %169 = vector.shape_cast %168 : vector<1x1x32xf32> to vector<1x32xf32>
    %c0_47 = arith.constant 0 : index
    %c0_48 = arith.constant 0 : index
    %c0_49 = arith.constant 0 : index
    %170 = vector.load %arg14[%c0_47, %c0_48, %c0_49] : memref<2x1x32xf32, #tpu.memory_space<vmem>>, vector<1x1x32xf32>
    %171 = vector.shape_cast %170 : vector<1x1x32xf32> to vector<1x32xf32>
    %cst_50 = arith.constant dense<0.000000e+00> : vector<16xf32>
    %172 = vector.multi_reduction <add>, %167, %cst_50 [1] : vector<16x32xf32> to vector<16xf32>
    %173 = vector.shape_cast %172 : vector<16xf32> to vector<16x1xf32>
    %cst_51 = arith.constant 3.200000e+01 : f32
    %174 = vector.broadcast %cst_51 : f32 to vector<16x1xf32>
    %175 = arith.divf %173, %174 : vector<16x1xf32>
    %176 = vector.broadcast %175 : vector<16x1xf32> to vector<16x32xf32>
    %177 = arith.subf %167, %176 : vector<16x32xf32>
    %178 = arith.mulf %177, %177 : vector<16x32xf32>
    %cst_52 = arith.constant dense<0.000000e+00> : vector<16xf32>
    %179 = vector.multi_reduction <add>, %178, %cst_52 [1] : vector<16x32xf32> to vector<16xf32>
    %180 = vector.shape_cast %179 : vector<16xf32> to vector<16x1xf32>
    %cst_53 = arith.constant 3.200000e+01 : f32
    %181 = vector.broadcast %cst_53 : f32 to vector<16x1xf32>
    %182 = arith.divf %180, %181 : vector<16x1xf32>
    %183 = vector.broadcast %175 : vector<16x1xf32> to vector<16x32xf32>
    %184 = arith.subf %167, %183 : vector<16x32xf32>
    %cst_54 = arith.constant 9.99999974E-6 : f32
    %185 = vector.broadcast %cst_54 : f32 to vector<16x1xf32>
    %186 = arith.addf %182, %185 : vector<16x1xf32>
    %187 = math.rsqrt %186 : vector<16x1xf32>
    %188 = vector.broadcast %187 : vector<16x1xf32> to vector<16x32xf32>
    %189 = arith.mulf %184, %188 : vector<16x32xf32>
    %190 = vector.broadcast %169 : vector<1x32xf32> to vector<16x32xf32>
    %191 = arith.mulf %189, %190 : vector<16x32xf32>
    %192 = vector.broadcast %171 : vector<1x32xf32> to vector<16x32xf32>
    %193 = arith.addf %191, %192 : vector<16x32xf32>
    %194 = arith.truncf %193 : vector<16x32xf32> to vector<16x32xbf16>
    %c0_55 = arith.constant 0 : index
    %c0_56 = arith.constant 0 : index
    %c0_57 = arith.constant 0 : index
    %195 = vector.load %arg15[%c0_55, %c0_56, %c0_57] : memref<2x32x128xbf16, #tpu.memory_space<vmem>>, vector<1x32x128xbf16>
    %196 = vector.shape_cast %195 : vector<1x32x128xbf16> to vector<32x128xbf16>
    %cst_58 = arith.constant dense<0.000000e+00> : vector<16x128xf32>
    %197 = tpu.matmul %194, %196, %cst_58 {dimension_numbers = #tpu.dot_dimension_numbers<[1], [0], [0], [1], [0, 0, 1, 1], [], []>} : vector<16x32xbf16>, vector<32x128xbf16>, vector<16x128xf32> -> vector<16x128xf32>
    %c0_59 = arith.constant 0 : index
    %c0_60 = arith.constant 0 : index
    %c0_61 = arith.constant 0 : index
    %198 = vector.load %arg16[%c0_59, %c0_60, %c0_61] : memref<2x1x128xf32, #tpu.memory_space<vmem>>, vector<1x1x128xf32>
    %199 = vector.shape_cast %198 : vector<1x1x128xf32> to vector<1x128xf32>
    %200 = vector.broadcast %199 : vector<1x128xf32> to vector<16x128xf32>
    %201 = arith.addf %197, %200 : vector<16x128xf32>
    %cst_62 = arith.constant 5.000000e-01 : f32
    %202 = vector.broadcast %cst_62 : f32 to vector<16x128xf32>
    %203 = arith.mulf %202, %201 : vector<16x128xf32>
    %cst_63 = arith.constant 4.471500e-02 : f32
    %204 = vector.broadcast %cst_63 : f32 to vector<16x128xf32>
    %205 = arith.mulf %204, %201 : vector<16x128xf32>
    %206 = arith.mulf %205, %201 : vector<16x128xf32>
    %207 = arith.mulf %206, %201 : vector<16x128xf32>
    %208 = arith.addf %201, %207 : vector<16x128xf32>
    %cst_64 = arith.constant 0.797884583 : f32
    %209 = vector.broadcast %cst_64 : f32 to vector<16x128xf32>
    %210 = arith.mulf %209, %208 : vector<16x128xf32>
    %211 = math.tanh %210 : vector<16x128xf32>
    %cst_65 = arith.constant 1.000000e+00 : f32
    %212 = vector.broadcast %cst_65 : f32 to vector<16x128xf32>
    %213 = arith.addf %212, %211 : vector<16x128xf32>
    %214 = arith.mulf %203, %213 : vector<16x128xf32>
    %215 = arith.truncf %214 : vector<16x128xf32> to vector<16x128xbf16>
    %c0_66 = arith.constant 0 : index
    %c0_67 = arith.constant 0 : index
    %c0_68 = arith.constant 0 : index
    %216 = vector.load %arg17[%c0_66, %c0_67, %c0_68] : memref<2x128x32xbf16, #tpu.memory_space<vmem>>, vector<1x128x32xbf16>
    %217 = vector.shape_cast %216 : vector<1x128x32xbf16> to vector<128x32xbf16>
    %cst_69 = arith.constant dense<0.000000e+00> : vector<16x32xf32>
    %218 = tpu.matmul %215, %217, %cst_69 {dimension_numbers = #tpu.dot_dimension_numbers<[1], [0], [0], [1], [0, 0, 1, 1], [], []>} : vector<16x128xbf16>, vector<128x32xbf16>, vector<16x32xf32> -> vector<16x32xf32>
    %c0_70 = arith.constant 0 : index
    %c0_71 = arith.constant 0 : index
    %c0_72 = arith.constant 0 : index
    %219 = vector.load %arg18[%c0_70, %c0_71, %c0_72] : memref<2x1x32xf32, #tpu.memory_space<vmem>>, vector<1x1x32xf32>
    %220 = vector.shape_cast %219 : vector<1x1x32xf32> to vector<1x32xf32>
    %221 = vector.broadcast %220 : vector<1x32xf32> to vector<16x32xf32>
    %222 = arith.addf %218, %221 : vector<16x32xf32>
    %223 = arith.addf %167, %222 : vector<16x32xf32>
    %c1 = arith.constant 1 : index
    %c0_73 = arith.constant 0 : index
    %c0_74 = arith.constant 0 : index
    %224 = vector.load %arg7[%c1, %c0_73, %c0_74] : memref<2x1x32xf32, #tpu.memory_space<vmem>>, vector<1x1x32xf32>
    %225 = vector.shape_cast %224 : vector<1x1x32xf32> to vector<1x32xf32>
    %c1_75 = arith.constant 1 : index
    %c0_76 = arith.constant 0 : index
    %c0_77 = arith.constant 0 : index
    %226 = vector.load %arg8[%c1_75, %c0_76, %c0_77] : memref<2x1x32xf32, #tpu.memory_space<vmem>>, vector<1x1x32xf32>
    %227 = vector.shape_cast %226 : vector<1x1x32xf32> to vector<1x32xf32>
    %cst_78 = arith.constant dense<0.000000e+00> : vector<16xf32>
    %228 = vector.multi_reduction <add>, %223, %cst_78 [1] : vector<16x32xf32> to vector<16xf32>
    %229 = vector.shape_cast %228 : vector<16xf32> to vector<16x1xf32>
    %cst_79 = arith.constant 3.200000e+01 : f32
    %230 = vector.broadcast %cst_79 : f32 to vector<16x1xf32>
    %231 = arith.divf %229, %230 : vector<16x1xf32>
    %232 = vector.broadcast %231 : vector<16x1xf32> to vector<16x32xf32>
    %233 = arith.subf %223, %232 : vector<16x32xf32>
    %234 = arith.mulf %233, %233 : vector<16x32xf32>
    %cst_80 = arith.constant dense<0.000000e+00> : vector<16xf32>
    %235 = vector.multi_reduction <add>, %234, %cst_80 [1] : vector<16x32xf32> to vector<16xf32>
    %236 = vector.shape_cast %235 : vector<16xf32> to vector<16x1xf32>
    %cst_81 = arith.constant 3.200000e+01 : f32
    %237 = vector.broadcast %cst_81 : f32 to vector<16x1xf32>
    %238 = arith.divf %236, %237 : vector<16x1xf32>
    %239 = vector.broadcast %231 : vector<16x1xf32> to vector<16x32xf32>
    %240 = arith.subf %223, %239 : vector<16x32xf32>
    %cst_82 = arith.constant 9.99999974E-6 : f32
    %241 = vector.broadcast %cst_82 : f32 to vector<16x1xf32>
    %242 = arith.addf %238, %241 : vector<16x1xf32>
    %243 = math.rsqrt %242 : vector<16x1xf32>
    %244 = vector.broadcast %243 : vector<16x1xf32> to vector<16x32xf32>
    %245 = arith.mulf %240, %244 : vector<16x32xf32>
    %246 = vector.broadcast %225 : vector<1x32xf32> to vector<16x32xf32>
    %247 = arith.mulf %245, %246 : vector<16x32xf32>
    %248 = vector.broadcast %227 : vector<1x32xf32> to vector<16x32xf32>
    %249 = arith.addf %247, %248 : vector<16x32xf32>
    %250 = arith.truncf %249 : vector<16x32xf32> to vector<16x32xbf16>
    %c1_83 = arith.constant 1 : index
    %c0_84 = arith.constant 0 : index
    %c0_85 = arith.constant 0 : index
    %251 = vector.load %arg9[%c1_83, %c0_84, %c0_85] : memref<2x32x96xbf16, #tpu.memory_space<vmem>>, vector<1x32x96xbf16>
    %252 = vector.shape_cast %251 : vector<1x32x96xbf16> to vector<32x96xbf16>
    %cst_86 = arith.constant dense<0.000000e+00> : vector<16x96xf32>
    %253 = tpu.matmul %250, %252, %cst_86 {dimension_numbers = #tpu.dot_dimension_numbers<[1], [0], [0], [1], [0, 0, 1, 1], [], []>} : vector<16x32xbf16>, vector<32x96xbf16>, vector<16x96xf32> -> vector<16x96xf32>
    %c1_87 = arith.constant 1 : index
    %c0_88 = arith.constant 0 : index
    %c0_89 = arith.constant 0 : index
    %254 = vector.load %arg10[%c1_87, %c0_88, %c0_89] : memref<2x1x96xf32, #tpu.memory_space<vmem>>, vector<1x1x96xf32>
    %255 = vector.shape_cast %254 : vector<1x1x96xf32> to vector<1x96xf32>
    %256 = vector.broadcast %255 : vector<1x96xf32> to vector<16x96xf32>
    %257 = arith.addf %253, %256 : vector<16x96xf32>
    %258 = vector.extract_strided_slice %257 {offsets = [0, 0], sizes = [16, 8], strides = [1, 1]} : vector<16x96xf32> to vector<16x8xf32>
    %259 = vector.shape_cast %258 : vector<16x8xf32> to vector<2x8x8xf32>
    %260 = vector.extract_strided_slice %257 {offsets = [0, 8], sizes = [16, 8], strides = [1, 1]} : vector<16x96xf32> to vector<16x8xf32>
    %261 = vector.shape_cast %260 : vector<16x8xf32> to vector<2x8x8xf32>
    %262 = vector.extract_strided_slice %257 {offsets = [0, 16], sizes = [16, 8], strides = [1, 1]} : vector<16x96xf32> to vector<16x8xf32>
    %263 = vector.shape_cast %262 : vector<16x8xf32> to vector<2x8x8xf32>
    %264 = vector.extract_strided_slice %257 {offsets = [0, 24], sizes = [16, 8], strides = [1, 1]} : vector<16x96xf32> to vector<16x8xf32>
    %265 = vector.shape_cast %264 : vector<16x8xf32> to vector<2x8x8xf32>
    %266 = vector.shape_cast %259 : vector<2x8x8xf32> to vector<1x2x8x8xf32>
    %267 = vector.shape_cast %261 : vector<2x8x8xf32> to vector<1x2x8x8xf32>
    %268 = vector.shape_cast %263 : vector<2x8x8xf32> to vector<1x2x8x8xf32>
    %269 = vector.shape_cast %265 : vector<2x8x8xf32> to vector<1x2x8x8xf32>
    %270 = tpu.concatenate %266, %267, %268, %269 in 0 : vector<1x2x8x8xf32>, vector<1x2x8x8xf32>, vector<1x2x8x8xf32>, vector<1x2x8x8xf32> -> vector<4x2x8x8xf32>
    %271 = vector.shape_cast %270 : vector<4x2x8x8xf32> to vector<8x8x8xf32>
    %272 = arith.truncf %271 : vector<8x8x8xf32> to vector<8x8x8xbf16>
    %273 = vector.extract_strided_slice %257 {offsets = [0, 32], sizes = [16, 8], strides = [1, 1]} : vector<16x96xf32> to vector<16x8xf32>
    %274 = vector.shape_cast %273 : vector<16x8xf32> to vector<2x8x8xf32>
    %275 = vector.extract_strided_slice %257 {offsets = [0, 40], sizes = [16, 8], strides = [1, 1]} : vector<16x96xf32> to vector<16x8xf32>
    %276 = vector.shape_cast %275 : vector<16x8xf32> to vector<2x8x8xf32>
    %277 = vector.extract_strided_slice %257 {offsets = [0, 48], sizes = [16, 8], strides = [1, 1]} : vector<16x96xf32> to vector<16x8xf32>
    %278 = vector.shape_cast %277 : vector<16x8xf32> to vector<2x8x8xf32>
    %279 = vector.extract_strided_slice %257 {offsets = [0, 56], sizes = [16, 8], strides = [1, 1]} : vector<16x96xf32> to vector<16x8xf32>
    %280 = vector.shape_cast %279 : vector<16x8xf32> to vector<2x8x8xf32>
    %281 = vector.shape_cast %274 : vector<2x8x8xf32> to vector<1x2x8x8xf32>
    %282 = vector.shape_cast %276 : vector<2x8x8xf32> to vector<1x2x8x8xf32>
    %283 = vector.shape_cast %278 : vector<2x8x8xf32> to vector<1x2x8x8xf32>
    %284 = vector.shape_cast %280 : vector<2x8x8xf32> to vector<1x2x8x8xf32>
    %285 = tpu.concatenate %281, %282, %283, %284 in 0 : vector<1x2x8x8xf32>, vector<1x2x8x8xf32>, vector<1x2x8x8xf32>, vector<1x2x8x8xf32> -> vector<4x2x8x8xf32>
    %286 = vector.shape_cast %285 : vector<4x2x8x8xf32> to vector<8x8x8xf32>
    %287 = arith.truncf %286 : vector<8x8x8xf32> to vector<8x8x8xbf16>
    %288 = vector.extract_strided_slice %257 {offsets = [0, 64], sizes = [16, 8], strides = [1, 1]} : vector<16x96xf32> to vector<16x8xf32>
    %289 = vector.shape_cast %288 : vector<16x8xf32> to vector<2x8x8xf32>
    %290 = vector.extract_strided_slice %257 {offsets = [0, 72], sizes = [16, 8], strides = [1, 1]} : vector<16x96xf32> to vector<16x8xf32>
    %291 = vector.shape_cast %290 : vector<16x8xf32> to vector<2x8x8xf32>
    %292 = vector.extract_strided_slice %257 {offsets = [0, 80], sizes = [16, 8], strides = [1, 1]} : vector<16x96xf32> to vector<16x8xf32>
    %293 = vector.shape_cast %292 : vector<16x8xf32> to vector<2x8x8xf32>
    %294 = vector.extract_strided_slice %257 {offsets = [0, 88], sizes = [16, 8], strides = [1, 1]} : vector<16x96xf32> to vector<16x8xf32>
    %295 = vector.shape_cast %294 : vector<16x8xf32> to vector<2x8x8xf32>
    %296 = vector.shape_cast %289 : vector<2x8x8xf32> to vector<1x2x8x8xf32>
    %297 = vector.shape_cast %291 : vector<2x8x8xf32> to vector<1x2x8x8xf32>
    %298 = vector.shape_cast %293 : vector<2x8x8xf32> to vector<1x2x8x8xf32>
    %299 = vector.shape_cast %295 : vector<2x8x8xf32> to vector<1x2x8x8xf32>
    %300 = tpu.concatenate %296, %297, %298, %299 in 0 : vector<1x2x8x8xf32>, vector<1x2x8x8xf32>, vector<1x2x8x8xf32>, vector<1x2x8x8xf32> -> vector<4x2x8x8xf32>
    %301 = vector.shape_cast %300 : vector<4x2x8x8xf32> to vector<8x8x8xf32>
    %302 = arith.truncf %301 : vector<8x8x8xf32> to vector<8x8x8xbf16>
    "tpu.trace_start"() <{level = 10 : i32, message = "bqd,bkd->bqk"}> : () -> ()
    %cst_90 = arith.constant dense<0.000000e+00> : vector<8x8x8xf32>
    %303 = tpu.matmul %272, %287, %cst_90 {dimension_numbers = #tpu.dot_dimension_numbers<[2], [2], [1], [1], [0, 0, 0, 1, 1, 1], [0], [0]>} : vector<8x8x8xbf16>, vector<8x8x8xbf16>, vector<8x8x8xf32> -> vector<8x8x8xf32>
    "tpu.trace_stop"() : () -> ()
    %cst_91 = arith.constant 0.353553385 : f32
    %304 = vector.broadcast %cst_91 : f32 to vector<8x8x8xf32>
    %305 = arith.mulf %303, %304 : vector<8x8x8xf32>
    %306 = vector.shape_cast %305 : vector<8x8x8xf32> to vector<4x2x8x8xf32>
    %307 = vector.shape_cast %29 : vector<2x8x8xf32> to vector<1x2x8x8xf32>
    %308 = vector.broadcast %307 : vector<1x2x8x8xf32> to vector<4x2x8x8xf32>
    %309 = arith.addf %306, %308 : vector<4x2x8x8xf32>
    %cst_92 = arith.constant dense<0xFF800000> : vector<4x2x8xf32>
    %310 = vector.multi_reduction <maximumf>, %309, %cst_92 [3] : vector<4x2x8x8xf32> to vector<4x2x8xf32>
    %311 = vector.shape_cast %310 : vector<4x2x8xf32> to vector<4x2x8x1xf32>
    %312 = vector.broadcast %311 : vector<4x2x8x1xf32> to vector<4x2x8x8xf32>
    %313 = arith.subf %309, %312 : vector<4x2x8x8xf32>
    %314 = math.exp %313 : vector<4x2x8x8xf32>
    %cst_93 = arith.constant dense<0.000000e+00> : vector<4x2x8xf32>
    %315 = vector.multi_reduction <add>, %314, %cst_93 [3] : vector<4x2x8x8xf32> to vector<4x2x8xf32>
    %316 = vector.shape_cast %315 : vector<4x2x8xf32> to vector<4x2x8x1xf32>
    %317 = tpu.reciprocal %316 {approx = true} : vector<4x2x8x1xf32> -> vector<4x2x8x1xf32>
    %318 = vector.broadcast %317 : vector<4x2x8x1xf32> to vector<4x2x8x8xf32>
    %319 = arith.mulf %314, %318 : vector<4x2x8x8xf32>
    %320 = vector.shape_cast %319 : vector<4x2x8x8xf32> to vector<8x8x8xf32>
    %321 = arith.truncf %320 : vector<8x8x8xf32> to vector<8x8x8xbf16>
    "tpu.trace_start"() <{level = 10 : i32, message = "bqk,bkd->bqd"}> : () -> ()
    %cst_94 = arith.constant dense<0.000000e+00> : vector<8x8x8xf32>
    %322 = tpu.matmul %321, %302, %cst_94 {dimension_numbers = #tpu.dot_dimension_numbers<[2], [1], [1], [2], [0, 0, 0, 1, 1, 2], [0], [0]>} : vector<8x8x8xbf16>, vector<8x8x8xbf16>, vector<8x8x8xf32> -> vector<8x8x8xf32>
    "tpu.trace_stop"() : () -> ()
    %323 = vector.shape_cast %322 : vector<8x8x8xf32> to vector<4x2x8x8xf32>
    %c1_95 = arith.constant 1 : index
    %c0_96 = arith.constant 0 : index
    %c0_97 = arith.constant 0 : index
    %c0_98 = arith.constant 0 : index
    %324 = vector.load %arg11[%c1_95, %c0_96, %c0_97, %c0_98] : memref<2x4x8x32xbf16, #tpu.memory_space<vmem>>, vector<1x4x8x32xbf16>
    %325 = vector.shape_cast %324 : vector<1x4x8x32xbf16> to vector<4x8x32xbf16>
    %c1_99 = arith.constant 1 : index
    %c0_100 = arith.constant 0 : index
    %c0_101 = arith.constant 0 : index
    %326 = vector.load %arg12[%c1_99, %c0_100, %c0_101] : memref<2x1x32xf32, #tpu.memory_space<vmem>>, vector<1x1x32xf32>
    %327 = vector.shape_cast %326 : vector<1x1x32xf32> to vector<1x32xf32>
    %328 = vector.extract_strided_slice %323 {offsets = [0, 0, 0, 0], sizes = [1, 2, 8, 8], strides = [1, 1, 1, 1]} : vector<4x2x8x8xf32> to vector<1x2x8x8xf32>
    %329 = vector.shape_cast %328 : vector<1x2x8x8xf32> to vector<2x8x8xf32>
    %330 = vector.shape_cast %329 : vector<2x8x8xf32> to vector<16x8xf32>
    %331 = arith.truncf %330 : vector<16x8xf32> to vector<16x8xbf16>
    %332 = vector.extract_strided_slice %325 {offsets = [0, 0, 0], sizes = [1, 8, 32], strides = [1, 1, 1]} : vector<4x8x32xbf16> to vector<1x8x32xbf16>
    %333 = vector.shape_cast %332 : vector<1x8x32xbf16> to vector<8x32xbf16>
    %cst_102 = arith.constant dense<0.000000e+00> : vector<16x32xf32>
    %334 = tpu.matmul %331, %333, %cst_102 {dimension_numbers = #tpu.dot_dimension_numbers<[1], [0], [0], [1], [0, 0, 1, 1], [], []>} : vector<16x8xbf16>, vector<8x32xbf16>, vector<16x32xf32> -> vector<16x32xf32>
    %335 = vector.broadcast %327 : vector<1x32xf32> to vector<16x32xf32>
    %336 = arith.addf %335, %334 : vector<16x32xf32>
    %337 = vector.extract_strided_slice %323 {offsets = [1, 0, 0, 0], sizes = [1, 2, 8, 8], strides = [1, 1, 1, 1]} : vector<4x2x8x8xf32> to vector<1x2x8x8xf32>
    %338 = vector.shape_cast %337 : vector<1x2x8x8xf32> to vector<2x8x8xf32>
    %339 = vector.shape_cast %338 : vector<2x8x8xf32> to vector<16x8xf32>
    %340 = arith.truncf %339 : vector<16x8xf32> to vector<16x8xbf16>
    %341 = vector.extract_strided_slice %325 {offsets = [1, 0, 0], sizes = [1, 8, 32], strides = [1, 1, 1]} : vector<4x8x32xbf16> to vector<1x8x32xbf16>
    %342 = vector.shape_cast %341 : vector<1x8x32xbf16> to vector<8x32xbf16>
    %cst_103 = arith.constant dense<0.000000e+00> : vector<16x32xf32>
    %343 = tpu.matmul %340, %342, %cst_103 {dimension_numbers = #tpu.dot_dimension_numbers<[1], [0], [0], [1], [0, 0, 1, 1], [], []>} : vector<16x8xbf16>, vector<8x32xbf16>, vector<16x32xf32> -> vector<16x32xf32>
    %344 = arith.addf %336, %343 : vector<16x32xf32>
    %345 = vector.extract_strided_slice %323 {offsets = [2, 0, 0, 0], sizes = [1, 2, 8, 8], strides = [1, 1, 1, 1]} : vector<4x2x8x8xf32> to vector<1x2x8x8xf32>
    %346 = vector.shape_cast %345 : vector<1x2x8x8xf32> to vector<2x8x8xf32>
    %347 = vector.shape_cast %346 : vector<2x8x8xf32> to vector<16x8xf32>
    %348 = arith.truncf %347 : vector<16x8xf32> to vector<16x8xbf16>
    %349 = vector.extract_strided_slice %325 {offsets = [2, 0, 0], sizes = [1, 8, 32], strides = [1, 1, 1]} : vector<4x8x32xbf16> to vector<1x8x32xbf16>
    %350 = vector.shape_cast %349 : vector<1x8x32xbf16> to vector<8x32xbf16>
    %cst_104 = arith.constant dense<0.000000e+00> : vector<16x32xf32>
    %351 = tpu.matmul %348, %350, %cst_104 {dimension_numbers = #tpu.dot_dimension_numbers<[1], [0], [0], [1], [0, 0, 1, 1], [], []>} : vector<16x8xbf16>, vector<8x32xbf16>, vector<16x32xf32> -> vector<16x32xf32>
    %352 = arith.addf %344, %351 : vector<16x32xf32>
    %353 = vector.extract_strided_slice %323 {offsets = [3, 0, 0, 0], sizes = [1, 2, 8, 8], strides = [1, 1, 1, 1]} : vector<4x2x8x8xf32> to vector<1x2x8x8xf32>
    %354 = vector.shape_cast %353 : vector<1x2x8x8xf32> to vector<2x8x8xf32>
    %355 = vector.shape_cast %354 : vector<2x8x8xf32> to vector<16x8xf32>
    %356 = arith.truncf %355 : vector<16x8xf32> to vector<16x8xbf16>
    %357 = vector.extract_strided_slice %325 {offsets = [3, 0, 0], sizes = [1, 8, 32], strides = [1, 1, 1]} : vector<4x8x32xbf16> to vector<1x8x32xbf16>
    %358 = vector.shape_cast %357 : vector<1x8x32xbf16> to vector<8x32xbf16>
    %cst_105 = arith.constant dense<0.000000e+00> : vector<16x32xf32>
    %359 = tpu.matmul %356, %358, %cst_105 {dimension_numbers = #tpu.dot_dimension_numbers<[1], [0], [0], [1], [0, 0, 1, 1], [], []>} : vector<16x8xbf16>, vector<8x32xbf16>, vector<16x32xf32> -> vector<16x32xf32>
    %360 = arith.addf %352, %359 : vector<16x32xf32>
    %361 = arith.addf %223, %360 : vector<16x32xf32>
    %c1_106 = arith.constant 1 : index
    %c0_107 = arith.constant 0 : index
    %c0_108 = arith.constant 0 : index
    %362 = vector.load %arg13[%c1_106, %c0_107, %c0_108] : memref<2x1x32xf32, #tpu.memory_space<vmem>>, vector<1x1x32xf32>
    %363 = vector.shape_cast %362 : vector<1x1x32xf32> to vector<1x32xf32>
    %c1_109 = arith.constant 1 : index
    %c0_110 = arith.constant 0 : index
    %c0_111 = arith.constant 0 : index
    %364 = vector.load %arg14[%c1_109, %c0_110, %c0_111] : memref<2x1x32xf32, #tpu.memory_space<vmem>>, vector<1x1x32xf32>
    %365 = vector.shape_cast %364 : vector<1x1x32xf32> to vector<1x32xf32>
    %cst_112 = arith.constant dense<0.000000e+00> : vector<16xf32>
    %366 = vector.multi_reduction <add>, %361, %cst_112 [1] : vector<16x32xf32> to vector<16xf32>
    %367 = vector.shape_cast %366 : vector<16xf32> to vector<16x1xf32>
    %cst_113 = arith.constant 3.200000e+01 : f32
    %368 = vector.broadcast %cst_113 : f32 to vector<16x1xf32>
    %369 = arith.divf %367, %368 : vector<16x1xf32>
    %370 = vector.broadcast %369 : vector<16x1xf32> to vector<16x32xf32>
    %371 = arith.subf %361, %370 : vector<16x32xf32>
    %372 = arith.mulf %371, %371 : vector<16x32xf32>
    %cst_114 = arith.constant dense<0.000000e+00> : vector<16xf32>
    %373 = vector.multi_reduction <add>, %372, %cst_114 [1] : vector<16x32xf32> to vector<16xf32>
    %374 = vector.shape_cast %373 : vector<16xf32> to vector<16x1xf32>
    %cst_115 = arith.constant 3.200000e+01 : f32
    %375 = vector.broadcast %cst_115 : f32 to vector<16x1xf32>
    %376 = arith.divf %374, %375 : vector<16x1xf32>
    %377 = vector.broadcast %369 : vector<16x1xf32> to vector<16x32xf32>
    %378 = arith.subf %361, %377 : vector<16x32xf32>
    %cst_116 = arith.constant 9.99999974E-6 : f32
    %379 = vector.broadcast %cst_116 : f32 to vector<16x1xf32>
    %380 = arith.addf %376, %379 : vector<16x1xf32>
    %381 = math.rsqrt %380 : vector<16x1xf32>
    %382 = vector.broadcast %381 : vector<16x1xf32> to vector<16x32xf32>
    %383 = arith.mulf %378, %382 : vector<16x32xf32>
    %384 = vector.broadcast %363 : vector<1x32xf32> to vector<16x32xf32>
    %385 = arith.mulf %383, %384 : vector<16x32xf32>
    %386 = vector.broadcast %365 : vector<1x32xf32> to vector<16x32xf32>
    %387 = arith.addf %385, %386 : vector<16x32xf32>
    %388 = arith.truncf %387 : vector<16x32xf32> to vector<16x32xbf16>
    %c1_117 = arith.constant 1 : index
    %c0_118 = arith.constant 0 : index
    %c0_119 = arith.constant 0 : index
    %389 = vector.load %arg15[%c1_117, %c0_118, %c0_119] : memref<2x32x128xbf16, #tpu.memory_space<vmem>>, vector<1x32x128xbf16>
    %390 = vector.shape_cast %389 : vector<1x32x128xbf16> to vector<32x128xbf16>
    %cst_120 = arith.constant dense<0.000000e+00> : vector<16x128xf32>
    %391 = tpu.matmul %388, %390, %cst_120 {dimension_numbers = #tpu.dot_dimension_numbers<[1], [0], [0], [1], [0, 0, 1, 1], [], []>} : vector<16x32xbf16>, vector<32x128xbf16>, vector<16x128xf32> -> vector<16x128xf32>
    %c1_121 = arith.constant 1 : index
    %c0_122 = arith.constant 0 : index
    %c0_123 = arith.constant 0 : index
    %392 = vector.load %arg16[%c1_121, %c0_122, %c0_123] : memref<2x1x128xf32, #tpu.memory_space<vmem>>, vector<1x1x128xf32>
    %393 = vector.shape_cast %392 : vector<1x1x128xf32> to vector<1x128xf32>
    %394 = vector.broadcast %393 : vector<1x128xf32> to vector<16x128xf32>
    %395 = arith.addf %391, %394 : vector<16x128xf32>
    %cst_124 = arith.constant 5.000000e-01 : f32
    %396 = vector.broadcast %cst_124 : f32 to vector<16x128xf32>
    %397 = arith.mulf %396, %395 : vector<16x128xf32>
    %cst_125 = arith.constant 4.471500e-02 : f32
    %398 = vector.broadcast %cst_125 : f32 to vector<16x128xf32>
    %399 = arith.mulf %398, %395 : vector<16x128xf32>
    %400 = arith.mulf %399, %395 : vector<16x128xf32>
    %401 = arith.mulf %400, %395 : vector<16x128xf32>
    %402 = arith.addf %395, %401 : vector<16x128xf32>
    %cst_126 = arith.constant 0.797884583 : f32
    %403 = vector.broadcast %cst_126 : f32 to vector<16x128xf32>
    %404 = arith.mulf %403, %402 : vector<16x128xf32>
    %405 = math.tanh %404 : vector<16x128xf32>
    %cst_127 = arith.constant 1.000000e+00 : f32
    %406 = vector.broadcast %cst_127 : f32 to vector<16x128xf32>
    %407 = arith.addf %406, %405 : vector<16x128xf32>
    %408 = arith.mulf %397, %407 : vector<16x128xf32>
    %409 = arith.truncf %408 : vector<16x128xf32> to vector<16x128xbf16>
    %c1_128 = arith.constant 1 : index
    %c0_129 = arith.constant 0 : index
    %c0_130 = arith.constant 0 : index
    %410 = vector.load %arg17[%c1_128, %c0_129, %c0_130] : memref<2x128x32xbf16, #tpu.memory_space<vmem>>, vector<1x128x32xbf16>
    %411 = vector.shape_cast %410 : vector<1x128x32xbf16> to vector<128x32xbf16>
    %cst_131 = arith.constant dense<0.000000e+00> : vector<16x32xf32>
    %412 = tpu.matmul %409, %411, %cst_131 {dimension_numbers = #tpu.dot_dimension_numbers<[1], [0], [0], [1], [0, 0, 1, 1], [], []>} : vector<16x128xbf16>, vector<128x32xbf16>, vector<16x32xf32> -> vector<16x32xf32>
    %c1_132 = arith.constant 1 : index
    %c0_133 = arith.constant 0 : index
    %c0_134 = arith.constant 0 : index
    %413 = vector.load %arg18[%c1_132, %c0_133, %c0_134] : memref<2x1x32xf32, #tpu.memory_space<vmem>>, vector<1x1x32xf32>
    %414 = vector.shape_cast %413 : vector<1x1x32xf32> to vector<1x32xf32>
    %415 = vector.broadcast %414 : vector<1x32xf32> to vector<16x32xf32>
    %416 = arith.addf %412, %415 : vector<16x32xf32>
    %417 = arith.addf %361, %416 : vector<16x32xf32>
    %c0_135 = arith.constant 0 : index
    %c0_136 = arith.constant 0 : index
    %418 = vector.load %arg19[%c0_135, %c0_136] : memref<1x32xf32, #tpu.memory_space<vmem>>, vector<1x32xf32>
    %c0_137 = arith.constant 0 : index
    %c0_138 = arith.constant 0 : index
    %419 = vector.load %arg20[%c0_137, %c0_138] : memref<1x32xf32, #tpu.memory_space<vmem>>, vector<1x32xf32>
    %cst_139 = arith.constant dense<0.000000e+00> : vector<16xf32>
    %420 = vector.multi_reduction <add>, %417, %cst_139 [1] : vector<16x32xf32> to vector<16xf32>
    %421 = vector.shape_cast %420 : vector<16xf32> to vector<16x1xf32>
    %cst_140 = arith.constant 3.200000e+01 : f32
    %422 = vector.broadcast %cst_140 : f32 to vector<16x1xf32>
    %423 = arith.divf %421, %422 : vector<16x1xf32>
    %424 = vector.broadcast %423 : vector<16x1xf32> to vector<16x32xf32>
    %425 = arith.subf %417, %424 : vector<16x32xf32>
    %426 = arith.mulf %425, %425 : vector<16x32xf32>
    %cst_141 = arith.constant dense<0.000000e+00> : vector<16xf32>
    %427 = vector.multi_reduction <add>, %426, %cst_141 [1] : vector<16x32xf32> to vector<16xf32>
    %428 = vector.shape_cast %427 : vector<16xf32> to vector<16x1xf32>
    %cst_142 = arith.constant 3.200000e+01 : f32
    %429 = vector.broadcast %cst_142 : f32 to vector<16x1xf32>
    %430 = arith.divf %428, %429 : vector<16x1xf32>
    %431 = vector.broadcast %423 : vector<16x1xf32> to vector<16x32xf32>
    %432 = arith.subf %417, %431 : vector<16x32xf32>
    %cst_143 = arith.constant 9.99999974E-6 : f32
    %433 = vector.broadcast %cst_143 : f32 to vector<16x1xf32>
    %434 = arith.addf %430, %433 : vector<16x1xf32>
    %435 = math.rsqrt %434 : vector<16x1xf32>
    %436 = vector.broadcast %435 : vector<16x1xf32> to vector<16x32xf32>
    %437 = arith.mulf %432, %436 : vector<16x32xf32>
    %438 = vector.broadcast %418 : vector<1x32xf32> to vector<16x32xf32>
    %439 = arith.mulf %437, %438 : vector<16x32xf32>
    %440 = vector.broadcast %419 : vector<1x32xf32> to vector<16x32xf32>
    %441 = arith.addf %439, %440 : vector<16x32xf32>
    %442 = arith.truncf %441 : vector<16x32xf32> to vector<16x32xbf16>
    %c0_144 = arith.constant 0 : index
    %c0_145 = arith.constant 0 : index
    %443 = vector.load %arg5[%c0_144, %c0_145] : memref<32x128xbf16, #tpu.memory_space<vmem>>, vector<32x128xbf16>
    %cst_146 = arith.constant dense<0.000000e+00> : vector<16x128xf32>
    %444 = tpu.matmul %442, %443, %cst_146 {dimension_numbers = #tpu.dot_dimension_numbers<[1], [0], [0], [1], [0, 0, 1, 1], [], []>} : vector<16x32xbf16>, vector<32x128xbf16>, vector<16x128xf32> -> vector<16x128xf32>
    %c0_147 = arith.constant 0 : index
    %c0_148 = arith.constant 0 : index
    %445 = vector.load %arg21[%c0_147, %c0_148] : memref<16x128xf32, #tpu.memory_space<vmem>>, vector<16x128xf32>
    tpu.vector_store %arg21[%c0_147, %c0_148], %444 {strides = array<i32>} : memref<16x128xf32, #tpu.memory_space<vmem>>, vector<16x128xf32>,
    %c0_149 = arith.constant 0 : index
    %c0_150 = arith.constant 0 : index
    %446 = vector.load %arg3[%c0_149, %c0_150] : memref<16x1xi32, #tpu.memory_space<vmem>>, vector<16x1xi32>
    %c-100_i32 = arith.constant -100 : i32
    %447 = vector.broadcast %c-100_i32 : i32 to vector<16x1xi32>
    %448 = arith.cmpi ne, %446, %447 : vector<16x1xi32>
    %449 = arith.extui %448 : vector<16x1xi1> to vector<16x1xi32>
    %450 = arith.sitofp %449 : vector<16x1xi32> to vector<16x1xf32>
    %c-100_i32_151 = arith.constant -100 : i32
    %451 = vector.broadcast %c-100_i32_151 : i32 to vector<16x1xi32>
    %452 = arith.cmpi eq, %446, %451 : vector<16x1xi32>
    %c0_i32 = arith.constant 0 : i32
    %453 = vector.broadcast %c0_i32 : i32 to vector<16x1xi32>
    %454 = arith.select %452, %453, %446 : vector<16x1xi1>, vector<16x1xi32>
    %cst_152 = arith.constant dense<0xFF800000> : vector<16xf32>
    %455 = vector.multi_reduction <maximumf>, %444, %cst_152 [1] : vector<16x128xf32> to vector<16xf32>
    %456 = vector.shape_cast %455 : vector<16xf32> to vector<16x1xf32>
    %457 = vector.broadcast %456 : vector<16x1xf32> to vector<16x128xf32>
    %458 = arith.subf %444, %457 : vector<16x128xf32>
    %459 = math.exp %458 : vector<16x128xf32>
    %cst_153 = arith.constant dense<0.000000e+00> : vector<16xf32>
    %460 = vector.multi_reduction <add>, %459, %cst_153 [1] : vector<16x128xf32> to vector<16xf32>
    %461 = vector.shape_cast %460 : vector<16xf32> to vector<16x1xf32>
    %462 = math.log %461 : vector<16x1xf32>
    %463 = arith.addf %462, %456 : vector<16x1xf32>
    %464 = tpu.iota {dimensions = array<i32: 1>} : vector<16x128xi32>
    %465 = vector.broadcast %454 : vector<16x1xi32> to vector<16x128xi32>
    %466 = arith.cmpi eq, %464, %465 : vector<16x128xi32>
    %cst_154 = arith.constant 0.000000e+00 : f32
    %467 = vector.broadcast %cst_154 : f32 to vector<16x128xf32>
    %468 = arith.select %466, %444, %467 : vector<16x128xi1>, vector<16x128xf32>
    %cst_155 = arith.constant dense<0.000000e+00> : vector<16xf32>
    %469 = vector.multi_reduction <add>, %468, %cst_155 [1] : vector<16x128xf32> to vector<16xf32>
    %470 = vector.shape_cast %469 : vector<16xf32> to vector<16x1xf32>
    %471 = arith.subf %463, %470 : vector<16x1xf32>
    %472 = arith.mulf %471, %450 : vector<16x1xf32>
    %cst_156 = arith.constant dense<0.000000e+00> : vector<1xf32>
    %473 = vector.multi_reduction <add>, %472, %cst_156 [0] : vector<16x1xf32> to vector<1xf32>
    %474 = vector.shape_cast %473 : vector<1xf32> to vector<1x1xf32>
    %cst_157 = arith.constant dense<0.000000e+00> : vector<1xf32>
    %475 = vector.multi_reduction <add>, %450, %cst_157 [0] : vector<16x1xf32> to vector<1xf32>
    %476 = vector.shape_cast %475 : vector<1xf32> to vector<1x1xf32>
    %cst_158 = arith.constant 1.000000e+00 : f32
    %477 = vector.broadcast %cst_158 : f32 to vector<1x1xf32>
    %478 = arith.maximumf %476, %477 : vector<1x1xf32>
    %479 = arith.divf %474, %478 : vector<1x1xf32>
    %c0_159 = arith.constant 0 : index
    %c0_160 = arith.constant 0 : index
    %480 = vector.load %arg22[%c0_159, %c0_160] : memref<1x1xf32, #tpu.memory_space<vmem>>, vector<1x1xf32>
    tpu.vector_store %arg22[%c0_159, %c0_160], %479 {strides = array<i32>} : memref<1x1xf32, #tpu.memory_space<vmem>>, vector<1x1xf32>,
    return
  }
  func.func @transform_0(%arg0: i32) -> (i32, i32) {
    %c0_i32 = arith.constant 0 : i32
    %c0_i32_0 = arith.constant 0 : i32
    %c0_i32_1 = arith.constant 0 : i32
    return %c0_i32, %c0_i32_0 : i32, i32
  }
  func.func @transform_1(%arg0: i32) -> (i32, i32) {
    %c0_i32 = arith.constant 0 : i32
    %c0_i32_0 = arith.constant 0 : i32
    %c0_i32_1 = arith.constant 0 : i32
    return %c0_i32, %c0_i32_0 : i32, i32
  }
  func.func @transform_2(%arg0: i32) -> (i32, i32) {
    %c0_i32 = arith.constant 0 : i32
    %c0_i32_0 = arith.constant 0 : i32
    %c0_i32_1 = arith.constant 0 : i32
    return %c0_i32, %c0_i32_0 : i32, i32
  }
  func.func @transform_3(%arg0: i32) -> (i32, i32) {
    %c0_i32 = arith.constant 0 : i32
    %c0_i32_0 = arith.constant 0 : i32
    %c0_i32_1 = arith.constant 0 : i32
    return %c0_i32, %c0_i32_0 : i32, i32
  }
  func.func @transform_4(%arg0: i32) -> (i32, i32) {
    %c0_i32 = arith.constant 0 : i32
    %c0_i32_0 = arith.constant 0 : i32
    %c0_i32_1 = arith.constant 0 : i32
    return %c0_i32, %c0_i32_0 : i32, i32
  }
  func.func @transform_5(%arg0: i32) -> (i32, i32) {
    %c0_i32 = arith.constant 0 : i32
    %c0_i32_0 = arith.constant 0 : i32
    %c0_i32_1 = arith.constant 0 : i32
    return %c0_i32, %c0_i32_0 : i32, i32
  }
  func.func @transform_6(%arg0: i32) -> (i32, i32, i32) {
    %c0_i32 = arith.constant 0 : i32
    %c0_i32_0 = arith.constant 0 : i32
    %c0_i32_1 = arith.constant 0 : i32
    %c0_i32_2 = arith.constant 0 : i32
    return %c0_i32, %c0_i32_0, %c0_i32_1 : i32, i32, i32
  }
  func.func @transform_7(%arg0: i32) -> (i32, i32, i32) {
    %c0_i32 = arith.constant 0 : i32
    %c0_i32_0 = arith.constant 0 : i32
    %c0_i32_1 = arith.constant 0 : i32
    %c0_i32_2 = arith.constant 0 : i32
    return %c0_i32, %c0_i32_0, %c0_i32_1 : i32, i32, i32
  }
  func.func @transform_8(%arg0: i32) -> (i32, i32, i32) {
    %c0_i32 = arith.constant 0 : i32
    %c0_i32_0 = arith.constant 0 : i32
    %c0_i32_1 = arith.constant 0 : i32
    %c0_i32_2 = arith.constant 0 : i32
    return %c0_i32, %c0_i32_0, %c0_i32_1 : i32, i32, i32
  }
  func.func @transform_9(%arg0: i32) -> (i32, i32, i32) {
    %c0_i32 = arith.constant 0 : i32
    %c0_i32_0 = arith.constant 0 : i32
    %c0_i32_1 = arith.constant 0 : i32
    %c0_i32_2 = arith.constant 0 : i32
    return %c0_i32, %c0_i32_0, %c0_i32_1 : i32, i32, i32
  }
  func.func @transform_10(%arg0: i32) -> (i32, i32, i32, i32) {
    %c0_i32 = arith.constant 0 : i32
    %c0_i32_0 = arith.constant 0 : i32
    %c0_i32_1 = arith.constant 0 : i32
    %c0_i32_2 = arith.constant 0 : i32
    %c0_i32_3 = arith.constant 0 : i32
    return %c0_i32, %c0_i32_0, %c0_i32_1, %c0_i32_2 : i32, i32, i32, i32
  }
  func.func @transform_11(%arg0: i32) -> (i32, i32, i32) {
    %c0_i32 = arith.constant 0 : i32
    %c0_i32_0 = arith.constant 0 : i32
    %c0_i32_1 = arith.constant 0 : i32
    %c0_i32_2 = arith.constant 0 : i32
    return %c0_i32, %c0_i32_0, %c0_i32_1 : i32, i32, i32
  }
  func.func @transform_12(%arg0: i32) -> (i32, i32, i32) {
    %c0_i32 = arith.constant 0 : i32
    %c0_i32_0 = arith.constant 0 : i32
    %c0_i32_1 = arith.constant 0 : i32
    %c0_i32_2 = arith.constant 0 : i32
    return %c0_i32, %c0_i32_0, %c0_i32_1 : i32, i32, i32
  }
  func.func @transform_13(%arg0: i32) -> (i32, i32, i32) {
    %c0_i32 = arith.constant 0 : i32
    %c0_i32_0 = arith.constant 0 : i32
    %c0_i32_1 = arith.constant 0 : i32
    %c0_i32_2 = arith.constant 0 : i32
    return %c0_i32, %c0_i32_0, %c0_i32_1 : i32, i32, i32
  }
  func.func @transform_14(%arg0: i32) -> (i32, i32, i32) {
    %c0_i32 = arith.constant 0 : i32
    %c0_i32_0 = arith.constant 0 : i32
    %c0_i32_1 = arith.constant 0 : i32
    %c0_i32_2 = arith.constant 0 : i32
    return %c0_i32, %c0_i32_0, %c0_i32_1 : i32, i32, i32
  }
  func.func @transform_15(%arg0: i32) -> (i32, i32, i32) {
    %c0_i32 = arith.constant 0 : i32
    %c0_i32_0 = arith.constant 0 : i32
    %c0_i32_1 = arith.constant 0 : i32
    %c0_i32_2 = arith.constant 0 : i32
    return %c0_i32, %c0_i32_0, %c0_i32_1 : i32, i32, i32
  }
  func.func @transform_16(%arg0: i32) -> (i32, i32, i32) {
    %c0_i32 = arith.constant 0 : i32
    %c0_i32_0 = arith.constant 0 : i32
    %c0_i32_1 = arith.constant 0 : i32
    %c0_i32_2 = arith.constant 0 : i32
    return %c0_i32, %c0_i32_0, %c0_i32_1 : i32, i32, i32
  }
  func.func @transform_17(%arg0: i32) -> (i32, i32, i32) {
    %c0_i32 = arith.constant 0 : i32
    %c0_i32_0 = arith.constant 0 : i32
    %c0_i32_1 = arith.constant 0 : i32
    %c0_i32_2 = arith.constant 0 : i32
    return %c0_i32, %c0_i32_0, %c0_i32_1 : i32, i32, i32
  }
  func.func @transform_18(%arg0: i32) -> (i32, i32) {
    %c0_i32 = arith.constant 0 : i32
    %c0_i32_0 = arith.constant 0 : i32
    %c0_i32_1 = arith.constant 0 : i32
    return %c0_i32, %c0_i32_0 : i32, i32
  }
  func.func @transform_19(%arg0: i32) -> (i32, i32) {
    %c0_i32 = arith.constant 0 : i32
    %c0_i32_0 = arith.constant 0 : i32
    %c0_i32_1 = arith.constant 0 : i32
    return %c0_i32, %c0_i32_0 : i32, i32
  }
  func.func @transform_20(%arg0: i32) -> (i32, i32) {
    %c0_i32 = arith.constant 0 : i32
    %c0_i32_0 = arith.constant 0 : i32
    %c0_i32_1 = arith.constant 0 : i32
    return %c0_i32, %c0_i32_0 : i32, i32
  }
  func.func @transform_21(%arg0: i32) -> (i32, i32) {
    %c0_i32 = arith.constant 0 : i32
    %c0_i32_0 = arith.constant 0 : i32
    %c0_i32_1 = arith.constant 0 : i32
    return %c0_i32, %c0_i32_0 : i32, i32
  }
}

</mosaic_0001>

<bundles_post_ra>
// kernel: _forward_impl.1
= control target key start
LH: loop header
LB: loop body
LE: loop exit
PB: predicated region body
PF: predicated region fallthrough
CT: control target
= control target key end

     0   :  { %s5182_s0 = inlined_call_operand.vmem [shape: s32[16,1], index: 0, kind: input, shape index: {}]   ;;  %s5183_s1 = inlined_call_operand.vmem [shape: f32[2,8], index: 1, kind: input, shape index: {}]   ;;  %s5184_s2 = inlined_call_operand.vmem [shape: s32[16,1], index: 2, kind: input, shape index: {}]   ;;  %s5185_s3 = inlined_call_operand.vmem [shape: bf16[128,32], index: 3, kind: input, shape index: {}]   ;;  %s5186_s4 = inlined_call_operand.vmem [shape: bf16[32,128], index: 4, kind: input, shape index: {}]   ;;  %s5187_s5 = inlined_call_operand.vmem [shape: f32[16,32], index: 5, kind: input, shape index: {}]   ;;  %s5188_s6 = inlined_call_operand.vmem [shape: f32[2,1,32], index: 6, kind: input, shape index: {}]   ;;  %s5189_s7 = inlined_call_operand.vmem [shape: f32[2,1,32], index: 7, kind: input, shape index: {}]   ;;  %s5190_s8 = inlined_call_operand.vmem [shape: bf16[2,32,96], index: 8, kind: input, shape index: {}]   ;;  %s5191_s9 = inlined_call_operand.vmem [shape: f32[2,1,96], index: 9, kind: input, shape index: {}]   ;;  %s5192_s10 = inlined_call_operand.vmem [shape: bf16[2,4,8,32], index: 10, kind: input, shape index: {}]   ;;  %s5193_s11 = inlined_call_operand.vmem [shape: f32[2,1,32], index: 11, kind: input, shape index: {}]   ;;  %s5194_s12 = inlined_call_operand.vmem [shape: f32[2,1,32], index: 12, kind: input, shape index: {}]   ;;  %s5195_s13 = inlined_call_operand.vmem [shape: f32[2,1,32], index: 13, kind: input, shape index: {}]   ;;  %s5196_s14 = inlined_call_operand.vmem [shape: bf16[2,32,128], index: 14, kind: input, shape index: {}]   ;;  %s5197_s15 = inlined_call_operand.vmem [shape: f32[2,1,128], index: 15, kind: input, shape index: {}]   ;;  %s5198_s16 = inlined_call_operand.vmem [shape: bf16[2,128,32], index: 16, kind: input, shape index: {}]   ;;  %s5199_s17 = inlined_call_operand.vmem [shape: f32[2,1,32], index: 17, kind: input, shape index: {}]   ;;  %s5200_s18 = inlined_call_operand.vmem [shape: f32[1,32], index: 18, kind: input, shape index: {}]   ;;  %s5201_s19 = inlined_call_operand.vmem [shape: f32[1,32], index: 19, kind: input, shape index: {}]   ;;  %s5202_s20 = inlined_call_operand.hbm [shape: f32[16,128], index: 20, kind: output, shape index: {0}]   ;;  %s5203_s21 = inlined_call_operand.hbm [shape: f32[1,1], index: 21, kind: output, shape index: {1}]  }
   0x1   :  { %5208 = sst [smem:[#allocation8_spill]] %s5182_s0 }
   0x2   :  { %5209 = sst [smem:[#allocation9_spill]] %s5183_s1 }
   0x3   :  { %5210 = sst [smem:[#allocation10_spill]] %s5184_s2 }
   0x4   :  { %5211 = sst [smem:[#allocation11_spill]] %s5185_s3 }
   0x5   :  { %5212 = sst [smem:[#allocation12_spill]] %s5186_s4 }
   0x6   :  { %5213 = sst [smem:[#allocation13_spill]] %s5187_s5 }
   0x7   :  { %27 = vsyncpa [#allocation3], 0  ;;  %s5214_s26 = sld [smem:[#allocation9_spill]]  ;;  %v72_v1 = vlaneseq  ;;  %v4265_v3 = vmov 1966171168   ;;  %v4266_v5 = vmov 0  }
   0x8   :  { %s5215_s28 = sld [smem:[#allocation8_spill]]  ;;  %v202_v4 = vunpack.c.l.s4 %v4265_v3  ;;  %4058 = vset.pattern.permute.xlu0 %v4266_v5  ;;  %4084 = vset.pattern.permute.xlu1 %v4266_v5  ;;  %v4267_v9 = vmov 0.0   ;;  %vm4268_vm1 = vmmov 0  }
   0x9   :  { %s5216_s4 = sld [smem:[#allocation11_spill]]  ;;  %v4399_v7 = vshrl.u32 %v72_v1, 7  ;;  %3703 = vmatprep.subr.bf16.mxu0 %v4267_v9  ;;  %3723 = vmatprep.subr.bf16.mxu1 %v4267_v9 }
   0xa   :  { %v203_v10 = vunpack.c.0.s8 %v202_v4  ;;  %3719 = vmatprep.mubr.msk.bf16.mxu0 %vm4268_vm1, %v4267_v9  ;;  %3727 = vmatprep.mubr.msk.bf16.mxu1 %vm4268_vm1, %v4267_v9 }
   0xb   :  { %v231_v18 = vsub.s32 0, %v4399_v7 }
   0xc   :  { %v206_v13 = vsub.s32 %v203_v10, %v4399_v7 }
   0xd   :  { %v198_v0 = vld [vmem:[%s5214_s26] sm:$0x3] }
   0xe   :  { %v70_v2 = vld [vmem:[%s5215_s28] sm:$0xff]  ;;  %vm199_vm0 = vcmp.gt.f32.partialorder %v198_v0, 0.5  ;;  %v71_v8 = vld [vmem:[%s5215_s28 + $0x8] sm:$0xff] }
   0xf   :  { %v4085_v6 = vld [vmem:[%s5216_s4 + $0x38] sm:$0xff]   ;;  %75 = vperm.xlu0 %4058, %v70_v2   ;;  %v4086_v11 = vld [vmem:[%s5216_s4 + $0x30] sm:$0xff]   ;;  %v200_v12 = vsel %vm199_vm0, 1, %v4266_v5  ;;  %v4087_v15 = vld [vmem:[%s5216_s4 + $0x28] sm:$0xff]  }
  0x10   :  { %3704 = vmatpush3.bf16.msra.mxu0 %v4085_v6  ;;  %v207_v14 = vrot.slane %v200_v12, %v206_v13  ;;  %v4088_v20 = vld [vmem:[%s5216_s4 + $0x20] sm:$0xff]   ;;  %v4089_v25 = vld [vmem:[%s5216_s4 + $0x18] sm:$0xff]   ;;  %v4090_v26 = vld [vmem:[%s5216_s4 + $0x10] sm:$0xff]  }
  0x11   :  { %3705 = vmatprep.subr.bf16.mxu0 %v4267_v9  ;;  %v4091_v27 = vld [vmem:[%s5216_s4 + $0x8] sm:$0xff]   ;;  %v4092_v28 = vld [vmem:[%s5216_s4] sm:$0xff]  }
  0x12   :  { %v208_v16 = vcombine.high %v207_v14, %v207_v14  ;;  %v215_v17 = vrot.slane %v207_v14, %v206_v13 }
  0x13   :  { %78 = vperm.xlu0 %4058, %v71_v8  }
  0x14   :  { %3706 = vmatpush3.bf16.msra.mxu0 %v4086_v11  ;;  %v222_v19 = vrot.slane %v208_v16, %v206_v13  ;;  %vm223_vm2 = vcmp.ne.s32.totalorder %v215_v17, 0 }
  0x15   :  { %3707 = vmatprep.subr.bf16.mxu0 %v4267_v9  ;;  %v227_v21 = vsel %vm223_vm2, 1, %v4266_v5 }
  0x16   :  { %vm224_vm3 = vcmp.ne.s32.totalorder %v222_v19, 0  ;;  %v4425_v22 = vrot.slane %v227_v21, %v231_v18 }
  0x17   :  { %v228_v23 = vsel %vm224_vm3, 1, %v4266_v5 }
  0x18   :  { %3708 = vmatpush3.bf16.msra.mxu0 %v4087_v15  ;;  %v4427_v24 = vrot.slane %v228_v23, %v231_v18 }
  0x19   :  { %3709 = vmatprep.subr.bf16.mxu0 %v4267_v9 }
  0x1c   :  { %3710 = vmatpush3.bf16.msra.mxu0 %v4088_v20 }
  0x1d   :  { %3711 = vmatprep.subr.bf16.mxu0 %v4267_v9 }
  0x20   :  { %3712 = vmatpush3.bf16.msra.mxu0 %v4089_v25 }
  0x21   :  { %3713 = vmatprep.subr.bf16.mxu0 %v4267_v9 }
  0x24   :  { %3714 = vmatpush3.bf16.msra.mxu0 %v4090_v26 }
  0x25   :  { %3715 = vmatprep.subr.bf16.mxu0 %v4267_v9 }
  0x28   :  { %3716 = vmatpush3.bf16.msra.mxu0 %v4091_v27 }
  0x29   :  { %3717 = vmatprep.subr.bf16.mxu0 %v4267_v9 }
  0x2a   :  { %28 = vsyncpa [#allocation5], 0  ;;  %v4446_v30 = vand.u32 127, %v72_v1  ;;  %v4269_v32 = vmov 1.0|1.0   ;;  %s5217_s23 = sld [smem:[#allocation13_spill]] }
  0x2b   :  { %vm245_vm7 = vcmask 261120   ;;  %v4093_v52 = vld [vmem:[%s5190_s8 + $0x8] sm:$0xff]   ;;  %v4094_v53 = vld [vmem:[%s5190_s8] sm:$0xff]   ;;  %s4270_s30 = smov 120   ;;  %s4271_s5 = smov 96   ;;  %vm388_vm8 = vcmask 64512  }
  0x2c   :  { %3718 = vmatpush3.bf16.msra.mxu0 %v4092_v28  ;;  %3724 = vmatpush3.bf16.msra.mxu1 %v4093_v52  ;;  %v3454_v62 = vld [vmem:[%s5188_s6] ss:$0 sm:$0xff]  ;;  %s4272_s4 = smov 112   ;;  %s4273_s22 = smov 104   ;;  %vm237_vm9 = vcmp.eq.s32.totalorder %v4425_v22, 1  ;;  %vm197_vm10 = vcmp.le.s32.totalorder %v4446_v30, %v4399_v7  ;;  %vm238_vm12 = vcmp.eq.s32.totalorder %v4427_v24, 1 }
  0x2d   :  { %3761 = vmatprep.subr.bf16.mxu0 %v4267_v9  ;;  %3725 = vmatprep.subr.bf16.mxu1 %v4267_v9  ;;  %v3455_v2 = vld [vmem:[%s5189_s7] ss:$0 sm:$0xff]  ;;  %vm4535_vm11 = vmand %vm197_vm10, %vm237_vm9  ;;  %vm895_vm14 = vcmask 1043456   ;;  %s5222_s1 = sld [smem:[#allocation12_spill]]  ;;  %s4276_s3 = smov [#allocation2]  }
  0x2e   :  { %v3456_v8 = vld [vmem:[%s5191_s9] ss:$0 sm:$0xff]  ;;  %vm4540_vm13 = vmand %vm197_vm10, %vm238_vm12  ;;  %s5223_s27 = sld [smem:[#allocation10_spill]] }
  0x30   :  { %v192_v33 = vld [vmem:[%s5217_s23] sm:$0xff]  ;;  %3726 = vmatpush3.bf16.msra.mxu1 %v4094_v53  ;;  %s4274_s23 = smov 64  }
  0x31   :  { %3731 = vmatprep.subr.bf16.mxu1 %v4267_v9 }
  0x8a   :  { %v76_v29 = vpop.permute.xlu0 %75 }
  0x8b   :  { %vm80_vm4 = vcmp.eq.s32.totalorder %v4446_v30, %v76_v29 }
  0x8e   :  { %v79_v31 = vpop.permute.xlu0 %78 }
  0x8f   :  { %vm81_vm5 = vcmp.eq.s32.totalorder %v4446_v30, %v79_v31 }
  0x90   :  { %vm3452_vm6 = vmpackc.low %vm81_vm5, %vm80_vm4 }
  0x91   :  { %3720 = vmatmul.mubr.msk.bf16.vlgmr.msra.gmra.mxu0 %vm3452_vm6, %v4269_v32 }
  0x92   :  { %3763 = vmatprep.mubr.msk.bf16.mxu0 %vm4268_vm1, %v4267_v9 }
 0x151   :  { %v185_v34 = vpop.f32.mrf.mxu0 }
 0x152   :  { %v4455_v35 = vadd.f32 %v192_v33, %v185_v34 }
 0x153   :  { %v3721_v36 = vpop.f32.mrf.mxu0 }
 0x154   :  { %v246_v37 = vsel %vm245_vm7, %v4455_v35, 0.0 }
 0x155   :  { %247 = vadd.xlane.f32.xlu1 %v246_v37  ;;  %v188_v38 = vpop.f32.mrf.mxu0 }
 0x156   :  { %v4459_v39 = vadd.f32 %v192_v33, %v188_v38 }
 0x157   :  { %v3722_v40 = vpop.f32.mrf.mxu0 }
 0x158   :  { %v249_v41 = vsel %vm245_vm7, %v4459_v39, 0.0 }
 0x159   :  { %250 = vadd.xlane.f32.xlu1 %v249_v41 }
 0x1de   :  { %v248_v42 = vpop.xlane.xlu1 %247 }
 0x1df   :  { %v253_v43 = vmul.f32 0.03125, %v248_v42 }
 0x1e1   :  { %v255_v44 = vsub.f32 %v4455_v35, %v253_v43 }
 0x1e2   :  { %v251_v45 = vpop.xlane.xlu1 %250 }
 0x1e3   :  { %v254_v46 = vmul.f32 0.03125, %v251_v45  ;;  %v257_v47 = vmul.f32 %v255_v44, %v255_v44 }
 0x1e5   :  { %v256_v48 = vsub.f32 %v4459_v39, %v254_v46  ;;  %v259_v49 = vsel %vm245_vm7, %v257_v47, 0.0 }
 0x1e6   :  { %260 = vadd.xlane.f32.xlu0 %v259_v49 }
 0x1e7   :  { %v258_v50 = vmul.f32 %v256_v48, %v256_v48 }
 0x1e9   :  { %v262_v51 = vsel %vm245_vm7, %v258_v50, 0.0 }
 0x1ea   :  { %263 = vadd.xlane.f32.xlu1 %v262_v51 }
 0x26f   :  { %v261_v54 = vpop.xlane.xlu0 %260 }
 0x270   :  { %v265_v55 = vmul.f32 0.03125, %v261_v54 }
 0x272   :  { %v267_v56 = vadd.f32 1e-05, %v265_v55 }
 0x273   :  { %v264_v57 = vpop.xlane.xlu1 %263 }
 0x274   :  { %4119 = vrsqrt.f32 %v267_v56  ;;  %v266_v58 = vmul.f32 0.03125, %v264_v57  ;;  %v4275_v56 = vmov -1e+09  }
 0x275   :  { %v4584_v57 = vsel %vm4535_vm11, 0.0, %v4275_v56 }
 0x276   :  { %v268_v59 = vadd.f32 1e-05, %v266_v58 }
 0x278   :  { %4121 = vrsqrt.f32 %v268_v59 }
 0x281   :  { %v4120_v60 = vpop.eup %4119 }
 0x282   :  { %v271_v61 = vmul.f32 %v4120_v60, %v255_v44 }
 0x284   :  { %v279_v1 = vmul.f32 %v3454_v62, %v271_v61 }
 0x285   :  { %v4122_v63 = vpop.eup %4121 }
 0x286   :  { %v272_v0 = vmul.f32 %v4122_v63, %v256_v48  ;;  %v287_v4 = vadd.f32 %v3455_v2, %v279_v1  ;;  %v4593_v1 = vsel %vm4540_vm13, 0.0, %v4275_v56 }
 0x288   :  { %v280_v3 = vmul.f32 %v3454_v62, %v272_v0 }
 0x28a   :  { %v288_v5 = vadd.f32 %v3455_v2, %v280_v3 }
 0x28c   :  { %v289_v6 = vpack.c.bf16 %v288_v5, %v287_v4 }
 0x28e   :  { %3728 = vmatmul.mubr.msk.bf16.vlgmr.msra.gmra.mxu1 %vm245_vm7, %v289_v6 }
 0x28f   :  { %3733 = vmatprep.mubr.msk.bf16.mxu1 %vm4268_vm1, %v4267_v9 }
 0x34e   :  { %v350_v10 = vpop.f32.mrf.mxu1 }
 0x34f   :  { %v351_v11 = vadd.f32 %v3456_v8, %v350_v10 }
 0x350   :  { %v3729_v12 = vpop.f32.mrf.mxu1 }
 0x351   :  { %359 = vrot.lane.b32.xlu1 %v351_v11, %s4270_s30  ;;  %v377_v13 = vpack.c.bf16 %v351_v11, %v351_v11 }
 0x352   :  { %v353_v14 = vpop.f32.mrf.mxu1 }
 0x353   :  { %v354_v15 = vadd.f32 %v3456_v8, %v353_v14  ;;  %386 = vrot.lane.b32.xlu0 %v377_v13, %s4271_s5 }
 0x354   :  { %v3730_v16 = vpop.f32.mrf.mxu1 }
 0x355   :  { %361 = vrot.lane.b32.xlu1 %v354_v15, %s4270_s30  ;;  %v4059_v17 = vpack.i.bf16 %v354_v15, %v351_v11  ;;  %v4492_v18 = vpack.c.bf16 %v354_v15, %v354_v15 }
 0x359   :  { %4060 = vrot.lane.b32.xlu1 %v4059_v17, %s4272_s4 }
 0x35d   :  { %4065 = vrot.lane.b32.xlu1 %v4059_v17, %s4273_s22 }
 0x361   :  { %436 = vrot.lane.b32.xlu1 %v4492_v18, %s4271_s5 }
 0x3c3   :  { %v360_v19 = vpop.permute.xlu1 %359 }
 0x3c4   :  { %v4496_v20 = vpack.c.bf16 %v360_v19, %v360_v19 }
 0x3c5   :  { %v387_v21 = vpop.permute.xlu0 %386 }
 0x3c6   :  { %v393_v23 = vsel %vm388_vm8, %v387_v21, 0  ;;  %485 = vrot.lane.b32.xlu1 %v4496_v20, %s4271_s5 }
 0x3c7   :  { %3732 = vmatpush3.bf16.xpose.msra.mxu1 %v393_v23  ;;  %v362_v25 = vpop.permute.xlu1 %361 }
 0x3c8   :  { %v4501_v26 = vpack.c.bf16 %v362_v25, %v362_v25  ;;  %3737 = vmatprep.subr.bf16.mxu1 %v4267_v9 }
 0x3ca   :  { %534 = vrot.lane.b32.xlu1 %v4501_v26, %s4271_s5 }
 0x3cb   :  { %v4061_v27 = vpop.permute.xlu1 %4060 }
 0x3cc   :  { %v4062_v28 = vunpack.i.l.bf16 %v4061_v27  ;;  %v4063_v29 = vunpack.i.h.bf16 %v4061_v27 }
 0x3ce   :  { %v4506_v31 = vpack.c.bf16 %v4062_v28, %v4062_v28  ;;  %3734 = vmatmul.mubr.msk.bf16.vlgmr.msra.gmra.mxu1 %vm388_vm8, %v377_v13  ;;  %v4513_v34 = vpack.c.bf16 %v4063_v29, %v4063_v29 }
 0x3cf   :  { %v4066_v32 = vpop.permute.xlu1 %4065  ;;  %3739 = vmatprep.mubr.msk.bf16.mxu1 %vm4268_vm1, %v4267_v9 }
 0x3d0   :  { %v4067_v33 = vunpack.i.l.bf16 %v4066_v32  ;;  %583 = vrot.lane.b32.xlu1 %v4506_v31, %s4271_s5  ;;  %v4068_v36 = vunpack.i.h.bf16 %v4066_v32 }
 0x3d2   :  { %v4515_v37 = vpack.c.bf16 %v4067_v33, %v4067_v33  ;;  %v4522_v41 = vpack.c.bf16 %v4068_v36, %v4068_v36 }
 0x3d3   :  { %v437_v38 = vpop.permute.xlu1 %436 }
 0x3d4   :  { %v442_v40 = vsel %vm388_vm8, %v437_v38, 0  ;;  %681 = vrot.lane.b32.xlu0 %v4515_v37, %s4271_s5  ;;  %632 = vrot.lane.b32.xlu1 %v4513_v34, %s4271_s5 }
 0x3d5   :  { %3738 = vmatpush3.bf16.xpose.msra.mxu1 %v442_v40 }
 0x3d6   :  { %3743 = vmatprep.subr.bf16.mxu1 %v4267_v9 }
 0x3d8   :  { %730 = vrot.lane.b32.xlu1 %v4522_v41, %s4271_s5 }
 0x3dc   :  { %890 = vrot.lane.b32.xlu1 %v377_v13, %s4274_s23  ;;  %3740 = vmatmul.mubr.msk.bf16.vlgmr.msra.gmra.mxu1 %vm388_vm8, %v4492_v18 }
 0x3dd   :  { %3745 = vmatprep.mubr.msk.bf16.mxu1 %vm4268_vm1, %v4267_v9 }
 0x438   :  { %v486_v44 = vpop.permute.xlu1 %485 }
 0x439   :  { %v491_v45 = vsel %vm388_vm8, %v486_v44, 0 }
 0x43a   :  { %3744 = vmatpush3.bf16.xpose.msra.mxu1 %v491_v45 }
 0x43b   :  { %3749 = vmatprep.subr.bf16.mxu1 %v4267_v9 }
 0x43c   :  { %v535_v22 = vpop.permute.xlu1 %534 }
 0x43d   :  { %v540_v46 = vsel %vm388_vm8, %v535_v22, 0 }
 0x441   :  { %3746 = vmatmul.mubr.msk.bf16.vlgmr.msra.gmra.mxu1 %vm388_vm8, %v4496_v20 }
 0x442   :  { %3750 = vmatpush3.bf16.xpose.msra.mxu1 %v540_v46  ;;  %v584_v7 = vpop.permute.xlu1 %583  ;;  %3751 = vmatprep.mubr.msk.bf16.mxu1 %vm4268_vm1, %v4267_v9 }
 0x443   :  { %3755 = vmatprep.subr.bf16.mxu1 %v4267_v9  ;;  %v589_v48 = vsel %vm388_vm8, %v584_v7, 0 }
 0x446   :  { %v633_v24 = vpop.permute.xlu1 %632  ;;  %v682_v50 = vpop.permute.xlu0 %681 }
 0x447   :  { %v638_v47 = vsel %vm388_vm8, %v633_v24, 0  ;;  %v687_v52 = vsel %vm388_vm8, %v682_v50, 0 }
 0x448   :  { %3762 = vmatpush3.bf16.xpose.msra.mxu0 %v638_v47 }
 0x449   :  { %3752 = vmatmul.mubr.msk.bf16.vlgmr.msra.gmra.mxu1 %vm388_vm8, %v4501_v26  ;;  %3773 = vmatprep.subr.bf16.mxu0 %v4267_v9 }
 0x44a   :  { %3756 = vmatpush3.bf16.xpose.msra.mxu1 %v589_v48  ;;  %3757 = vmatprep.mubr.msk.bf16.mxu1 %vm4268_vm1, %v4267_v9  ;;  %v731_v49 = vpop.permute.xlu1 %730 }
 0x44b   :  { %3767 = vmatprep.subr.bf16.mxu1 %v4267_v9  ;;  %v736_v51 = vsel %vm388_vm8, %v731_v49, 0 }
 0x44e   :  { %v891_v53 = vpop.permute.xlu1 %890 }
 0x44f   :  { %3764 = vmatmul.mubr.msk.bf16.vlgmr.msra.gmra.mxu0 %vm388_vm8, %v4513_v34  ;;  %v897_v54 = vsel %vm895_vm14, %v891_v53, 0 }
 0x450   :  { %3774 = vmatpush3.bf16.xpose.msra.mxu0 %v736_v51  ;;  %3775 = vmatprep.mubr.msk.bf16.mxu0 %vm4268_vm1, %v4267_v9 }
 0x451   :  { %3758 = vmatmul.mubr.msk.bf16.vlgmr.msra.gmra.mxu1 %vm388_vm8, %v4506_v31  ;;  %3785 = vmatprep.subr.bf16.mxu0 %v4267_v9 }
 0x452   :  { %3768 = vmatpush3.bf16.xpose.msra.mxu1 %v687_v52  ;;  %3769 = vmatprep.mubr.msk.bf16.mxu1 %vm4268_vm1, %v4267_v9 }
 0x453   :  { %3779 = vmatprep.subr.bf16.mxu1 %v4267_v9 }
 0x457   :  { %3776 = vmatmul.mubr.msk.bf16.vlgmr.msra.gmra.mxu0 %vm388_vm8, %v4522_v41 }
 0x458   :  { %3787 = vmatprep.mubr.msk.bf16.mxu0 %vm4268_vm1, %v4267_v9 }
 0x459   :  { %3770 = vmatmul.mubr.msk.bf16.vlgmr.msra.gmra.mxu1 %vm388_vm8, %v4515_v37 }
 0x45a   :  { %3780 = vmatpush3.bf16.msra.mxu1 %v897_v54  ;;  %3781 = vmatprep.mubr.msk.bf16.mxu1 %vm4268_vm1, %v4267_v9 }
 0x45b   :  { %3791 = vmatprep.subr.bf16.mxu1 %v4267_v9 }
 0x48e   :  { %v429_v55 = vpop.f32.mrf.mxu1 }
 0x48f   :  { %v778_v58 = vmul.f32 0.35355338, %v429_v55 }
 0x490   :  { %v3735_v59 = vpop.f32.mrf.mxu1 }
 0x491   :  { %v4587_v60 = vadd.f32 %v778_v58, %v4584_v57 }
 0x492   :  { %v432_v61 = vpop.f32.mrf.mxu1 }
 0x493   :  { %v794_v62 = vsel %vm388_vm8, %v4587_v60, -inf }
 0x494   :  { %795 = vmax.xlane.f32.xlu0 %v794_v62  ;;  %v3736_v63 = vpop.f32.mrf.mxu1 }
 0x49c   :  { %v478_v0 = vpop.f32.mrf.mxu1 }
 0x49d   :  { %v779_v2 = vmul.f32 0.35355338, %v478_v0 }
 0x49e   :  { %v3741_v3 = vpop.f32.mrf.mxu1 }
 0x49f   :  { %v787_v4 = vadd.f32 %v779_v2, %v4593_v1 }
 0x4a0   :  { %v481_v5 = vpop.f32.mrf.mxu1 }
 0x4a1   :  { %v797_v6 = vsel %vm388_vm8, %v787_v4, -inf }
 0x4a2   :  { %798 = vmax.xlane.f32.xlu1 %v797_v6  ;;  %v3742_v8 = vpop.f32.mrf.mxu1 }
 0x4b3   :  { %987 = vrot.lane.b32.xlu1 %v4496_v20, %s4274_s23 }
 0x501   :  { %v527_v10 = vpop.f32.mrf.mxu1 }
 0x502   :  { %v780_v11 = vmul.f32 0.35355338, %v527_v10 }
 0x503   :  { %v3747_v12 = vpop.f32.mrf.mxu1 }
 0x504   :  { %v4600_v13 = vadd.f32 %v780_v11, %v4584_v57 }
 0x505   :  { %v530_v14 = vpop.f32.mrf.mxu1 }
 0x506   :  { %v800_v15 = vsel %vm388_vm8, %v4600_v13, -inf }
 0x507   :  { %801 = vmax.xlane.f32.xlu0 %v800_v15  ;;  %v3748_v16 = vpop.f32.mrf.mxu1 }
 0x509   :  { %v576_v17 = vpop.f32.mrf.mxu1 }
 0x50a   :  { %v781_v27 = vmul.f32 0.35355338, %v576_v17 }
 0x50b   :  { %v3753_v19 = vpop.f32.mrf.mxu1 }
 0x50c   :  { %v789_v43 = vadd.f32 %v781_v27, %v4593_v1 }
 0x50d   :  { %v579_v21 = vpop.f32.mrf.mxu1 }
 0x50e   :  { %v803_v47 = vsel %vm388_vm8, %v789_v43, -inf }
 0x50f   :  { %v3754_v23 = vpop.f32.mrf.mxu1  ;;  %v674_v25 = vpop.f32.mrf.mxu0 }
 0x510   :  { %v783_v28 = vmul.f32 0.35355338, %v674_v25 }
 0x511   :  { %v625_v20 = vpop.f32.mrf.mxu1  ;;  %v3765_v29 = vpop.f32.mrf.mxu0 }
 0x512   :  { %v782_v32 = vmul.f32 0.35355338, %v625_v20  ;;  %v791_v33 = vadd.f32 %v783_v28, %v4593_v1 }
 0x513   :  { %v3759_v36 = vpop.f32.mrf.mxu1  ;;  %v677_v38 = vpop.f32.mrf.mxu0 }
 0x514   :  { %v809_v40 = vsel %vm388_vm8, %v791_v33, -inf  ;;  %v4607_v42 = vadd.f32 %v782_v32, %v4584_v57 }
 0x515   :  { %v628_v44 = vpop.f32.mrf.mxu1  ;;  %810 = vmax.xlane.f32.xlu0 %v809_v40  ;;  %v3766_v45 = vpop.f32.mrf.mxu0 }
 0x516   :  { %v806_v22 = vsel %vm388_vm8, %v4607_v42, -inf }
 0x517   :  { %807 = vmax.xlane.f32.xlu1 %v806_v22  ;;  %v3760_v46 = vpop.f32.mrf.mxu1  ;;  %v772_v7 = vpop.f32.mrf.mxu0 }
 0x518   :  { %v785_v24 = vmul.f32 0.35355338, %v772_v7 }
 0x519   :  { %v723_v48 = vpop.f32.mrf.mxu1  ;;  %804 = vmax.xlane.f32.xlu0 %v803_v47  ;;  %v3777_v49 = vpop.f32.mrf.mxu0 }
 0x51a   :  { %v784_v50 = vmul.f32 0.35355338, %v723_v48  ;;  %v4614_v51 = vadd.f32 %v785_v24, %v4593_v1 }
 0x51b   :  { %v3771_v52 = vpop.f32.mrf.mxu1  ;;  %v775_v53 = vpop.f32.mrf.mxu0 }
 0x51c   :  { %v815_v54 = vsel %vm388_vm8, %v4614_v51, -inf  ;;  %v792_v55 = vadd.f32 %v784_v50, %v4584_v57 }
 0x51d   :  { %v726_v56 = vpop.f32.mrf.mxu1  ;;  %816 = vmax.xlane.f32.xlu0 %v815_v54  ;;  %v3778_v58 = vpop.f32.mrf.mxu0 }
 0x51e   :  { %v812_v59 = vsel %vm388_vm8, %v792_v55, -inf  ;;  %v796_v63 = vpop.xlane.xlu0 %795 }
 0x51f   :  { %813 = vmax.xlane.f32.xlu1 %v812_v59  ;;  %v3772_v61 = vpop.f32.mrf.mxu1  ;;  %v818_v2 = vsub.f32 %v4587_v60, %v796_v63 }
 0x521   :  { %v826_v5 = vmul.f32 1.442695, %v818_v2 }
 0x52b   :  { %v799_v62 = vpop.xlane.xlu1 %798 }
 0x52c   :  { %v819_v0 = vsub.f32 %v787_v4, %v799_v62 }
 0x52e   :  { %v828_v3 = vmul.f32 1.442695, %v819_v0 }
 0x52f   :  { %v988_v32 = vpop.permute.xlu1 %987 }
 0x530   :  { %1035 = vrot.lane.b32.xlu1 %v4501_v26, %s4274_s23  ;;  %4123 = vpow2.f32 %v828_v3  ;;  %v993_v58 = vsel %vm895_vm14, %v988_v32, 0 }
 0x531   :  { %4125 = vpow2.f32 %v826_v5 }
 0x533   :  { %939 = vrot.lane.b32.xlu0 %v4492_v18, %s4274_s23 }
 0x53d   :  { %v4124_v6 = vpop.eup %4123 }
 0x53e   :  { %v4625_v8 = vpop.eup %4125  ;;  %v845_v10 = vsel %vm388_vm8, %v4124_v6, 0.0 }
 0x53f   :  { %v842_v26 = vsel %vm388_vm8, %v4625_v8, 0.0 }
 0x552   :  { %846 = vadd.xlane.f32.xlu0 %v845_v10 }
 0x554   :  { %843 = vadd.xlane.f32.xlu1 %v842_v26 }
 0x590   :  { %v802_v18 = vpop.xlane.xlu0 %801 }
 0x591   :  { %v820_v11 = vsub.f32 %v4600_v13, %v802_v18 }
 0x593   :  { %v830_v4 = vmul.f32 1.442695, %v820_v11 }
 0x595   :  { %4127 = vpow2.f32 %v830_v4 }
 0x59e   :  { %v811_v60 = vpop.xlane.xlu0 %810 }
 0x59f   :  { %v823_v12 = vsub.f32 %v791_v33, %v811_v60 }
 0x5a0   :  { %v808_v33 = vpop.xlane.xlu1 %807 }
 0x5a1   :  { %v836_v14 = vmul.f32 1.442695, %v823_v12  ;;  %v822_v36 = vsub.f32 %v4607_v42, %v808_v33 }
 0x5a2   :  { %v4631_v15 = vpop.eup %4127  ;;  %v805_v16 = vpop.xlane.xlu0 %804 }
 0x5a3   :  { %4129 = vpow2.f32 %v836_v14  ;;  %v821_v17 = vsub.f32 %v789_v43, %v805_v16  ;;  %v848_v19 = vsel %vm388_vm8, %v4631_v15, 0.0  ;;  %v834_v40 = vmul.f32 1.442695, %v822_v36  ;;  %v1276_v36 = vld [vmem:[%s5192_s10 + $0x4] sm:$0xf] }
 0x5a4   :  { %849 = vadd.xlane.f32.xlu1 %v848_v19 }
 0x5a5   :  { %v832_v21 = vmul.f32 1.442695, %v821_v17 }
 0x5a6   :  { %v817_v23 = vpop.xlane.xlu0 %816 }
 0x5a7   :  { %4131 = vpow2.f32 %v832_v21  ;;  %v825_v45 = vsub.f32 %v4614_v51, %v817_v23 }
 0x5a8   :  { %v814_v38 = vpop.xlane.xlu1 %813  ;;  %4133 = vpow2.f32 %v834_v40 }
 0x5a9   :  { %v824_v43 = vsub.f32 %v792_v55, %v814_v38  ;;  %v840_v22 = vmul.f32 1.442695, %v825_v45  ;;  %v1341_v38 = vsel %vm895_vm14, %v1276_v36, 0 }
 0x5aa   :  { %v940_v25 = vpop.permute.xlu0 %939 }
 0x5ab   :  { %v945_v13 = vsel %vm895_vm14, %v940_v25, 0  ;;  %v838_v44 = vmul.f32 1.442695, %v824_v43 }
 0x5ac   :  { %3786 = vmatpush3.bf16.msra.mxu0 %v945_v13  ;;  %v1036_v42 = vpop.permute.xlu1 %1035  ;;  %v1275_v13 = vld [vmem:[%s5192_s10] sm:$0xf] }
 0x5ad   :  { %3797 = vmatprep.subr.bf16.mxu0 %v4267_v9  ;;  %4135 = vpow2.f32 %v838_v44  ;;  %v1041_v55 = vsel %vm895_vm14, %v1036_v42, 0  ;;  %v1277_v42 = vld [vmem:[%s5192_s10 + $0x8] sm:$0xf] }
 0x5ae   :  { %4137 = vpow2.f32 %v840_v22 }
 0x5b0   :  { %v4637_v27 = vpop.eup %4129 }
 0x5b1   :  { %v857_v28 = vsel %vm388_vm8, %v4637_v27, 0.0 }
 0x5b2   :  { %858 = vadd.xlane.f32.xlu0 %v857_v28 }
 0x5b4   :  { %v4641_v20 = vpop.eup %4131 }
 0x5b5   :  { %1131 = vrot.lane.b32.xlu1 %v4513_v34, %s4274_s23  ;;  %v851_v29 = vsel %vm388_vm8, %v4641_v20, 0.0  ;;  %v4651_v34 = vpop.eup %4133 }
 0x5b6   :  { %852 = vadd.xlane.f32.xlu0 %v851_v29  ;;  %v854_v46 = vsel %vm388_vm8, %v4651_v34, 0.0 }
 0x5ba   :  { %v4655_v7 = vpop.eup %4135 }
 0x5bb   :  { %v860_v47 = vsel %vm388_vm8, %v4655_v7, 0.0  ;;  %v4659_v48 = vpop.eup %4137 }
 0x5bc   :  { %v863_v50 = vsel %vm388_vm8, %v4659_v48, 0.0 }
 0x5cc   :  { %1083 = vrot.lane.b32.xlu0 %v4506_v31, %s4274_s23 }
 0x5d9   :  { %855 = vadd.xlane.f32.xlu1 %v854_v46 }
 0x5db   :  { %v847_v24 = vpop.xlane.xlu0 %846 }
 0x5dc   :  { %4139 = vrcp.f32 %v847_v24  ;;  %v1391_v24 = vsel %vm895_vm14, %v1277_v42, 0 }
 0x5dd   :  { %861 = vadd.xlane.f32.xlu1 %v860_v47  ;;  %v844_v31 = vpop.xlane.xlu1 %843 }
 0x5de   :  { %4141 = vrcp.f32 %v844_v31 }
 0x5e9   :  { %v4140_v49 = vpop.eup %4139 }
 0x5ea   :  { %v875_v51 = vmul.f32 %v4140_v49, %v4124_v6 }
 0x5eb   :  { %v4142_v52 = vpop.eup %4141  ;;  %864 = vadd.xlane.f32.xlu0 %v863_v50 }
 0x5ec   :  { %v883_v53 = vpack.c.bf16 %v875_v51, %v875_v51  ;;  %v874_v54 = vmul.f32 %v4142_v52, %v4625_v8  ;;  %v1278_v51 = vld [vmem:[%s5192_s10 + $0xc] sm:$0xf] }
 0x5ee   :  { %1227 = vrot.lane.b32.xlu1 %v4522_v41, %s4274_s23  ;;  %3788 = vmatmul.mubr.msk.bf16.vlgmr.msra.gmra.mxu0 %vm388_vm8, %v883_v53  ;;  %v882_v56 = vpack.c.bf16 %v874_v54, %v874_v54  ;;  %v1441_v54 = vsel %vm895_vm14, %v1278_v51, 0 }
 0x5ef   :  { %3798 = vmatpush3.bf16.msra.mxu0 %v1041_v55  ;;  %3799 = vmatprep.mubr.msk.bf16.mxu0 %vm4268_vm1, %v4267_v9 }
 0x5f0   :  { %3782 = vmatmul.mubr.msk.bf16.vlgmr.msra.gmra.mxu1 %vm388_vm8, %v882_v56  ;;  %3809 = vmatprep.subr.bf16.mxu0 %v4267_v9 }
 0x5f1   :  { %3792 = vmatpush3.bf16.msra.mxu1 %v993_v58  ;;  %3793 = vmatprep.mubr.msk.bf16.mxu1 %vm4268_vm1, %v4267_v9 }
 0x5f2   :  { %3803 = vmatprep.subr.bf16.mxu1 %v4267_v9 }
 0x601   :  { %1179 = vrot.lane.b32.xlu0 %v4515_v37, %s4274_s23 }
 0x62d   :  { %v850_v41 = vpop.xlane.xlu1 %849 }
 0x62e   :  { %4143 = vrcp.f32 %v850_v41 }
 0x631   :  { %v1132_v6 = vpop.permute.xlu1 %1131 }
 0x632   :  { %v1137_v26 = vsel %vm895_vm14, %v1132_v6, 0 }
 0x63b   :  { %v4144_v59 = vpop.eup %4143  ;;  %v859_v61 = vpop.xlane.xlu0 %858 }
 0x63c   :  { %v876_v62 = vmul.f32 %v4144_v59, %v4631_v15 }
 0x63e   :  { %v884_v63 = vpack.c.bf16 %v876_v62, %v876_v62 }
 0x63f   :  { %v853_v0 = vpop.xlane.xlu0 %852 }
 0x640   :  { %4145 = vrcp.f32 %v853_v0  ;;  %3794 = vmatmul.mubr.msk.bf16.vlgmr.msra.gmra.mxu1 %vm388_vm8, %v884_v63 }
 0x641   :  { %3805 = vmatprep.mubr.msk.bf16.mxu1 %vm4268_vm1, %v4267_v9  ;;  %4147 = vrcp.f32 %v859_v61 }
 0x643   :  { %v1084_v2 = vpop.permute.xlu0 %1083 }
 0x644   :  { %v1089_v3 = vsel %vm895_vm14, %v1084_v2, 0 }
 0x645   :  { %3804 = vmatpush3.bf16.msra.mxu1 %v1089_v3 }
 0x646   :  { %3815 = vmatprep.subr.bf16.mxu1 %v4267_v9 }
 0x64d   :  { %v4146_v37 = vpop.eup %4145 }
 0x64e   :  { %v877_v5 = vmul.f32 %v4146_v37, %v4641_v20  ;;  %v4148_v10 = vpop.eup %4147  ;;  %v1285_v20 = vsel %vm895_vm14, %v1275_v13, 0 }
 0x64f   :  { %v879_v18 = vmul.f32 %v4148_v10, %v4637_v27 }
 0x650   :  { %v885_v8 = vpack.c.bf16 %v877_v5, %v877_v5 }
 0x651   :  { %v887_v11 = vpack.c.bf16 %v879_v18, %v879_v18 }
 0x652   :  { %3800 = vmatmul.mubr.msk.bf16.vlgmr.msra.gmra.mxu0 %vm388_vm8, %v885_v8 }
 0x653   :  { %3810 = vmatpush3.bf16.msra.mxu0 %v1137_v26  ;;  %3811 = vmatprep.mubr.msk.bf16.mxu0 %vm4268_vm1, %v4267_v9 }
 0x654   :  { %3821 = vmatprep.subr.bf16.mxu0 %v4267_v9 }
 0x65a   :  { %3812 = vmatmul.mubr.msk.bf16.vlgmr.msra.gmra.mxu0 %vm388_vm8, %v887_v11 }
 0x65b   :  { %3823 = vmatprep.mubr.msk.bf16.mxu0 %vm4268_vm1, %v4267_v9 }
 0x662   :  { %v856_v4 = vpop.xlane.xlu1 %855 }
 0x663   :  { %4149 = vrcp.f32 %v856_v4 }
 0x666   :  { %v862_v60 = vpop.xlane.xlu1 %861 }
 0x667   :  { %4151 = vrcp.f32 %v862_v60 }
 0x66a   :  { %v1228_v12 = vpop.permute.xlu1 %1227 }
 0x66b   :  { %v1233_v14 = vsel %vm895_vm14, %v1228_v12, 0 }
 0x66c   :  { %3822 = vmatpush3.bf16.msra.mxu0 %v1233_v14 }
 0x66d   :  { %3833 = vmatprep.subr.bf16.mxu0 %v4267_v9 }
 0x670   :  { %v4150_v15 = vpop.eup %4149 }
 0x671   :  { %v878_v16 = vmul.f32 %v4150_v15, %v4651_v34 }
 0x673   :  { %v886_v17 = vpack.c.bf16 %v878_v16, %v878_v16 }
 0x674   :  { %v4152_v19 = vpop.eup %4151  ;;  %v865_v21 = vpop.xlane.xlu0 %864 }
 0x675   :  { %4153 = vrcp.f32 %v865_v21  ;;  %3806 = vmatmul.mubr.msk.bf16.vlgmr.msra.gmra.mxu1 %vm388_vm8, %v886_v17  ;;  %v880_v23 = vmul.f32 %v4152_v19, %v4655_v7 }
 0x676   :  { %3817 = vmatprep.mubr.msk.bf16.mxu1 %vm4268_vm1, %v4267_v9 }
 0x677   :  { %v888_v28 = vpack.c.bf16 %v880_v23, %v880_v23 }
 0x678   :  { %v1180_v25 = vpop.permute.xlu0 %1179 }
 0x679   :  { %v1185_v27 = vsel %vm895_vm14, %v1180_v25, 0 }
 0x67a   :  { %3816 = vmatpush3.bf16.msra.mxu1 %v1185_v27 }
 0x67b   :  { %3827 = vmatprep.subr.bf16.mxu1 %v4267_v9 }
 0x67d   :  { %3818 = vmatmul.mubr.msk.bf16.vlgmr.msra.gmra.mxu1 %vm388_vm8, %v888_v28 }
 0x67e   :  { %3828 = vmatpush3.bf16.msra.mxu1 %v1285_v20  ;;  %3829 = vmatprep.mubr.msk.bf16.mxu1 %vm4268_vm1, %v4267_v9  ;;  %v3477_v20 = vld [vmem:[%s5193_s11] ss:$0 sm:$0xff] }
 0x67f   :  { %3839 = vmatprep.subr.bf16.mxu1 %v4267_v9 }
 0x682   :  { %v4154_v29 = vpop.eup %4153 }
 0x683   :  { %v881_v32 = vmul.f32 %v4154_v29, %v4659_v48 }
 0x685   :  { %v889_v33 = vpack.c.bf16 %v881_v32, %v881_v32 }
 0x687   :  { %3824 = vmatmul.mubr.msk.bf16.vlgmr.msra.gmra.mxu0 %vm388_vm8, %v889_v33 }
 0x688   :  { %3835 = vmatprep.mubr.msk.bf16.mxu0 %vm4268_vm1, %v4267_v9  ;;  %3834 = vmatpush3.bf16.msra.mxu0 %v1341_v38 }
 0x689   :  { %3845 = vmatprep.subr.bf16.mxu0 %v4267_v9 }
 0x6ae   :  { %v981_v40 = vpop.f32.mrf.mxu0 }
 0x6b0   :  { %v933_v43 = vpop.f32.mrf.mxu1  ;;  %v3789_v44 = vpop.f32.mrf.mxu0 }
 0x6b1   :  { %v1280_v45 = vpack.c.bf16 %v981_v40, %v933_v43 }
 0x6b2   :  { %v3783_v34 = vpop.f32.mrf.mxu1  ;;  %v984_v22 = vpop.f32.mrf.mxu0 }
 0x6b3   :  { %3830 = vmatmul.mubr.msk.bf16.vlgmr.msra.gmra.mxu1 %vm388_vm8, %v1280_v45 }
 0x6b4   :  { %v936_v46 = vpop.f32.mrf.mxu1  ;;  %v3790_v7 = vpop.f32.mrf.mxu0  ;;  %3841 = vmatprep.mubr.msk.bf16.mxu1 %vm4268_vm1, %v4267_v9  ;;  %3840 = vmatpush3.bf16.msra.mxu1 %v1391_v24 }
 0x6b5   :  { %3851 = vmatprep.subr.bf16.mxu1 %v4267_v9 }
 0x6b6   :  { %v3784_v47 = vpop.f32.mrf.mxu1 }
 0x700   :  { %v1029_v31 = vpop.f32.mrf.mxu1 }
 0x702   :  { %v3795_v48 = vpop.f32.mrf.mxu1 }
 0x704   :  { %v1032_v49 = vpop.f32.mrf.mxu1 }
 0x706   :  { %v3796_v50 = vpop.f32.mrf.mxu1 }
 0x712   :  { %v1077_v52 = vpop.f32.mrf.mxu0 }
 0x713   :  { %v1336_v53 = vpack.c.bf16 %v1077_v52, %v1029_v31 }
 0x714   :  { %v3801_v55 = vpop.f32.mrf.mxu0 }
 0x715   :  { %3836 = vmatmul.mubr.msk.bf16.vlgmr.msra.gmra.mxu0 %vm388_vm8, %v1336_v53  ;;  %v4095_v55 = vld [vmem:[%s5196_s14 + $0x8] sm:$0xff]  }
 0x716   :  { %v1080_v56 = vpop.f32.mrf.mxu0  ;;  %3846 = vmatpush3.bf16.msra.mxu0 %v1441_v54  ;;  %3847 = vmatprep.mubr.msk.bf16.mxu0 %vm4268_vm1, %v4267_v9 }
 0x717   :  { %3859 = vmatprep.subr.bf16.mxu0 %v4267_v9  ;;  %v4096_v56 = vld [vmem:[%s5196_s14] sm:$0xff]  }
 0x718   :  { %v3802_v58 = vpop.f32.mrf.mxu0 }
 0x71a   :  { %v1173_v41 = vpop.f32.mrf.mxu0 }
 0x71c   :  { %v3813_v59 = vpop.f32.mrf.mxu0 }
 0x71e   :  { %v1176_v61 = vpop.f32.mrf.mxu0 }
 0x720   :  { %v3814_v62 = vpop.f32.mrf.mxu0 }
 0x735   :  { %v1125_v63 = vpop.f32.mrf.mxu1 }
 0x736   :  { %v1386_v0 = vpack.c.bf16 %v1173_v41, %v1125_v63 }
 0x737   :  { %v3807_v2 = vpop.f32.mrf.mxu1 }
 0x738   :  { %3842 = vmatmul.mubr.msk.bf16.vlgmr.msra.gmra.mxu1 %vm388_vm8, %v1386_v0 }
 0x739   :  { %v1128_v3 = vpop.f32.mrf.mxu1  ;;  %3855 = vmatprep.mubr.msk.bf16.mxu1 %vm4268_vm1, %v4267_v9  ;;  %3852 = vmatpush3.bf16.msra.mxu1 %v4095_v55 }
 0x73a   :  { %3853 = vmatprep.subr.bf16.mxu1 %v4267_v9  ;;  %v3481_v3 = vld [vmem:[%s5194_s12] ss:$0 sm:$0xff] }
 0x73b   :  { %v3808_v37 = vpop.f32.mrf.mxu1 }
 0x73d   :  { %v1221_v5 = vpop.f32.mrf.mxu1  ;;  %3854 = vmatpush3.bf16.msra.mxu1 %v4096_v56 }
 0x73e   :  { %3879 = vmatprep.subr.bf16.mxu1 %v4267_v9 }
 0x73f   :  { %v3819_v6 = vpop.f32.mrf.mxu1 }
 0x741   :  { %v1224_v8 = vpop.f32.mrf.mxu1 }
 0x742   :  { %v3482_v8 = vld [vmem:[%s5195_s13] ss:$0 sm:$0xff] }
 0x743   :  { %v3820_v10 = vpop.f32.mrf.mxu1 }
 0x747   :  { %v1269_v26 = vpop.f32.mrf.mxu0 }
 0x748   :  { %v1436_v18 = vpack.c.bf16 %v1269_v26, %v1221_v5 }
 0x749   :  { %v3825_v11 = vpop.f32.mrf.mxu0 }
 0x74a   :  { %3848 = vmatmul.mubr.msk.bf16.vlgmr.msra.gmra.mxu0 %vm388_vm8, %v1436_v18 }
 0x74b   :  { %v1272_v4 = vpop.f32.mrf.mxu0  ;;  %3875 = vmatprep.mubr.msk.bf16.mxu0 %vm4268_vm1, %v4267_v9 }
 0x74c   :  { %v4097_v4 = vld [vmem:[%s5198_s16 + $0x38] sm:$0xff]  }
 0x74d   :  { %v3826_v60 = vpop.f32.mrf.mxu0  ;;  %3860 = vmatpush3.bf16.msra.mxu0 %v4097_v4 }
 0x74e   :  { %3861 = vmatprep.subr.bf16.mxu0 %v4267_v9  ;;  %v4098_v60 = vld [vmem:[%s5198_s16 + $0x30] sm:$0xff]  }
 0x751   :  { %3862 = vmatpush3.bf16.msra.mxu0 %v4098_v60 }
 0x752   :  { %3863 = vmatprep.subr.bf16.mxu0 %v4267_v9 }
 0x773   :  { %v1321_v12 = vpop.f32.mrf.mxu1 }
 0x774   :  { %v1334_v29 = vadd.f32 %v3477_v20, %v1321_v12  ;;  %v4099_v12 = vld [vmem:[%s5198_s16 + $0x28] sm:$0xff]  }
 0x775   :  { %v3831_v14 = vpop.f32.mrf.mxu1  ;;  %3864 = vmatpush3.bf16.msra.mxu0 %v4099_v12 }
 0x776   :  { %3865 = vmatprep.subr.bf16.mxu0 %v4267_v9  ;;  %v4100_v14 = vld [vmem:[%s5198_s16 + $0x20] sm:$0xff]  }
 0x777   :  { %v1324_v15 = vpop.f32.mrf.mxu1 }
 0x778   :  { %v1335_v33 = vadd.f32 %v3477_v20, %v1324_v15  ;;  %v4101_v15 = vld [vmem:[%s5198_s16 + $0x18] sm:$0xff]  }
 0x779   :  { %v3832_v16 = vpop.f32.mrf.mxu1  ;;  %3866 = vmatpush3.bf16.msra.mxu0 %v4100_v14 }
 0x77a   :  { %3867 = vmatprep.subr.bf16.mxu0 %v4267_v9  ;;  %v4102_v16 = vld [vmem:[%s5198_s16 + $0x10] sm:$0xff]  }
 0x77d   :  { %3868 = vmatpush3.bf16.msra.mxu0 %v4101_v15 }
 0x77e   :  { %3869 = vmatprep.subr.bf16.mxu0 %v4267_v9 }
 0x781   :  { %3870 = vmatpush3.bf16.msra.mxu0 %v4102_v16  ;;  %v3498_v16 = vld [vmem:[%s5188_s6 + $0x1] ss:$0 sm:$0xff]  ;;  %s3417_s6 = sshll.u32 %s4276_s3, 4  ;;  %s3418_s6 = int_to_ptr.vmem [resolvable:$true] %s3417_s6 }
 0x782   :  { %3871 = vmatprep.subr.bf16.mxu0 %v4267_v9  ;;  %p4226_p1 = scmp.lt.s32.totalorder %s3418_s6, %s3418_s6 }
 0x7d5   :  { %v1377_v17 = vpop.f32.mrf.mxu0 }
 0x7d6   :  { %v1384_v32 = vadd.f32 %v1377_v17, %v1334_v29  ;;  %v4103_v17 = vld [vmem:[%s5198_s16 + $0x8] sm:$0xff]  }
 0x7d7   :  { %v3837_v19 = vpop.f32.mrf.mxu0  ;;  %3872 = vmatpush3.bf16.msra.mxu0 %v4103_v17 }
 0x7d8   :  { %v4104_v19 = vld [vmem:[%s5198_s16] sm:$0xff]   ;;  %3873 = vmatprep.subr.bf16.mxu0 %v4267_v9 }
 0x7d9   :  { %v1380_v21 = vpop.f32.mrf.mxu0 }
 0x7da   :  { %v1385_v40 = vadd.f32 %v1380_v21, %v1335_v33  ;;  %v3483_v21 = vld [vmem:[%s5197_s15] ss:$0 sm:$0xff] }
 0x7db   :  { %v3838_v23 = vpop.f32.mrf.mxu0  ;;  %3874 = vmatpush3.bf16.msra.mxu0 %v4104_v19 }
 0x7dc   :  { %3905 = vmatprep.subr.bf16.mxu0 %v4267_v9 }
 0x7f8   :  { %v1427_v25 = vpop.f32.mrf.mxu1 }
 0x7f9   :  { %v1434_v36 = vadd.f32 %v1427_v25, %v1384_v32 }
 0x7fa   :  { %v3843_v13 = vpop.f32.mrf.mxu1 }
 0x7fc   :  { %v1430_v27 = vpop.f32.mrf.mxu1 }
 0x7fd   :  { %v1435_v45 = vadd.f32 %v1430_v27, %v1385_v40 }
 0x7fe   :  { %v3844_v28 = vpop.f32.mrf.mxu1 }
 0x80a   :  { %v1477_v38 = vpop.f32.mrf.mxu0 }
 0x80b   :  { %v1484_v43 = vadd.f32 %v1477_v38, %v1434_v36 }
 0x80c   :  { %v3849_v44 = vpop.f32.mrf.mxu0 }
 0x80d   :  { %v4746_v34 = vadd.f32 %v1484_v43, %v4455_v35 }
 0x80e   :  { %v1480_v22 = vpop.f32.mrf.mxu0 }
 0x80f   :  { %v1485_v46 = vadd.f32 %v1480_v22, %v1435_v45  ;;  %v1490_v7 = vsel %vm245_vm7, %v4746_v34, 0.0 }
 0x810   :  { %1491 = vadd.xlane.f32.xlu0 %v1490_v7  ;;  %v3850_v42 = vpop.f32.mrf.mxu0 }
 0x811   :  { %v4751_v24 = vadd.f32 %v1485_v46, %v4459_v39 }
 0x813   :  { %v1493_v47 = vsel %vm245_vm7, %v4751_v24, 0.0 }
 0x814   :  { %1494 = vadd.xlane.f32.xlu1 %v1493_v47 }
 0x899   :  { %v1492_v31 = vpop.xlane.xlu0 %1491 }
 0x89a   :  { %v1496_v48 = vmul.f32 0.03125, %v1492_v31 }
 0x89c   :  { %v1498_v49 = vsub.f32 %v4746_v34, %v1496_v48 }
 0x89d   :  { %v1495_v35 = vpop.xlane.xlu1 %1494 }
 0x89e   :  { %v1497_v50 = vmul.f32 0.03125, %v1495_v35  ;;  %v1500_v51 = vmul.f32 %v1498_v49, %v1498_v49 }
 0x8a0   :  { %v1499_v52 = vsub.f32 %v4751_v24, %v1497_v50  ;;  %v1502_v53 = vsel %vm245_vm7, %v1500_v51, 0.0  ;;  %v3487_v51 = vld [vmem:[%s5199_s17] ss:$0 sm:$0xff] }
 0x8a1   :  { %1503 = vadd.xlane.f32.xlu0 %v1502_v53 }
 0x8a2   :  { %v1501_v54 = vmul.f32 %v1499_v52, %v1499_v52 }
 0x8a4   :  { %v1505_v39 = vsel %vm245_vm7, %v1501_v54, 0.0 }
 0x8a5   :  { %1506 = vadd.xlane.f32.xlu0 %v1505_v39 }
 0x92a   :  { %v1504_v58 = vpop.xlane.xlu0 %1503 }
 0x92b   :  { %v1508_v41 = vmul.f32 0.03125, %v1504_v58 }
 0x92d   :  { %v1510_v59 = vadd.f32 1e-05, %v1508_v41 }
 0x92e   :  { %v1507_v61 = vpop.xlane.xlu0 %1506 }
 0x92f   :  { %4155 = vrsqrt.f32 %v1510_v59  ;;  %v1509_v62 = vmul.f32 0.03125, %v1507_v61 }
 0x931   :  { %v1511_v63 = vadd.f32 1e-05, %v1509_v62 }
 0x933   :  { %4157 = vrsqrt.f32 %v1511_v63 }
 0x93c   :  { %v4156_v0 = vpop.eup %4155 }
 0x93d   :  { %v1514_v2 = vmul.f32 %v4156_v0, %v1498_v49 }
 0x93f   :  { %v1522_v6 = vmul.f32 %v3481_v3, %v1514_v2 }
 0x940   :  { %v4158_v37 = vpop.eup %4157 }
 0x941   :  { %v1515_v5 = vmul.f32 %v4158_v37, %v1499_v52  ;;  %v1530_v26 = vadd.f32 %v3482_v8, %v1522_v6 }
 0x943   :  { %v1523_v10 = vmul.f32 %v3481_v3, %v1515_v5 }
 0x945   :  { %v1531_v18 = vadd.f32 %v3482_v8, %v1523_v10  ;;  %v4105_v8 = vld [vmem:[%s5190_s8 + $0x18] sm:$0xff]   ;;  %v4106_v10 = vld [vmem:[%s5190_s8 + $0x10] sm:$0xff]  }
 0x947   :  { %v1532_v11 = vpack.c.bf16 %v1531_v18, %v1530_v26 }
 0x949   :  { %3856 = vmatmul.mubr.msk.bf16.vlgmr.msra.gmra.mxu1 %vm245_vm7, %v1532_v11 }
 0x94a   :  { %3883 = vmatprep.mubr.msk.bf16.mxu1 %vm4268_vm1, %v4267_v9  ;;  %3880 = vmatpush3.bf16.msra.mxu1 %v4105_v8 }
 0x94b   :  { %3881 = vmatprep.subr.bf16.mxu1 %v4267_v9 }
 0x94e   :  { %3882 = vmatpush3.bf16.msra.mxu1 %v4106_v10 }
 0x94f   :  { %3887 = vmatprep.subr.bf16.mxu1 %v4267_v9 }
 0xa09   :  { %v1593_v23 = vpop.f32.mrf.mxu1 }
 0xa0a   :  { %v1594_v25 = vadd.f32 %v3483_v21, %v1593_v23  ;;  %v3499_v23 = vld [vmem:[%s5189_s7 + $0x1] ss:$0 sm:$0xff]  ;;  %s4221_s7 = scalar_lea.vmem %s3418_s6, 256 }
 0xa0b   :  { %v3857_v13 = vpop.f32.mrf.mxu1  ;;  %p4222_p0 = scmp.ne.s32.totalorder %s3418_s6, %s4221_s7  ;;  %p4227_p2 = scmp.lt.s32.totalorder %s4221_s7, %s4221_s7 }
 0xa0c   :  { %v1602_v27 = vmul.f32 0.044715, %v1594_v25  ;;  %v1600_v47 = vmul.f32 0.5, %v1594_v25 }
 0xa0d   :  { %v1596_v28 = vpop.f32.mrf.mxu1  ;;  %p4228_p3 = por %p4227_p2, %p4226_p1 }
 0xa0e   :  { %v1604_v20 = vmul.f32 %v1602_v27, %v1594_v25  ;;  %v1597_v29 = vadd.f32 %v3483_v21, %v1596_v28 }
 0xa0f   :  { %v3858_v32 = vpop.f32.mrf.mxu1  ;;  %p4229_p4 = pnand %p4228_p3, %p4222_p0 }
 0xa10   :  { %v1606_v33 = vmul.f32 %v1604_v20, %v1594_v25  ;;  %v1603_v36 = vmul.f32 0.044715, %v1597_v29  ;;  %v1601_v31 = vmul.f32 0.5, %v1597_v29 }
 0xa12   :  { %v1608_v38 = vadd.f32 %v1606_v33, %v1594_v25  ;;  %v1605_v40 = vmul.f32 %v1603_v36, %v1597_v29 }
 0xa14   :  { %v1610_v43 = vmul.f32 0.7978846, %v1608_v38  ;;  %v1607_v44 = vmul.f32 %v1605_v40, %v1597_v29 }
 0xa16   :  { %4159 = vtanh.f32 %v1610_v43  ;;  %v1609_v45 = vadd.f32 %v1607_v44, %v1597_v29  ;;  %v3505_v29 = vld [vmem:[%s5191_s9 + $0x1] ss:$0 sm:$0xff] }
 0xa18   :  { %v1611_v22 = vmul.f32 0.7978846, %v1609_v45 }
 0xa1a   :  { %4161 = vtanh.f32 %v1611_v22 }
 0xa23   :  { %v4160_v46 = vpop.eup %4159 }
 0xa24   :  { %v1614_v7 = vadd.f32 1.0, %v4160_v46 }
 0xa26   :  { %v1616_v49 = vmul.f32 %v1614_v7, %v1600_v47 }
 0xa27   :  { %v4162_v42 = vpop.eup %4161 }
 0xa28   :  { %v1615_v48 = vadd.f32 1.0, %v4162_v42 }
 0xa2a   :  { %v1617_v35 = vmul.f32 %v1615_v48, %v1601_v31 }
 0xa2c   :  { %v1618_v50 = vpack.c.bf16 %v1617_v35, %v1616_v49 }
 0xa2e   :  { %3876 = vmatmul.mubr.bf16.vlgmr.msra.gmra.mxu0 %v1618_v50 }
 0xa2f   :  { %3907 = vmatprep.mubr.msk.bf16.mxu0 %vm4268_vm1, %v4267_v9 }
 0xaee   :  { %v1724_v52 = vpop.f32.mrf.mxu0 }
 0xaef   :  { %v1725_v53 = vadd.f32 %v3487_v51, %v1724_v52 }
 0xaf0   :  { %v3877_v54 = vpop.f32.mrf.mxu0 }
 0xaf1   :  { %v4817_v39 = vadd.f32 %v1725_v53, %v4746_v34 }
 0xaf2   :  { %v1727_v55 = vpop.f32.mrf.mxu0 }
 0xaf3   :  { %v1728_v56 = vadd.f32 %v3487_v51, %v1727_v55  ;;  %v1737_v58 = vsel %vm245_vm7, %v4817_v39, 0.0 }
 0xaf4   :  { %1738 = vadd.xlane.f32.xlu1 %v1737_v58  ;;  %v3878_v41 = vpop.f32.mrf.mxu0 }
 0xaf5   :  { %v4822_v59 = vadd.f32 %v1728_v56, %v4751_v24 }
 0xaf7   :  { %v1740_v61 = vsel %vm245_vm7, %v4822_v59, 0.0 }
 0xaf8   :  { %1741 = vadd.xlane.f32.xlu0 %v1740_v61 }
 0xb7d   :  { %v1739_v62 = vpop.xlane.xlu1 %1738 }
 0xb7e   :  { %v1743_v63 = vmul.f32 0.03125, %v1739_v62 }
 0xb80   :  { %v1745_v0 = vsub.f32 %v4817_v39, %v1743_v63 }
 0xb81   :  { %v1742_v34 = vpop.xlane.xlu0 %1741 }
 0xb82   :  { %v1744_v2 = vmul.f32 0.03125, %v1742_v34  ;;  %v1747_v3 = vmul.f32 %v1745_v0, %v1745_v0 }
 0xb84   :  { %v1746_v37 = vsub.f32 %v4822_v59, %v1744_v2  ;;  %v1749_v5 = vsel %vm245_vm7, %v1747_v3, 0.0 }
 0xb85   :  { %1750 = vadd.xlane.f32.xlu1 %v1749_v5 }
 0xb86   :  { %v1748_v6 = vmul.f32 %v1746_v37, %v1746_v37 }
 0xb88   :  { %v1752_v24 = vsel %vm245_vm7, %v1748_v6, 0.0 }
 0xb89   :  { %1753 = vadd.xlane.f32.xlu0 %v1752_v24 }
 0xc0e   :  { %v1751_v26 = vpop.xlane.xlu1 %1750 }
 0xc0f   :  { %v1755_v18 = vmul.f32 0.03125, %v1751_v26 }
 0xc11   :  { %v1757_v11 = vadd.f32 1e-05, %v1755_v18 }
 0xc12   :  { %v1754_v4 = vpop.xlane.xlu0 %1753 }
 0xc13   :  { %4163 = vrsqrt.f32 %v1757_v11  ;;  %v1756_v60 = vmul.f32 0.03125, %v1754_v4 }
 0xc15   :  { %v1758_v12 = vadd.f32 1e-05, %v1756_v60 }
 0xc17   :  { %4165 = vrsqrt.f32 %v1758_v12 }
 0xc20   :  { %v4164_v14 = vpop.eup %4163 }
 0xc21   :  { %v1761_v15 = vmul.f32 %v4164_v14, %v1745_v0 }
 0xc23   :  { %v1769_v21 = vmul.f32 %v3498_v16, %v1761_v15 }
 0xc24   :  { %v4166_v17 = vpop.eup %4165 }
 0xc25   :  { %v1762_v19 = vmul.f32 %v4166_v17, %v1746_v37  ;;  %v1777_v13 = vadd.f32 %v3499_v23, %v1769_v21 }
 0xc27   :  { %v1770_v25 = vmul.f32 %v3498_v16, %v1762_v19 }
 0xc29   :  { %v1778_v27 = vadd.f32 %v3499_v23, %v1770_v25 }
 0xc2b   :  { %v1779_v28 = vpack.c.bf16 %v1778_v27, %v1777_v13 }
 0xc2d   :  { %3884 = vmatmul.mubr.msk.bf16.vlgmr.msra.gmra.mxu1 %vm245_vm7, %v1779_v28 }
 0xc2e   :  { %3889 = vmatprep.mubr.msk.bf16.mxu1 %vm4268_vm1, %v4267_v9 }
 0xced   :  { %v1842_v20 = vpop.f32.mrf.mxu1 }
 0xcee   :  { %v1843_v36 = vadd.f32 %v3505_v29, %v1842_v20 }
 0xcef   :  { %v3885_v32 = vpop.f32.mrf.mxu1 }
 0xcf0   :  { %v1869_v45 = vpack.c.bf16 %v1843_v36, %v1843_v36 }
 0xcf1   :  { %v1845_v33 = vpop.f32.mrf.mxu1 }
 0xcf2   :  { %v1846_v38 = vadd.f32 %v3505_v29, %v1845_v33 }
 0xcf3   :  { %v3886_v40 = vpop.f32.mrf.mxu1 }
 0xcf4   :  { %v4074_v43 = vpack.i.bf16 %v1846_v38, %v1843_v36  ;;  %v1870_v44 = vpack.c.bf16 %v1846_v38, %v1846_v38 }
 0xcf6   :  { %4075 = vrot.lane.b32.xlu0 %v4074_v43, %s4272_s4  ;;  %4070 = vrot.lane.b32.xlu1 %v4074_v43, %s4270_s30 }
 0xcfa   :  { %4080 = vrot.lane.b32.xlu1 %v4074_v43, %s4273_s22  ;;  %1927 = vrot.lane.b32.xlu0 %v1870_v44, %s4271_s5 }
 0xcfe   :  { %1878 = vrot.lane.b32.xlu1 %v1869_v45, %s4271_s5 }
 0xd68   :  { %v4076_v22 = vpop.permute.xlu0 %4075  ;;  %v4071_v46 = vpop.permute.xlu1 %4070 }
 0xd69   :  { %v4073_v7 = vunpack.i.h.bf16 %v4071_v46  ;;  %v4072_v42 = vunpack.i.l.bf16 %v4071_v46  ;;  %v4078_v47 = vunpack.i.h.bf16 %v4076_v22  ;;  %v4077_v31 = vunpack.i.l.bf16 %v4076_v22 }
 0xd6b   :  { %v4855_v48 = vpack.c.bf16 %v4073_v7, %v4073_v7  ;;  %v4857_v49 = vpack.c.bf16 %v4072_v42, %v4072_v42  ;;  %v4863_v50 = vpack.c.bf16 %v4078_v47, %v4078_v47  ;;  %v4865_v51 = vpack.c.bf16 %v4077_v31, %v4077_v31 }
 0xd6c   :  { %v4081_v35 = vpop.permute.xlu1 %4080  ;;  %v1928_v41 = vpop.permute.xlu0 %1927 }
 0xd6d   :  { %1976 = vrot.lane.b32.xlu1 %v4857_v49, %s4271_s5  ;;  %2025 = vrot.lane.b32.xlu0 %v4855_v48, %s4271_s5  ;;  %v4083_v52 = vunpack.i.h.bf16 %v4081_v35  ;;  %v4082_v53 = vunpack.i.l.bf16 %v4081_v35  ;;  %v1933_v61 = vsel %vm388_vm8, %v1928_v41, 0 }
 0xd6f   :  { %v4872_v56 = vpack.c.bf16 %v4083_v52, %v4083_v52  ;;  %v4874_v58 = vpack.c.bf16 %v4082_v53, %v4082_v53 }
 0xd70   :  { %v1879_v54 = vpop.permute.xlu1 %1878 }
 0xd71   :  { %v1884_v55 = vsel %vm388_vm8, %v1879_v54, 0  ;;  %2074 = vrot.lane.b32.xlu1 %v4865_v51, %s4271_s5  ;;  %2123 = vrot.lane.b32.xlu0 %v4863_v50, %s4271_s5 }
 0xd72   :  { %3888 = vmatpush3.bf16.xpose.msra.mxu1 %v1884_v55 }
 0xd73   :  { %3893 = vmatprep.subr.bf16.mxu1 %v4267_v9 }
 0xd75   :  { %2172 = vrot.lane.b32.xlu1 %v4874_v58, %s4271_s5  ;;  %2221 = vrot.lane.b32.xlu0 %v4872_v56, %s4271_s5 }
 0xd79   :  { %3890 = vmatmul.mubr.msk.bf16.vlgmr.msra.gmra.mxu1 %vm388_vm8, %v1869_v45  ;;  %2429 = vrot.lane.b32.xlu1 %v1870_v44, %s4274_s23 }
 0xd7a   :  { %2381 = vrot.lane.b32.xlu0 %v1869_v45, %s4274_s23  ;;  %3894 = vmatpush3.bf16.xpose.msra.mxu1 %v1933_v61 }
 0xd7b   :  { %3895 = vmatprep.mubr.msk.bf16.mxu1 %vm4268_vm1, %v4267_v9  ;;  %3899 = vmatprep.subr.bf16.mxu1 %v4267_v9 }
 0xd81   :  { %3896 = vmatmul.mubr.msk.bf16.vlgmr.msra.gmra.mxu1 %vm388_vm8, %v1870_v44 }
 0xd82   :  { %3901 = vmatprep.mubr.msk.bf16.mxu1 %vm4268_vm1, %v4267_v9 }
 0xddf   :  { %v1977_v62 = vpop.permute.xlu1 %1976  ;;  %v2026_v63 = vpop.permute.xlu0 %2025 }
 0xde0   :  { %v1982_v0 = vsel %vm388_vm8, %v1977_v62, 0  ;;  %v2031_v34 = vsel %vm388_vm8, %v2026_v63, 0 }
 0xde1   :  { %3900 = vmatpush3.bf16.xpose.msra.mxu1 %v1982_v0  ;;  %3906 = vmatpush3.bf16.xpose.msra.mxu0 %v2031_v34 }
 0xde2   :  { %3911 = vmatprep.subr.bf16.mxu1 %v4267_v9  ;;  %3917 = vmatprep.subr.bf16.mxu0 %v4267_v9 }
 0xde3   :  { %v2075_v2 = vpop.permute.xlu1 %2074  ;;  %v2124_v3 = vpop.permute.xlu0 %2123 }
 0xde4   :  { %v2080_v37 = vsel %vm388_vm8, %v2075_v2, 0  ;;  %v2129_v5 = vsel %vm388_vm8, %v2124_v3, 0 }
 0xde7   :  { %v2173_v6 = vpop.permute.xlu1 %2172  ;;  %v2222_v24 = vpop.permute.xlu0 %2221 }
 0xde8   :  { %3902 = vmatmul.mubr.msk.bf16.vlgmr.msra.gmra.mxu1 %vm388_vm8, %v4857_v49  ;;  %3908 = vmatmul.mubr.msk.bf16.vlgmr.msra.gmra.mxu0 %vm388_vm8, %v4855_v48  ;;  %v2178_v8 = vsel %vm388_vm8, %v2173_v6, 0  ;;  %v2227_v10 = vsel %vm388_vm8, %v2222_v24, 0 }
 0xde9   :  { %3912 = vmatpush3.bf16.xpose.msra.mxu1 %v2080_v37  ;;  %3918 = vmatpush3.bf16.xpose.msra.mxu0 %v2129_v5 }
 0xdea   :  { %3913 = vmatprep.mubr.msk.bf16.mxu1 %vm4268_vm1, %v4267_v9  ;;  %3919 = vmatprep.mubr.msk.bf16.mxu0 %vm4268_vm1, %v4267_v9 }
 0xdeb   :  { %3923 = vmatprep.subr.bf16.mxu1 %v4267_v9  ;;  %3929 = vmatprep.subr.bf16.mxu0 %v4267_v9  ;;  %v2430_v26 = vpop.permute.xlu1 %2429 }
 0xdec   :  { %v2382_v18 = vpop.permute.xlu0 %2381  ;;  %v2435_v11 = vsel %vm895_vm14, %v2430_v26, 0 }
 0xded   :  { %v2387_v4 = vsel %vm895_vm14, %v2382_v18, 0 }
 0xdf0   :  { %3914 = vmatmul.mubr.msk.bf16.vlgmr.msra.gmra.mxu1 %vm388_vm8, %v4865_v51  ;;  %3920 = vmatmul.mubr.msk.bf16.vlgmr.msra.gmra.mxu0 %vm388_vm8, %v4863_v50 }
 0xdf1   :  { %3924 = vmatpush3.bf16.xpose.msra.mxu1 %v2178_v8  ;;  %3930 = vmatpush3.bf16.xpose.msra.mxu0 %v2227_v10 }
 0xdf2   :  { %3925 = vmatprep.mubr.msk.bf16.mxu1 %vm4268_vm1, %v4267_v9  ;;  %3931 = vmatprep.mubr.msk.bf16.mxu0 %vm4268_vm1, %v4267_v9 }
 0xdf3   :  { %3935 = vmatprep.subr.bf16.mxu1 %v4267_v9  ;;  %3941 = vmatprep.subr.bf16.mxu0 %v4267_v9 }
 0xdf8   :  { %3926 = vmatmul.mubr.msk.bf16.vlgmr.msra.gmra.mxu1 %vm388_vm8, %v4874_v58  ;;  %3932 = vmatmul.mubr.msk.bf16.vlgmr.msra.gmra.mxu0 %vm388_vm8, %v4872_v56 }
 0xdf9   :  { %3936 = vmatpush3.bf16.msra.mxu1 %v2387_v4  ;;  %3942 = vmatpush3.bf16.msra.mxu0 %v2435_v11 }
 0xdfa   :  { %3937 = vmatprep.mubr.msk.bf16.mxu1 %vm4268_vm1, %v4267_v9  ;;  %3943 = vmatprep.mubr.msk.bf16.mxu0 %vm4268_vm1, %v4267_v9 }
 0xdfb   :  { %3947 = vmatprep.subr.bf16.mxu1 %v4267_v9  ;;  %3953 = vmatprep.subr.bf16.mxu0 %v4267_v9 }
 0xe39   :  { %v1920_v60 = vpop.f32.mrf.mxu1 }
 0xe3a   :  { %v2269_v12 = vmul.f32 0.35355338, %v1920_v60 }
 0xe3b   :  { %v3891_v14 = vpop.f32.mrf.mxu1 }
 0xe3c   :  { %v4932_v15 = vadd.f32 %v2269_v12, %v4584_v57 }
 0xe3d   :  { %v1923_v16 = vpop.f32.mrf.mxu1 }
 0xe3e   :  { %v2285_v17 = vsel %vm388_vm8, %v4932_v15, -inf }
 0xe3f   :  { %2286 = vmax.xlane.f32.xlu1 %v2285_v17  ;;  %v3892_v19 = vpop.f32.mrf.mxu1 }
 0xe41   :  { %v1969_v21 = vpop.f32.mrf.mxu1 }
 0xe42   :  { %v2270_v23 = vmul.f32 0.35355338, %v1969_v21 }
 0xe43   :  { %v3897_v25 = vpop.f32.mrf.mxu1 }
 0xe44   :  { %v2278_v13 = vadd.f32 %v2270_v23, %v4593_v1 }
 0xe45   :  { %v1972_v27 = vpop.f32.mrf.mxu1 }
 0xe46   :  { %v2288_v28 = vsel %vm388_vm8, %v2278_v13, -inf }
 0xe47   :  { %2289 = vmax.xlane.f32.xlu0 %v2288_v28  ;;  %v3898_v20 = vpop.f32.mrf.mxu1 }
 0xea8   :  { %v2018_v29 = vpop.f32.mrf.mxu1  ;;  %v2067_v32 = vpop.f32.mrf.mxu0 }
 0xea9   :  { %v2271_v33 = vmul.f32 0.35355338, %v2018_v29  ;;  %v2272_v36 = vmul.f32 0.35355338, %v2067_v32 }
 0xeaa   :  { %v3903_v38 = vpop.f32.mrf.mxu1  ;;  %v3909_v40 = vpop.f32.mrf.mxu0 }
 0xeab   :  { %v4939_v43 = vadd.f32 %v2271_v33, %v4584_v57  ;;  %v4942_v44 = vadd.f32 %v2272_v36, %v4593_v1 }
 0xeac   :  { %v2021_v45 = vpop.f32.mrf.mxu1  ;;  %v2070_v22 = vpop.f32.mrf.mxu0 }
 0xead   :  { %v2291_v46 = vsel %vm388_vm8, %v4939_v43, -inf  ;;  %v2294_v7 = vsel %vm388_vm8, %v4942_v44, -inf }
 0xeae   :  { %2292 = vmax.xlane.f32.xlu0 %v2291_v46  ;;  %v3904_v42 = vpop.f32.mrf.mxu1  ;;  %2295 = vmax.xlane.f32.xlu1 %v2294_v7  ;;  %v3910_v47 = vpop.f32.mrf.mxu0 }
 0xeb0   :  { %v2116_v31 = vpop.f32.mrf.mxu1  ;;  %v2165_v35 = vpop.f32.mrf.mxu0 }
 0xeb1   :  { %v2273_v52 = vmul.f32 0.35355338, %v2116_v31  ;;  %v2274_v53 = vmul.f32 0.35355338, %v2165_v35 }
 0xeb2   :  { %v3915_v54 = vpop.f32.mrf.mxu1  ;;  %v3921_v55 = vpop.f32.mrf.mxu0 }
 0xeb3   :  { %v4949_v41 = vadd.f32 %v2273_v52, %v4584_v57  ;;  %v2282_v61 = vadd.f32 %v2274_v53, %v4593_v1 }
 0xeb4   :  { %v2119_v62 = vpop.f32.mrf.mxu1  ;;  %v2168_v63 = vpop.f32.mrf.mxu0 }
 0xeb5   :  { %v2297_v0 = vsel %vm388_vm8, %v4949_v41, -inf  ;;  %v2300_v34 = vsel %vm388_vm8, %v2282_v61, -inf }
 0xeb6   :  { %2298 = vmax.xlane.f32.xlu0 %v2297_v0  ;;  %v3916_v2 = vpop.f32.mrf.mxu1  ;;  %2301 = vmax.xlane.f32.xlu1 %v2300_v34  ;;  %v3922_v3 = vpop.f32.mrf.mxu0 }
 0xeb8   :  { %v2214_v37 = vpop.f32.mrf.mxu1  ;;  %v2263_v5 = vpop.f32.mrf.mxu0 }
 0xeb9   :  { %v2275_v6 = vmul.f32 0.35355338, %v2214_v37  ;;  %v2276_v24 = vmul.f32 0.35355338, %v2263_v5 }
 0xeba   :  { %v3927_v8 = vpop.f32.mrf.mxu1  ;;  %v3933_v10 = vpop.f32.mrf.mxu0 }
 0xebb   :  { %v4956_v26 = vadd.f32 %v2275_v6, %v4584_v57  ;;  %v2284_v18 = vadd.f32 %v2276_v24, %v4593_v1 }
 0xebc   :  { %v2217_v11 = vpop.f32.mrf.mxu1  ;;  %v2266_v4 = vpop.f32.mrf.mxu0 }
 0xebd   :  { %v2303_v60 = vsel %vm388_vm8, %v4956_v26, -inf  ;;  %v2306_v12 = vsel %vm388_vm8, %v2284_v18, -inf }
 0xebe   :  { %2304 = vmax.xlane.f32.xlu0 %v2303_v60  ;;  %v3928_v14 = vpop.f32.mrf.mxu1  ;;  %2307 = vmax.xlane.f32.xlu1 %v2306_v12  ;;  %v3934_v16 = vpop.f32.mrf.mxu0 }
 0xec8   :  { %v2287_v57 = vpop.xlane.xlu1 %2286 }
 0xec9   :  { %v2309_v1 = vsub.f32 %v4932_v15, %v2287_v57 }
 0xecb   :  { %v2317_v21 = vmul.f32 1.442695, %v2309_v1 }
 0xecd   :  { %4167 = vpow2.f32 %v2317_v21 }
 0xecf   :  { %2477 = vrot.lane.b32.xlu1 %v4857_v49, %s4274_s23 }
 0xed0   :  { %v2290_v17 = vpop.xlane.xlu0 %2289 }
 0xed1   :  { %v2310_v19 = vsub.f32 %v2278_v13, %v2290_v17 }
 0xed3   :  { %v2319_v23 = vmul.f32 1.442695, %v2310_v19 }
 0xed4   :  { %2525 = vrot.lane.b32.xlu0 %v4855_v48, %s4274_s23 }
 0xed5   :  { %4169 = vpow2.f32 %v2319_v23 }
 0xeda   :  { %v4168_v25 = vpop.eup %4167 }
 0xedb   :  { %v2333_v28 = vsel %vm388_vm8, %v4168_v25, 0.0 }
 0xee2   :  { %v4170_v27 = vpop.eup %4169 }
 0xee3   :  { %v2336_v20 = vsel %vm388_vm8, %v4170_v27, 0.0 }
 0xef3   :  { %2334 = vadd.xlane.f32.xlu0 %v2333_v28  ;;  %2337 = vadd.xlane.f32.xlu1 %v2336_v20 }
 0xf04   :  { %2573 = vrot.lane.b32.xlu1 %v4865_v51, %s4274_s23 }
 0xf37   :  { %v2293_v48 = vpop.xlane.xlu0 %2292  ;;  %v2296_v49 = vpop.xlane.xlu1 %2295 }
 0xf38   :  { %v2311_v15 = vsub.f32 %v4939_v43, %v2293_v48  ;;  %v2312_v13 = vsub.f32 %v4942_v44, %v2296_v49 }
 0xf3a   :  { %v2321_v29 = vmul.f32 1.442695, %v2311_v15  ;;  %v2323_v32 = vmul.f32 1.442695, %v2312_v13 }
 0xf3c   :  { %4171 = vpow2.f32 %v2321_v29 }
 0xf3d   :  { %4173 = vpow2.f32 %v2323_v32 }
 0xf3f   :  { %v2302_v33 = vpop.xlane.xlu1 %2301  ;;  %v2299_v35 = vpop.xlane.xlu0 %2298 }
 0xf40   :  { %v2314_v36 = vsub.f32 %v2282_v61, %v2302_v33  ;;  %v2313_v52 = vsub.f32 %v4949_v41, %v2299_v35 }
 0xf42   :  { %v2327_v38 = vmul.f32 1.442695, %v2314_v36  ;;  %v2325_v54 = vmul.f32 1.442695, %v2313_v52 }
 0xf44   :  { %4175 = vpow2.f32 %v2327_v38 }
 0xf47   :  { %v2308_v40 = vpop.xlane.xlu1 %2307  ;;  %v2305_v53 = vpop.xlane.xlu0 %2304 }
 0xf48   :  { %v2316_v45 = vsub.f32 %v2284_v18, %v2308_v40  ;;  %v2315_v55 = vsub.f32 %v4956_v26, %v2305_v53 }
 0xf49   :  { %v4172_v22 = vpop.eup %4171 }
 0xf4a   :  { %v4174_v46 = vpop.eup %4173  ;;  %v2331_v7 = vmul.f32 1.442695, %v2316_v45  ;;  %v2339_v51 = vsel %vm388_vm8, %v4172_v22, 0.0  ;;  %v2329_v61 = vmul.f32 1.442695, %v2315_v55 }
 0xf4b   :  { %2340 = vadd.xlane.f32.xlu0 %v2339_v51  ;;  %v2342_v43 = vsel %vm388_vm8, %v4174_v46, 0.0  ;;  %v2526_v62 = vpop.permute.xlu0 %2525  ;;  %v2478_v63 = vpop.permute.xlu1 %2477 }
 0xf4c   :  { %2343 = vadd.xlane.f32.xlu1 %v2342_v43  ;;  %4177 = vpow2.f32 %v2331_v7  ;;  %v2483_v10 = vsel %vm895_vm14, %v2478_v63, 0  ;;  %v2531_v26 = vsel %vm895_vm14, %v2526_v62, 0  ;;  %v3525_v7 = vld [vmem:[%s5192_s10 + $0x10] sm:$0xf]  ;;  %v3527_v63 = vld [vmem:[%s5192_s10 + $0x18] sm:$0xf] }
 0xf4d   :  { %4179 = vpow2.f32 %v2325_v54  ;;  %v2777_v43 = vsel %vm895_vm14, %v3525_v7, 0 }
 0xf4e   :  { %4181 = vpow2.f32 %v2329_v61 }
 0xf51   :  { %v4975_v44 = vpop.eup %4175 }
 0xf52   :  { %v2348_v42 = vsel %vm388_vm8, %v4975_v44, 0.0 }
 0xf53   :  { %2349 = vadd.xlane.f32.xlu1 %v2348_v42 }
 0xf59   :  { %v4979_v47 = vpop.eup %4177 }
 0xf5a   :  { %v2354_v31 = vsel %vm388_vm8, %v4979_v47, 0.0  ;;  %v4989_v0 = vpop.eup %4179 }
 0xf5b   :  { %2355 = vadd.xlane.f32.xlu1 %v2354_v31  ;;  %v4993_v41 = vpop.eup %4181 }
 0xf61   :  { %2621 = vrot.lane.b32.xlu0 %v4863_v50, %s4274_s23  ;;  %v2345_v50 = vsel %vm388_vm8, %v4989_v0, 0.0 }
 0xf6c   :  { %2669 = vrot.lane.b32.xlu1 %v4874_v58, %s4274_s23  ;;  %v2351_v58 = vsel %vm388_vm8, %v4993_v41, 0.0 }
 0xf7c   :  { %v2335_v34 = vpop.xlane.xlu0 %2334  ;;  %v2338_v2 = vpop.xlane.xlu1 %2337 }
 0xf7d   :  { %4183 = vrcp.f32 %v2335_v34  ;;  %v3528_v34 = vld [vmem:[%s5192_s10 + $0x1c] sm:$0xf] }
 0xf7e   :  { %4185 = vrcp.f32 %v2338_v2 }
 0xf80   :  { %2346 = vadd.xlane.f32.xlu0 %v2345_v50  ;;  %v2574_v18 = vpop.permute.xlu1 %2573 }
 0xf81   :  { %v2579_v21 = vsel %vm895_vm14, %v2574_v18, 0 }
 0xf84   :  { %2352 = vadd.xlane.f32.xlu0 %v2351_v58 }
 0xf8a   :  { %v4184_v3 = vpop.eup %4183 }
 0xf8b   :  { %v4186_v37 = vpop.eup %4185  ;;  %v2365_v5 = vmul.f32 %v4184_v3, %v4168_v25  ;;  %v2933_v3 = vsel %vm895_vm14, %v3528_v34, 0 }
 0xf8c   :  { %v2366_v6 = vmul.f32 %v4186_v37, %v4170_v27 }
 0xf8d   :  { %v2373_v24 = vpack.c.bf16 %v2365_v5, %v2365_v5 }
 0xf8e   :  { %v2374_v8 = vpack.c.bf16 %v2366_v6, %v2366_v6 }
 0xf8f   :  { %3938 = vmatmul.mubr.msk.bf16.vlgmr.msra.gmra.mxu1 %vm388_vm8, %v2373_v24 }
 0xf90   :  { %3944 = vmatmul.mubr.msk.bf16.vlgmr.msra.gmra.mxu0 %vm388_vm8, %v2374_v8  ;;  %3948 = vmatpush3.bf16.msra.mxu1 %v2483_v10 }
 0xf91   :  { %3954 = vmatpush3.bf16.msra.mxu0 %v2531_v26  ;;  %3949 = vmatprep.mubr.msk.bf16.mxu1 %vm4268_vm1, %v4267_v9 }
 0xf92   :  { %3955 = vmatprep.mubr.msk.bf16.mxu0 %vm4268_vm1, %v4267_v9  ;;  %3959 = vmatprep.subr.bf16.mxu1 %v4267_v9 }
 0xf93   :  { %3965 = vmatprep.subr.bf16.mxu0 %v4267_v9 }
 0xf9a   :  { %2717 = vrot.lane.b32.xlu0 %v4872_v56, %s4274_s23 }
 0xfd4   :  { %v2341_v11 = vpop.xlane.xlu0 %2340 }
 0xfd5   :  { %4187 = vrcp.f32 %v2341_v11  ;;  %v2344_v4 = vpop.xlane.xlu1 %2343 }
 0xfd6   :  { %4189 = vrcp.f32 %v2344_v4 }
 0xfd8   :  { %v2622_v17 = vpop.permute.xlu0 %2621 }
 0xfd9   :  { %v2627_v56 = vsel %vm895_vm14, %v2622_v17, 0 }
 0xfdc   :  { %v2350_v60 = vpop.xlane.xlu1 %2349 }
 0xfdd   :  { %4191 = vrcp.f32 %v2350_v60 }
 0xfe2   :  { %v4188_v12 = vpop.eup %4187 }
 0xfe3   :  { %v4190_v14 = vpop.eup %4189  ;;  %v2367_v16 = vmul.f32 %v4188_v12, %v4172_v22 }
 0xfe4   :  { %v2368_v57 = vmul.f32 %v4190_v14, %v4174_v46  ;;  %v2356_v28 = vpop.xlane.xlu1 %2355 }
 0xfe5   :  { %v2375_v1 = vpack.c.bf16 %v2367_v16, %v2367_v16  ;;  %4193 = vrcp.f32 %v2356_v28 }
 0xfe6   :  { %v2376_v19 = vpack.c.bf16 %v2368_v57, %v2368_v57 }
 0xfe7   :  { %3950 = vmatmul.mubr.msk.bf16.vlgmr.msra.gmra.mxu1 %vm388_vm8, %v2375_v1 }
 0xfe8   :  { %3956 = vmatmul.mubr.msk.bf16.vlgmr.msra.gmra.mxu0 %vm388_vm8, %v2376_v19  ;;  %3960 = vmatpush3.bf16.msra.mxu1 %v2579_v21  ;;  %v2670_v38 = vpop.permute.xlu1 %2669 }
 0xfe9   :  { %3966 = vmatpush3.bf16.msra.mxu0 %v2627_v56  ;;  %3967 = vmatprep.mubr.msk.bf16.mxu0 %vm4268_vm1, %v4267_v9  ;;  %v2675_v22 = vsel %vm895_vm14, %v2670_v38, 0 }
 0xfea   :  { %3977 = vmatprep.subr.bf16.mxu0 %v4267_v9  ;;  %3961 = vmatprep.mubr.msk.bf16.mxu1 %vm4268_vm1, %v4267_v9  ;;  %v4192_v23 = vpop.eup %4191 }
 0xfeb   :  { %3971 = vmatprep.subr.bf16.mxu1 %v4267_v9  ;;  %v2370_v25 = vmul.f32 %v4192_v23, %v4975_v44  ;;  %v3526_v44 = vld [vmem:[%s5192_s10 + $0x14] sm:$0xf] }
 0xfec   :  { %v2833_v42 = vsel %vm895_vm14, %v3526_v44, 0 }
 0xfed   :  { %v2378_v27 = vpack.c.bf16 %v2370_v25, %v2370_v25 }
 0xff0   :  { %3968 = vmatmul.mubr.msk.bf16.vlgmr.msra.gmra.mxu0 %vm388_vm8, %v2378_v27 }
 0xff1   :  { %3979 = vmatprep.mubr.msk.bf16.mxu0 %vm4268_vm1, %v4267_v9 }
 0xff2   :  { %v4194_v48 = vpop.eup %4193 }
 0xff3   :  { %v2372_v15 = vmul.f32 %v4194_v48, %v4979_v47 }
 0xff5   :  { %v2380_v32 = vpack.c.bf16 %v2372_v15, %v2372_v15 }
0x1009   :  { %v2347_v20 = vpop.xlane.xlu0 %2346 }
0x100a   :  { %4195 = vrcp.f32 %v2347_v20 }
0x100d   :  { %v2353_v49 = vpop.xlane.xlu0 %2352 }
0x100e   :  { %4197 = vrcp.f32 %v2353_v49 }
0x1011   :  { %v2718_v13 = vpop.permute.xlu0 %2717 }
0x1012   :  { %v2723_v29 = vsel %vm895_vm14, %v2718_v13, 0 }
0x1013   :  { %3978 = vmatpush3.bf16.msra.mxu0 %v2723_v29 }
0x1014   :  { %3989 = vmatprep.subr.bf16.mxu0 %v4267_v9 }
0x1016   :  { %3980 = vmatmul.mubr.msk.bf16.vlgmr.msra.gmra.mxu0 %vm388_vm8, %v2380_v32 }
0x1017   :  { %v4196_v33 = vpop.eup %4195  ;;  %3991 = vmatprep.mubr.msk.bf16.mxu0 %vm4268_vm1, %v4267_v9  ;;  %3990 = vmatpush3.bf16.msra.mxu0 %v2833_v42 }
0x1018   :  { %v2369_v36 = vmul.f32 %v4196_v33, %v4989_v0  ;;  %4001 = vmatprep.subr.bf16.mxu0 %v4267_v9  ;;  %v2883_v0 = vsel %vm895_vm14, %v3527_v63, 0  ;;  %v3531_v33 = vld [vmem:[%s5193_s11 + $0x1] ss:$0 sm:$0xff] }
0x101a   :  { %v2377_v40 = vpack.c.bf16 %v2369_v36, %v2369_v36 }
0x101b   :  { %v4198_v45 = vpop.eup %4197 }
0x101c   :  { %3962 = vmatmul.mubr.msk.bf16.vlgmr.msra.gmra.mxu1 %vm388_vm8, %v2377_v40  ;;  %v2371_v46 = vmul.f32 %v4198_v45, %v4993_v41 }
0x101d   :  { %3972 = vmatpush3.bf16.msra.mxu1 %v2675_v22  ;;  %3973 = vmatprep.mubr.msk.bf16.mxu1 %vm4268_vm1, %v4267_v9 }
0x101e   :  { %3983 = vmatprep.subr.bf16.mxu1 %v4267_v9  ;;  %v2379_v51 = vpack.c.bf16 %v2371_v46, %v2371_v46 }
0x1024   :  { %3974 = vmatmul.mubr.msk.bf16.vlgmr.msra.gmra.mxu1 %vm388_vm8, %v2379_v51 }
0x1025   :  { %3984 = vmatpush3.bf16.msra.mxu1 %v2777_v43  ;;  %3985 = vmatprep.mubr.msk.bf16.mxu1 %vm4268_vm1, %v4267_v9 }
0x1026   :  { %3995 = vmatprep.subr.bf16.mxu1 %v4267_v9 }
0x104f   :  { %v2423_v47 = vpop.f32.mrf.mxu1 }
0x1050   :  { %v2471_v31 = vpop.f32.mrf.mxu0 }
0x1051   :  { %v2772_v35 = vpack.c.bf16 %v2471_v31, %v2423_v47  ;;  %v3939_v52 = vpop.f32.mrf.mxu1 }
0x1052   :  { %v3945_v53 = vpop.f32.mrf.mxu0 }
0x1053   :  { %3986 = vmatmul.mubr.msk.bf16.vlgmr.msra.gmra.mxu1 %vm388_vm8, %v2772_v35  ;;  %v2426_v54 = vpop.f32.mrf.mxu1 }
0x1054   :  { %v2474_v55 = vpop.f32.mrf.mxu0  ;;  %3997 = vmatprep.mubr.msk.bf16.mxu1 %vm4268_vm1, %v4267_v9  ;;  %3996 = vmatpush3.bf16.msra.mxu1 %v2883_v0 }
0x1055   :  { %v3940_v61 = vpop.f32.mrf.mxu1  ;;  %4007 = vmatprep.subr.bf16.mxu1 %v4267_v9 }
0x1056   :  { %v3946_v62 = vpop.f32.mrf.mxu0 }
0x10a7   :  { %v2519_v2 = vpop.f32.mrf.mxu1 }
0x10a8   :  { %v2567_v50 = vpop.f32.mrf.mxu0 }
0x10a9   :  { %v2828_v41 = vpack.c.bf16 %v2567_v50, %v2519_v2  ;;  %v3951_v58 = vpop.f32.mrf.mxu1 }
0x10aa   :  { %v3957_v37 = vpop.f32.mrf.mxu0 }
0x10ab   :  { %3992 = vmatmul.mubr.msk.bf16.vlgmr.msra.gmra.mxu0 %vm388_vm8, %v2828_v41  ;;  %v2522_v5 = vpop.f32.mrf.mxu1  ;;  %v4107_v37 = vld [vmem:[%s5196_s14 + $0x18] sm:$0xff]  }
0x10ac   :  { %v2570_v6 = vpop.f32.mrf.mxu0  ;;  %4002 = vmatpush3.bf16.msra.mxu0 %v2933_v3  ;;  %4003 = vmatprep.mubr.msk.bf16.mxu0 %vm4268_vm1, %v4267_v9  ;;  %v4108_v5 = vld [vmem:[%s5196_s14 + $0x10] sm:$0xff]  }
0x10ad   :  { %v3952_v24 = vpop.f32.mrf.mxu1  ;;  %4015 = vmatprep.subr.bf16.mxu0 %v4267_v9 }
0x10ae   :  { %v3958_v8 = vpop.f32.mrf.mxu0 }
0x10b0   :  { %v2663_v10 = vpop.f32.mrf.mxu0 }
0x10b2   :  { %v3969_v26 = vpop.f32.mrf.mxu0 }
0x10b4   :  { %v2666_v18 = vpop.f32.mrf.mxu0 }
0x10b6   :  { %v3970_v11 = vpop.f32.mrf.mxu0 }
0x10d6   :  { %v2759_v4 = vpop.f32.mrf.mxu0 }
0x10d8   :  { %v3981_v60 = vpop.f32.mrf.mxu0 }
0x10d9   :  { %v3537_v60 = vld [vmem:[%s5194_s12 + $0x1] ss:$0 sm:$0xff] }
0x10da   :  { %v2762_v12 = vpop.f32.mrf.mxu0 }
0x10dc   :  { %v2615_v14 = vpop.f32.mrf.mxu1  ;;  %v3982_v16 = vpop.f32.mrf.mxu0 }
0x10dd   :  { %v2878_v57 = vpack.c.bf16 %v2663_v10, %v2615_v14 }
0x10de   :  { %v3963_v17 = vpop.f32.mrf.mxu1 }
0x10df   :  { %3998 = vmatmul.mubr.msk.bf16.vlgmr.msra.gmra.mxu1 %vm388_vm8, %v2878_v57  ;;  %v3538_v57 = vld [vmem:[%s5195_s13 + $0x1] ss:$0 sm:$0xff] }
0x10e0   :  { %v2618_v1 = vpop.f32.mrf.mxu1  ;;  %4011 = vmatprep.mubr.msk.bf16.mxu1 %vm4268_vm1, %v4267_v9  ;;  %4008 = vmatpush3.bf16.msra.mxu1 %v4107_v37 }
0x10e1   :  { %4009 = vmatprep.subr.bf16.mxu1 %v4267_v9 }
0x10e2   :  { %v3964_v19 = vpop.f32.mrf.mxu1 }
0x10e4   :  { %v2711_v21 = vpop.f32.mrf.mxu1  ;;  %4010 = vmatpush3.bf16.msra.mxu1 %v4108_v5 }
0x10e5   :  { %v2928_v56 = vpack.c.bf16 %v2759_v4, %v2711_v21  ;;  %4035 = vmatprep.subr.bf16.mxu1 %v4267_v9 }
0x10e6   :  { %v3975_v23 = vpop.f32.mrf.mxu1 }
0x10e7   :  { %4004 = vmatmul.mubr.msk.bf16.vlgmr.msra.gmra.mxu0 %vm388_vm8, %v2928_v56  ;;  %v4109_v56 = vld [vmem:[%s5198_s16 + $0x78] sm:$0xff]   ;;  %v4110_v23 = vld [vmem:[%s5198_s16 + $0x70] sm:$0xff]  }
0x10e8   :  { %v2714_v25 = vpop.f32.mrf.mxu1  ;;  %4031 = vmatprep.mubr.msk.bf16.mxu0 %vm4268_vm1, %v4267_v9  ;;  %4016 = vmatpush3.bf16.msra.mxu0 %v4109_v56 }
0x10e9   :  { %4017 = vmatprep.subr.bf16.mxu0 %v4267_v9  ;;  %v4111_v25 = vld [vmem:[%s5198_s16 + $0x68] sm:$0xff]  }
0x10ea   :  { %v3976_v27 = vpop.f32.mrf.mxu1 }
0x10eb   :  { %v4112_v27 = vld [vmem:[%s5198_s16 + $0x60] sm:$0xff]  }
0x10ec   :  { %4018 = vmatpush3.bf16.msra.mxu0 %v4110_v23 }
0x10ed   :  { %4019 = vmatprep.subr.bf16.mxu0 %v4267_v9 }
0x10f0   :  { %4020 = vmatpush3.bf16.msra.mxu0 %v4111_v25 }
0x10f1   :  { %4021 = vmatprep.subr.bf16.mxu0 %v4267_v9 }
0x10f4   :  { %4022 = vmatpush3.bf16.msra.mxu0 %v4112_v27  ;;  %v3574_v27 = vld [vmem:[%s5200_s18] ss:$0 sm:$0xff] }
0x10f5   :  { %4023 = vmatprep.subr.bf16.mxu0 %v4267_v9 }
0x1113   :  { %v2813_v28 = vpop.f32.mrf.mxu1 }
0x1114   :  { %v2826_v40 = vadd.f32 %v3531_v33, %v2813_v28  ;;  %v4113_v28 = vld [vmem:[%s5198_s16 + $0x58] sm:$0xff]  }
0x1115   :  { %v3987_v20 = vpop.f32.mrf.mxu1  ;;  %4024 = vmatpush3.bf16.msra.mxu0 %v4113_v28 }
0x1116   :  { %v4114_v20 = vld [vmem:[%s5198_s16 + $0x50] sm:$0xff]   ;;  %4025 = vmatprep.subr.bf16.mxu0 %v4267_v9 }
0x1117   :  { %v2816_v48 = vpop.f32.mrf.mxu1 }
0x1118   :  { %v2827_v7 = vadd.f32 %v3531_v33, %v2816_v48  ;;  %v4115_v48 = vld [vmem:[%s5198_s16 + $0x48] sm:$0xff]  }
0x1119   :  { %v3988_v49 = vpop.f32.mrf.mxu1  ;;  %4026 = vmatpush3.bf16.msra.mxu0 %v4114_v20 }
0x111a   :  { %4027 = vmatprep.subr.bf16.mxu0 %v4267_v9  ;;  %v4116_v49 = vld [vmem:[%s5198_s16 + $0x40] sm:$0xff]  }
0x111d   :  { %4028 = vmatpush3.bf16.msra.mxu0 %v4115_v48 }
0x111e   :  { %4029 = vmatprep.subr.bf16.mxu0 %v4267_v9 }
0x1121   :  { %4030 = vmatpush3.bf16.msra.mxu0 %v4116_v49  ;;  %v3575_v49 = vld [vmem:[%s5201_s19] ss:$0 sm:$0xff] }
0x116b   :  { %v2869_v15 = vpop.f32.mrf.mxu0 }
0x116c   :  { %v2876_v22 = vadd.f32 %v2869_v15, %v2826_v40  ;;  %v3544_v15 = vld [vmem:[%s5197_s15 + $0x1] ss:$0 sm:$0xff] }
0x116d   :  { %v3993_v13 = vpop.f32.mrf.mxu0 }
0x116f   :  { %v2872_v29 = vpop.f32.mrf.mxu0 }
0x1170   :  { %v2877_v44 = vadd.f32 %v2872_v29, %v2827_v7 }
0x1171   :  { %v3994_v32 = vpop.f32.mrf.mxu0 }
0x119f   :  { %v2919_v36 = vpop.f32.mrf.mxu1 }
0x11a0   :  { %v2926_v51 = vadd.f32 %v2919_v36, %v2876_v22 }
0x11a1   :  { %v3999_v38 = vpop.f32.mrf.mxu1 }
0x11a3   :  { %v2922_v45 = vpop.f32.mrf.mxu1 }
0x11a4   :  { %v2927_v31 = vadd.f32 %v2922_v45, %v2877_v44 }
0x11a5   :  { %v4000_v46 = vpop.f32.mrf.mxu1 }
0x11a7   :  { %v2969_v43 = vpop.f32.mrf.mxu0 }
0x11a8   :  { %v2976_v42 = vadd.f32 %v2969_v43, %v2926_v51 }
0x11a9   :  { %v4005_v47 = vpop.f32.mrf.mxu0 }
0x11aa   :  { %v5075_v35 = vadd.f32 %v2976_v42, %v4817_v39 }
0x11ab   :  { %v2972_v52 = vpop.f32.mrf.mxu0 }
0x11ac   :  { %v2977_v53 = vadd.f32 %v2972_v52, %v2927_v31  ;;  %v2984_v54 = vsel %vm245_vm7, %v5075_v35, 0.0 }
0x11ad   :  { %2985 = vadd.xlane.f32.xlu1 %v2984_v54  ;;  %v4006_v55 = vpop.f32.mrf.mxu0 }
0x11ae   :  { %v5080_v61 = vadd.f32 %v2977_v53, %v4822_v59 }
0x11b0   :  { %v2987_v62 = vsel %vm245_vm7, %v5080_v61, 0.0 }
0x11b1   :  { %2988 = vadd.xlane.f32.xlu0 %v2987_v62 }
0x1236   :  { %v2986_v63 = vpop.xlane.xlu1 %2985 }
0x1237   :  { %v2990_v0 = vmul.f32 0.03125, %v2986_v63 }
0x1239   :  { %v2992_v34 = vsub.f32 %v5075_v35, %v2990_v0 }
0x123a   :  { %v2989_v39 = vpop.xlane.xlu0 %2988 }
0x123b   :  { %v2991_v2 = vmul.f32 0.03125, %v2989_v39  ;;  %v2994_v50 = vmul.f32 %v2992_v34, %v2992_v34  ;;  %v3565_v39 = vld [vmem:[%s5199_s17 + $0x1] ss:$0 sm:$0xff] }
0x123d   :  { %v2993_v41 = vsub.f32 %v5080_v61, %v2991_v2  ;;  %v2996_v58 = vsel %vm245_vm7, %v2994_v50, 0.0 }
0x123e   :  { %2997 = vadd.xlane.f32.xlu0 %v2996_v58 }
0x123f   :  { %v2995_v3 = vmul.f32 %v2993_v41, %v2993_v41 }
0x1241   :  { %v2999_v59 = vsel %vm245_vm7, %v2995_v3, 0.0 }
0x1242   :  { %3000 = vadd.xlane.f32.xlu1 %v2999_v59 }
0x12c7   :  { %v2998_v6 = vpop.xlane.xlu0 %2997 }
0x12c8   :  { %v3002_v24 = vmul.f32 0.03125, %v2998_v6 }
0x12ca   :  { %v3004_v8 = vadd.f32 1e-05, %v3002_v24 }
0x12cb   :  { %v3001_v10 = vpop.xlane.xlu1 %3000 }
0x12cc   :  { %4199 = vrsqrt.f32 %v3004_v8  ;;  %v3003_v26 = vmul.f32 0.03125, %v3001_v10 }
0x12ce   :  { %v3005_v18 = vadd.f32 1e-05, %v3003_v26 }
0x12d0   :  { %4201 = vrsqrt.f32 %v3005_v18 }
0x12d9   :  { %v4200_v11 = vpop.eup %4199 }
0x12da   :  { %v3008_v4 = vmul.f32 %v4200_v11, %v2992_v34 }
0x12dc   :  { %v3016_v16 = vmul.f32 %v3537_v60, %v3008_v4 }
0x12dd   :  { %v4202_v12 = vpop.eup %4201 }
0x12de   :  { %v3009_v14 = vmul.f32 %v4202_v12, %v2993_v41  ;;  %v3024_v1 = vadd.f32 %v3538_v57, %v3016_v16  ;;  %v4118_v16 = vld [vmem:[%s5222_s1] sm:$0xff]  }
0x12e0   :  { %v3017_v17 = vmul.f32 %v3537_v60, %v3009_v14 }
0x12e2   :  { %v3025_v19 = vadd.f32 %v3538_v57, %v3017_v17 }
0x12e4   :  { %v3026_v21 = vpack.c.bf16 %v3025_v19, %v3024_v1 }
0x12e6   :  { %4012 = vmatmul.mubr.msk.bf16.vlgmr.msra.gmra.mxu1 %vm245_vm7, %v3026_v21 }
0x12e7   :  { %4039 = vmatprep.mubr.msk.bf16.mxu1 %vm4268_vm1, %v4267_v9 }
0x13a6   :  { %v3089_v13 = vpop.f32.mrf.mxu1 }
0x13a7   :  { %v3090_v29 = vadd.f32 %v3544_v15, %v3089_v13 }
0x13a8   :  { %v4013_v32 = vpop.f32.mrf.mxu1 }
0x13a9   :  { %v3098_v33 = vmul.f32 0.044715, %v3090_v29  ;;  %v3096_v54 = vmul.f32 0.5, %v3090_v29 }
0x13aa   :  { %v3092_v36 = vpop.f32.mrf.mxu1 }
0x13ab   :  { %v3100_v38 = vmul.f32 %v3098_v33, %v3090_v29  ;;  %v3093_v40 = vadd.f32 %v3544_v15, %v3092_v36 }
0x13ac   :  { %v4014_v45 = vpop.f32.mrf.mxu1 }
0x13ad   :  { %v3102_v22 = vmul.f32 %v3100_v38, %v3090_v29  ;;  %v3099_v46 = vmul.f32 0.044715, %v3093_v40  ;;  %v3097_v55 = vmul.f32 0.5, %v3093_v40  ;;  %v3339_v45 = vld [vmem:[%s5223_s27 + $0x8] sm:$0xff] }
0x13ae   :  { %vm3347_vm15 = vcmp.eq.s32.totalorder %v3339_v45, 4294967196 }
0x13af   :  { %v3104_v7 = vadd.f32 %v3102_v22, %v3090_v29  ;;  %v3101_v51 = vmul.f32 %v3099_v46, %v3093_v40  ;;  %v3338_v22 = vld [vmem:[%s5223_s27] sm:$0xff]  ;;  %v3349_v46 = vsel %vm3347_vm15, 0, %v3339_v45 }
0x13b0   :  { %vm3346_vm0 = vcmp.eq.s32.totalorder %v3338_v22, 4294967196 }
0x13b1   :  { %v3106_v43 = vmul.f32 0.7978846, %v3104_v7  ;;  %v3103_v44 = vmul.f32 %v3101_v51, %v3093_v40  ;;  %v3348_v7 = vsel %vm3346_vm0, 0, %v3338_v22 }
0x13b3   :  { %4203 = vtanh.f32 %v3106_v43  ;;  %v3105_v42 = vadd.f32 %v3103_v44, %v3093_v40 }
0x13b5   :  { %v3107_v47 = vmul.f32 0.7978846, %v3105_v42 }
0x13b7   :  { %4205 = vtanh.f32 %v3107_v47 }
0x13c0   :  { %v4204_v31 = vpop.eup %4203 }
0x13c1   :  { %v3110_v52 = vadd.f32 1.0, %v4204_v31 }
0x13c3   :  { %v3112_v63 = vmul.f32 %v3110_v52, %v3096_v54 }
0x13c4   :  { %v4206_v53 = vpop.eup %4205 }
0x13c5   :  { %v3111_v62 = vadd.f32 1.0, %v4206_v53 }
0x13c7   :  { %v3113_v0 = vmul.f32 %v3111_v62, %v3097_v55 }
0x13c9   :  { %v3114_v34 = vpack.c.bf16 %v3113_v0, %v3112_v63 }
0x13cb   :  { %4032 = vmatmul.mubr.bf16.vlgmr.msra.gmra.mxu0 %v3114_v34 }
0x148b   :  { %v3222_v2 = vpop.f32.mrf.mxu0 }
0x148c   :  { %v3223_v50 = vadd.f32 %v3565_v39, %v3222_v2 }
0x148d   :  { %v4033_v41 = vpop.f32.mrf.mxu0 }
0x148e   :  { %v3229_v58 = vadd.f32 %v3223_v50, %v5075_v35 }
0x148f   :  { %v3225_v3 = vpop.f32.mrf.mxu0 }
0x1490   :  { %v3226_v59 = vadd.f32 %v3565_v39, %v3225_v3  ;;  %v3233_v37 = vsel %vm245_vm7, %v3229_v58, 0.0 }
0x1491   :  { %3234 = vadd.xlane.f32.xlu0 %v3233_v37  ;;  %v4034_v5 = vpop.f32.mrf.mxu0 }
0x1492   :  { %v3230_v6 = vadd.f32 %v3226_v59, %v5080_v61  ;;  %v4117_v61 = vld [vmem:[%s5222_s1 + $0x8] sm:$0xff]  }
0x1493   :  { %4036 = vmatpush3.bf16.msra.mxu1 %v4117_v61 }
0x1494   :  { %v3236_v24 = vsel %vm245_vm7, %v3230_v6, 0.0  ;;  %4037 = vmatprep.subr.bf16.mxu1 %v4267_v9 }
0x1495   :  { %3237 = vadd.xlane.f32.xlu1 %v3236_v24 }
0x1497   :  { %4038 = vmatpush3.bf16.msra.mxu1 %v4118_v16 }
0x151a   :  { %v3235_v8 = vpop.xlane.xlu0 %3234 }
0x151b   :  { %v3239_v10 = vmul.f32 0.03125, %v3235_v8 }
0x151d   :  { %v3241_v26 = vsub.f32 %v3229_v58, %v3239_v10 }
0x151e   :  { %v3238_v18 = vpop.xlane.xlu1 %3237 }
0x151f   :  { %v3240_v11 = vmul.f32 0.03125, %v3238_v18  ;;  %v3243_v4 = vmul.f32 %v3241_v26, %v3241_v26 }
0x1521   :  { %v3242_v60 = vsub.f32 %v3230_v6, %v3240_v11  ;;  %v3245_v35 = vsel %vm245_vm7, %v3243_v4, 0.0 }
0x1522   :  { %3246 = vadd.xlane.f32.xlu0 %v3245_v35 }
0x1523   :  { %v3244_v12 = vmul.f32 %v3242_v60, %v3242_v60 }
0x1525   :  { %v3248_v14 = vsel %vm245_vm7, %v3244_v12, 0.0 }
0x1526   :  { %3249 = vadd.xlane.f32.xlu1 %v3248_v14 }
0x15ab   :  { %v3247_v57 = vpop.xlane.xlu0 %3246 }
0x15ac   :  { %v3251_v17 = vmul.f32 0.03125, %v3247_v57 }
0x15ae   :  { %v3253_v1 = vadd.f32 1e-05, %v3251_v17 }
0x15af   :  { %v3250_v19 = vpop.xlane.xlu1 %3249 }
0x15b0   :  { %4207 = vrsqrt.f32 %v3253_v1  ;;  %v3252_v21 = vmul.f32 0.03125, %v3250_v19 }
0x15b2   :  { %v3254_v56 = vadd.f32 1e-05, %v3252_v21 }
0x15b4   :  { %4209 = vrsqrt.f32 %v3254_v56 }
0x15bd   :  { %v4208_v23 = vpop.eup %4207 }
0x15be   :  { %v3257_v25 = vmul.f32 %v4208_v23, %v3241_v26 }
0x15c0   :  { %v3265_v48 = vmul.f32 %v3574_v27, %v3257_v25 }
0x15c1   :  { %v4210_v28 = vpop.eup %4209 }
0x15c2   :  { %v3258_v20 = vmul.f32 %v4210_v28, %v3242_v60  ;;  %v3273_v13 = vadd.f32 %v3575_v49, %v3265_v48 }
0x15c4   :  { %v3266_v15 = vmul.f32 %v3574_v27, %v3258_v20 }
0x15c6   :  { %v3274_v29 = vadd.f32 %v3575_v49, %v3266_v15 }
0x15c8   :  { %v3275_v32 = vpack.c.bf16 %v3274_v29, %v3273_v13 }
0x15ca   :  { %4040 = vmatmul.mubr.msk.bf16.vlgmr.msra.gmra.mxu1 %vm245_vm7, %v3275_v32 }
0x168a   :  { %v3329_v33 = vpop.f32.mrf.mxu1 }
0x168b   :  { %3336 = vst [vmem:[#allocation2] sm:$0xff] %v3329_v33  ;;  %3350 = vmax.xlane.f32.xlu0 %v3329_v33 }
0x168c   :  { %v4041_v36 = vpop.f32.mrf.mxu1 }
0x168e   :  { %v3332_v38 = vpop.f32.mrf.mxu1 }
0x168f   :  { %3337 = vst [vmem:[#allocation2 + $0x8] sm:$0xff] %v3332_v38  ;;  %3352 = vmax.xlane.f32.xlu1 %v3332_v38 }
0x1690   :  { %v4042_v40 = vpop.f32.mrf.mxu1 }
0x16a0   :  { %3374 = vperm.xlu1 %4084, %v3349_v46  }
0x16a1   :  { %3371 = vperm.xlu0 %4058, %v3348_v7  }
0x1714   :  { %v3351_v51 = vpop.xlane.xlu0 %3350 }
0x1715   :  { %v3354_v43 = vsub.f32 %v3329_v33, %v3351_v51 }
0x1717   :  { %v3356_v44 = vmul.f32 1.442695, %v3354_v43 }
0x1718   :  { %v3353_v42 = vpop.xlane.xlu1 %3352 }
0x1719   :  { %4211 = vpow2.f32 %v3356_v44  ;;  %v3355_v47 = vsub.f32 %v3332_v38, %v3353_v42 }
0x171b   :  { %v3358_v31 = vmul.f32 1.442695, %v3355_v47 }
0x171c   :  { %v3375_v52 = vpop.permute.xlu1 %3374  ;;  %v3372_v54 = vpop.permute.xlu0 %3371 }
0x171d   :  { %4213 = vpow2.f32 %v3358_v31  ;;  %vm3377_vm1 = vcmp.eq.s32.totalorder %v4446_v30, %v3375_v52  ;;  %vm3376_vm2 = vcmp.eq.s32.totalorder %v4446_v30, %v3372_v54 }
0x171e   :  { %v3379_v62 = vsel %vm3377_vm1, %v3332_v38, 0.0  ;;  %v3378_v63 = vsel %vm3376_vm2, %v3329_v33, 0.0 }
0x1726   :  { %v4212_v53 = vpop.eup %4211 }
0x1727   :  { %3360 = vadd.xlane.f32.xlu1 %v4212_v53 }
0x172a   :  { %v4214_v55 = vpop.eup %4213 }
0x172b   :  { %3362 = vadd.xlane.f32.xlu0 %v4214_v55  ;;  %3382 = vadd.xlane.f32.xlu1 %v3379_v62 }
0x172f   :  { %3380 = vadd.xlane.f32.xlu0 %v3378_v63 }
0x1730   :  { %4232 = shalt.err (!%p4229_p4)
}
0x1731   :  { %s4277_s9 = smov 128   ;;  %s4278_s30 = smov 8   ;;  %vm3341_vm3 = vcmp.ne.s32.totalorder %v3339_v45, 4294967196  ;;  %vm3340_vm4 = vcmp.ne.s32.totalorder %v3338_v22, 4294967196  ;;  %vm3388_vm5 = vcmask 7168   ;;  %vm3410_vm6 = vcmask 0  }
0x1732   :  { %3423 = dma.vmem_to_hbm [thread:$0]  %s3418_s6, 256, %s5202_s20, [#allocation3], %s4277_s9, %s4277_s9, %s4278_s30   ;;  %v3580_v30 = vsel %vm3341_vm3, 1.0, %v4267_v9  ;;  %v3579_v0 = vsel %vm3340_vm4, 1.0, %v4267_v9 }
0x1733   :  { %v3399_v34 = vsel %vm3388_vm5, %v3580_v30, 0.0  ;;  %v3398_v39 = vsel %vm3388_vm5, %v3579_v0, 0.0  ;;  %s4279_s20 = smov [#allocation4]  }
0x1734   :  { %v3400_v2 = vadd.f32 %v3399_v34, %v3398_v39  ;;  %s3430_s22 = sshll.u32 %s4279_s20, 4  ;;  %s3431_s22 = int_to_ptr.vmem [resolvable:$true] %s3430_s22 }
0x1735   :  { %s4241_s23 = scalar_lea.vmem %s3431_s22, 16  ;;  %s4245_s10 = scalar_lea.vmem %s3431_s22, 32 }
0x1736   :  { %v3401_v50 = vrot.slane %v3400_v2, 4  ;;  %p4242_p5 = scmp.ne.s32.totalorder %s3431_s22, %s4241_s23  ;;  %p4246_p6 = scmp.lt.s32.totalorder %s3431_s22, %s3431_s22 }
0x1737   :  { %p4247_p7 = scmp.lt.s32.totalorder %s4245_s10, %s4241_s23 }
0x1738   :  { %v3402_v58 = vadd.f32 %v3401_v50, %v3400_v2 }
0x1739   :  { %p4248_p8 = por %p4247_p7, %p4246_p6 }
0x173a   :  { %v3403_v59 = vrot.slane %v3402_v58, 2 }
0x173b   :  { %p4249_p9 = pnand %p4248_p8, %p4242_p5 }
0x173c   :  { %v3404_v37 = vadd.f32 %v3403_v59, %v3402_v58 }
0x173e   :  { %v3405_v6 = vrot.slane %v3404_v37, 1 }
0x1740   :  { %v3406_v26 = vadd.f32 %v3405_v6, %v3404_v37 }
0x1742   :  { %v3407_v35 = vmax.f32 %v3406_v26, 1.0 }
0x17b0   :  { %v3361_v41 = vpop.xlane.xlu1 %3360 }
0x17b1   :  { %4215 = vlog2.f32 %v3361_v41 }
0x17b4   :  { %v3363_v3 = vpop.xlane.xlu0 %3362  ;;  %v3383_v60 = vpop.xlane.xlu1 %3382 }
0x17b5   :  { %4217 = vlog2.f32 %v3363_v3 }
0x17b6   :  { %4219 = vrcp.f32 %v3407_v35 }
0x17b8   :  { %v3381_v9 = vpop.xlane.xlu0 %3380 }
0x17be   :  { %v4216_v5 = vpop.eup %4215 }
0x17bf   :  { %v3365_v24 = vmul.f32 0.6931472, %v4216_v5 }
0x17c1   :  { %v3368_v8 = vadd.f32 %v3365_v24, %v3351_v51 }
0x17c2   :  { %v4218_v10 = vpop.eup %4217 }
0x17c3   :  { %v3367_v18 = vmul.f32 0.6931472, %v4218_v10  ;;  %v3384_v11 = vsub.f32 %v3368_v8, %v3381_v9  ;;  %v4220_v25 = vpop.eup %4219 }
0x17c5   :  { %v3369_v4 = vadd.f32 %v3367_v18, %v3353_v42  ;;  %v3386_v14 = vmul.f32 %v3579_v0, %v3384_v11 }
0x17c7   :  { %v3385_v12 = vsub.f32 %v3369_v4, %v3383_v60  ;;  %v3389_v57 = vsel %vm3388_vm5, %v3386_v14, 0.0 }
0x17c9   :  { %v3387_v61 = vmul.f32 %v3580_v30, %v3385_v12 }
0x17cb   :  { %v3390_v16 = vsel %vm3388_vm5, %v3387_v61, 0.0 }
0x17cc   :  { %v3391_v17 = vadd.f32 %v3390_v16, %v3389_v57 }
0x17ce   :  { %v3392_v1 = vrot.slane %v3391_v17, 4 }
0x17d0   :  { %v3393_v19 = vadd.f32 %v3392_v1, %v3391_v17 }
0x17d2   :  { %v3394_v21 = vrot.slane %v3393_v19, 2 }
0x17d4   :  { %v3395_v56 = vadd.f32 %v3394_v21, %v3393_v19 }
0x17d6   :  { %v3396_v23 = vrot.slane %v3395_v56, 1 }
0x17d8   :  { %v3397_v27 = vadd.f32 %v3396_v23, %v3395_v56 }
0x17da   :  { %v3409_v28 = vmul.f32 %v4220_v25, %v3397_v27 }
0x17dc   :  { %3411 = vst.msk [vmem:[#allocation4] sm:$0x1] %vm3410_vm6, %v3409_v28 }
0x17dd   :  { %4252 = shalt.err (!%p4249_p9)
}
0x17de   :  { %3433 = dma.vmem_to_hbm [thread:$0]  %s3431_s22, 16, %s5203_s21, [#allocation5]  }
0x17df   :  { %4261 = dma.done.wait [#allocation3], 256  }
0x17e0   :  { %4262 = vsyncadd [#allocation3], 4294967040 }
0x17e1   :  { %4263 = dma.done.wait [#allocation5], 16  }
0x17e2   :  { %4264 = vsyncadd [#allocation5], 4294967280 }
0x17e3   :  { %3440 = vsyncpa [#allocation3], 1 }
0x17e4   :  { %3441 = vsyncpa [#allocation5], 1 }

</bundles_post_ra>
